<compile_context>
chip_gen: v7x
topology: tpu7x:2x2x1
jax: 0.10.0
libtpu: 0.0.40
codegen_flags: <defaults>
</compile_context>

<pallas_src>
import functools

import numpy as np
import jax
import jax.numpy as jnp
from jax import lax
from jax.experimental import pallas as pl
from jax.experimental.pallas import tpu as pltpu

EPS = 1e-5  # PyTorch GroupNorm default eps


# ---------------------------------------------------------------------------
# In-kernel helpers (traced inside the Pallas kernel body)
# ---------------------------------------------------------------------------
def _group_norm_relu(x, gamma, beta, n_groups):
    """One-pass GroupNorm (affine) + ReLU on one sample in (C, S) layout.

    x: (C, S) float32; gamma/beta: (C, 1) float32.
    """
    C, S = x.shape
    g = C // n_groups
    inv_cnt = 1.0 / float(S * g)
    ch_sum = jnp.sum(x, axis=1, keepdims=True)                              # (C, 1)
    ch_sq = jnp.sum(x * x, axis=1, keepdims=True)                           # (C, 1)
    grp_sum = jnp.sum(ch_sum.reshape(n_groups, g), axis=1, keepdims=True)   # (G, 1)
    grp_sq = jnp.sum(ch_sq.reshape(n_groups, g), axis=1, keepdims=True)     # (G, 1)
    mean = grp_sum * inv_cnt                                                 # (G, 1)
    var = grp_sq * inv_cnt - mean * mean                                     # (G, 1)
    mean_c = jnp.broadcast_to(mean, (n_groups, g)).reshape(C, 1)
    var_c = jnp.broadcast_to(var, (n_groups, g)).reshape(C, 1)
    scale = lax.rsqrt(var_c + EPS) * gamma                                   # (C, 1)
    shift = beta - mean_c * scale                                            # (C, 1)
    return jnp.maximum(x * scale + shift, 0.0)


def _conv3x3x3(a, w_ref, bias, hwm_ref, act_pad_ref, patch_ref, H, W, PAD):
    """'Same' 3x3x3 conv as 3 accumulating (C, 9C) @ (9C, S) bf16 MXU matmuls.

    a:           (C, S) float32 activation (S = D*H*W on lanes)
    w_ref:       Ref (3, Cout, 9*Cin) bf16 — dd-major, (kh,kw)-tap-major, Cin-minor
    bias:        (C, 1) float32
    hwm_ref:     Ref (9, S) float32 h/w boundary masks (row = (dh+1)*3 + (dw+1))
    act_pad_ref: Ref (C, PAD + S + PAD) f32 lane-padded scratch (halo strips zero)
    patch_ref:   Ref (9*C, S) bf16 dd-blocked im2col scratch
    """
    C, S = a.shape
    # Interior write is lane-aligned (PAD is a multiple of 128).
    act_pad_ref[:, PAD:PAD + S] = a

    # One (1,S)->(C,S) broadcast per (dh, dw) pair, reused across the 3 dd taps
    # (JAX does not CSE broadcast_in_dim, so materialize once and reuse).
    masks = {}
    for dh in (-1, 0, 1):
        for dw in (-1, 0, 1):
            if dh == 0 and dw == 0:
                continue
            mi = (dh + 1) * 3 + (dw + 1)
            masks[(dh, dw)] = jnp.broadcast_to(hwm_ref[mi:mi + 1, :], (C, S))

    out = None
    for di, dd in enumerate((-1, 0, 1)):
        k = 0
        for dh in (-1, 0, 1):
            for dw in (-1, 0, 1):
                start = PAD + dd * H * W + dh * W + dw        # static offset
                tap = act_pad_ref[:, start:start + S]         # (C, S) f32
                if not (dh == 0 and dw == 0):
                    tap = tap * masks[(dh, dw)]               # mask h/w wrap (f32)
                # depth out-of-bounds handled by the zero halo strips
                patch_ref[k * C:(k + 1) * C, :] = tap.astype(jnp.bfloat16)
                k += 1
        part = jnp.dot(w_ref[di], patch_ref[...],
                       preferred_element_type=jnp.float32)    # (C, S) f32
        out = part if out is None else out + part
    return out + bias


# ---------------------------------------------------------------------------
# Pallas kernel: one batch element per grid step
# ---------------------------------------------------------------------------
def green_block_kernel(x_ref, hwm_ref, g1_ref, b1_ref, w1_ref, cb1_ref,
                       g2_ref, b2_ref, w2_ref, cb2_ref,
                       out_ref, patch_ref, act_pad_ref,
                       *, n_groups, H, W, PAD):
    _, C, S = x_ref.shape
    x = x_ref[0].astype(jnp.float32)                          # (C, S)

    # Zero only the halo strips (2 * C * PAD floats); interior is always
    # overwritten before any tap read. Done per step so each TensorCore's
    # private scratch instance is initialized.
    zpad = jnp.zeros((C, PAD), jnp.float32)
    act_pad_ref[:, 0:PAD] = zpad
    act_pad_ref[:, PAD + S:2 * PAD + S] = zpad

    a1 = _group_norm_relu(x, g1_ref[...], b1_ref[...], n_groups)
    c1 = _conv3x3x3(a1, w1_ref, cb1_ref[...], hwm_ref, act_pad_ref, patch_ref,
                    H, W, PAD)
    a2 = _group_norm_relu(c1, g2_ref[...], b2_ref[...], n_groups)
    c2 = _conv3x3x3(a2, w2_ref, cb2_ref[...], hwm_ref, act_pad_ref, patch_ref,
                    H, W, PAD)

    out_ref[...] = (x + c2).reshape(1, C, S).astype(out_ref.dtype)  # residual


# ---------------------------------------------------------------------------
# Wrapper-side static helpers
# ---------------------------------------------------------------------------
def _hw_mask_table(D, H, W):
    """(9, S) f32 masks for h/w boundary wrap of the flattened lane shifts."""
    S = D * H * W
    s = np.arange(S)
    h = (s // W) % H
    w = s % W
    rows = []
    for dh in (-1, 0, 1):
        for dw in (-1, 0, 1):
            ok = np.ones(S, dtype=np.float32)
            if dh == -1:
                ok = ok * (h >= 1)
            elif dh == 1:
                ok = ok * (h <= H - 2)
            if dw == -1:
                ok = ok * (w >= 1)
            elif dw == 1:
                ok = ok * (w <= W - 2)
            rows.append(ok.astype(np.float32))
    return jnp.asarray(np.stack(rows, axis=0))


# ---------------------------------------------------------------------------
# Wrapper (NCDHW in / NCDHW out, like the PyTorch module)
# ---------------------------------------------------------------------------
def green_block(x_ncdhw, params, n_groups):
    N, C, D, H, W = x_ncdhw.shape
    S = D * H * W
    # Halo wide enough for the largest flattened tap offset (H*W + W + 1),
    # rounded to a multiple of 128 so the interior write is lane-aligned.
    PAD = ((H * W + W + 1 + 127) // 128) * 128

    x = x_ncdhw.reshape(N, C, S)            # NCDHW -> (N, C, S): free reshape
    hwm = _hw_mask_table(D, H, W)           # (9, S)

    g1, b1, w1, cb1, g2, b2, w2, cb2 = params

    # PyTorch Conv3d weight (Cout, Cin, kd, kh, kw) -> (3, Cout, 9*Cin) bf16,
    # dd-major / (kh,kw)-tap-major / Cin-minor — matches the patch row order.
    def pack_w(w):
        wt = jnp.transpose(w, (2, 0, 3, 4, 1))                # (kd, Co, kh, kw, Ci)
        return wt.reshape(3, C, 9 * C).astype(jnp.bfloat16)

    w1p, w2p = pack_w(w1), pack_w(w2)
    col = lambda v: v.reshape(C, 1)
    g1c, b1c, cb1c = col(g1), col(b1), col(cb1)
    g2c, b2c, cb2c = col(g2), col(b2), col(cb2)

    full = lambda a: pl.BlockSpec(a.shape, lambda n: (0,) * a.ndim)

    out = pl.pallas_call(
        functools.partial(green_block_kernel,
                          n_groups=n_groups, H=H, W=W, PAD=PAD),
        out_shape=jax.ShapeDtypeStruct((N, C, S), x.dtype),
        grid_spec=pltpu.PrefetchScalarGridSpec(
            num_scalar_prefetch=0,
            grid=(N,),
            in_specs=[
                pl.BlockSpec((1, C, S), lambda n: (n, 0, 0)),
                full(hwm),
                full(g1c), full(b1c), full(w1p), full(cb1c),
                full(g2c), full(b2c), full(w2p), full(cb2c),
            ],
            out_specs=pl.BlockSpec((1, C, S), lambda n: (n, 0, 0)),
            scratch_shapes=[
                pltpu.VMEM((9 * C, S), jnp.bfloat16),        # dd-blocked im2col patch
                pltpu.VMEM((C, 2 * PAD + S), jnp.float32),   # lane-padded activation
            ],
        ),
        compiler_params=pltpu.CompilerParams(
            dimension_semantics=("parallel",),               # megacore over batch
            vmem_limit_bytes=32 * 1024 * 1024),
    )(x, hwm, g1c, b1c, w1p, cb1c, g2c, b2c, w2p, cb2c)

    return out.reshape(N, C, D, H, W)


# ---------------------------------------------------------------------------
# Pure-JAX references (for correctness check)
# ---------------------------------------------------------------------------
def _ref_group_norm(x, gamma, beta, n_groups):
    N, C, D, H, W = x.shape
    xr = x.reshape(N, n_groups, C // n_groups, D, H, W)
    mean = xr.mean(axis=(2, 3, 4, 5), keepdims=True)
    var = ((xr - mean) ** 2).mean(axis=(2, 3, 4, 5), keepdims=True)
    xn = ((xr - mean) / jnp.sqrt(var + EPS)).reshape(N, C, D, H, W)
    return xn * gamma.reshape(1, C, 1, 1, 1) + beta.reshape(1, C, 1, 1, 1)


def _ref_conv3d(x, w, b, bf16=False):
    if bf16:
        x = x.astype(jnp.bfloat16)
        w = w.astype(jnp.bfloat16)
    y = lax.conv_general_dilated(
        x, w, window_strides=(1, 1, 1),
        padding=((1, 1), (1, 1), (1, 1)),
        dimension_numbers=("NCDHW", "OIDHW", "NCDHW"),
        preferred_element_type=jnp.float32)
    return y + b.reshape(1, -1, 1, 1, 1)


def green_block_ref(x, params, n_groups, bf16=False):
    g1, b1, w1, cb1, g2, b2, w2, cb2 = params
    h = jnp.maximum(_ref_group_norm(x, g1, b1, n_groups), 0.0)
    h = _ref_conv3d(h, w1, cb1, bf16)
    h = jnp.maximum(_ref_group_norm(h, g2, b2, n_groups), 0.0)
    h = _ref_conv3d(h, w2, cb2, bf16)
    return x + h


# ---------------------------------------------------------------------------
if __name__ == "__main__":
    N, C, D, H, W = 2, 8, 8, 8, 8
    N_GROUPS = 8

    key = jax.random.PRNGKey(0)
    ks = jax.random.split(key, 9)
    x = jax.random.normal(ks[0], (N, C, D, H, W), jnp.float32)

    # deterministic synthetic parameters (shapes match nn.GroupNorm / nn.Conv3d)
    g1 = 1.0 + 0.1 * jax.random.normal(ks[1], (C,), jnp.float32)
    b1 = 0.1 * jax.random.normal(ks[2], (C,), jnp.float32)
    w1 = 0.05 * jax.random.normal(ks[3], (C, C, 3, 3, 3), jnp.float32)
    cb1 = 0.05 * jax.random.normal(ks[4], (C,), jnp.float32)
    g2 = 1.0 + 0.1 * jax.random.normal(ks[5], (C,), jnp.float32)
    b2 = 0.1 * jax.random.normal(ks[6], (C,), jnp.float32)
    w2 = 0.05 * jax.random.normal(ks[7], (C, C, 3, 3, 3), jnp.float32)
    cb2 = 0.05 * jax.random.normal(ks[8], (C,), jnp.float32)
    params = (g1, b1, w1, cb1, g2, b2, w2, cb2)

    out = green_block(x, params, N_GROUPS)
    out = jax.block_until_ready(out)
    assert out.shape == (N, C, D, H, W)

    # Tight check against a reference that also uses bf16 conv operands with
    # f32 accumulation (matches the kernel's MXU path).
    ref_bf16 = green_block_ref(x, params, N_GROUPS, bf16=True)
    assert jnp.allclose(out, ref_bf16, rtol=1e-2, atol=1e-2), (
        float(jnp.max(jnp.abs(out - ref_bf16))))

    # Loose sanity check against the exact f32 module semantics (bf16 MXU
    # operands introduce ~1e-2 absolute deviation at these magnitudes).
    ref_f32 = green_block_ref(x, params, N_GROUPS, bf16=False)
    assert jnp.allclose(out, ref_f32, rtol=5e-2, atol=5e-2), (
        float(jnp.max(jnp.abs(out - ref_f32))))

    print("KERNEL_OK")
</pallas_src>

<mosaic_0001>
module attributes {stable_mosaic.version = 11 : i64} {
  func.func @green_block_kernel(%arg0: i32, %arg1: memref<1x8x512xf32, #tpu.memory_space<vmem>>, %arg2: memref<9x512xf32, #tpu.memory_space<vmem>>, %arg3: memref<8x1xf32, #tpu.memory_space<vmem>>, %arg4: memref<8x1xf32, #tpu.memory_space<vmem>>, %arg5: memref<3x8x72xbf16, #tpu.memory_space<vmem>>, %arg6: memref<8x1xf32, #tpu.memory_space<vmem>>, %arg7: memref<8x1xf32, #tpu.memory_space<vmem>>, %arg8: memref<8x1xf32, #tpu.memory_space<vmem>>, %arg9: memref<3x8x72xbf16, #tpu.memory_space<vmem>>, %arg10: memref<8x1xf32, #tpu.memory_space<vmem>>, %arg11: memref<1x8x512xf32, #tpu.memory_space<vmem>>, %arg12: memref<72x512xbf16, #tpu.memory_space<vmem>>, %arg13: memref<8x768xf32, #tpu.memory_space<vmem>>) attributes {dimension_semantics = [#tpu.dimension_semantics<parallel>], iteration_bounds = array<i64: 2>, scalar_prefetch = 0 : i64, scratch_operands = 2 : i64, tpu.core_type = #tpu.core_type<tc>, window_params = [{transform_indices = @transform_0, window_bounds = array<i64: 1, 8, 512>}, {pipeline_mode = #tpu.pipeline_mode<synchronous>, transform_indices = @transform_1, window_bounds = array<i64: 9, 512>}, {pipeline_mode = #tpu.pipeline_mode<synchronous>, transform_indices = @transform_2, window_bounds = array<i64: 8, 1>}, {pipeline_mode = #tpu.pipeline_mode<synchronous>, transform_indices = @transform_3, window_bounds = array<i64: 8, 1>}, {pipeline_mode = #tpu.pipeline_mode<synchronous>, transform_indices = @transform_4, window_bounds = array<i64: 3, 8, 72>}, {pipeline_mode = #tpu.pipeline_mode<synchronous>, transform_indices = @transform_5, window_bounds = array<i64: 8, 1>}, {pipeline_mode = #tpu.pipeline_mode<synchronous>, transform_indices = @transform_6, window_bounds = array<i64: 8, 1>}, {pipeline_mode = #tpu.pipeline_mode<synchronous>, transform_indices = @transform_7, window_bounds = array<i64: 8, 1>}, {pipeline_mode = #tpu.pipeline_mode<synchronous>, transform_indices = @transform_8, window_bounds = array<i64: 3, 8, 72>}, {pipeline_mode = #tpu.pipeline_mode<synchronous>, transform_indices = @transform_9, window_bounds = array<i64: 8, 1>}, {transform_indices = @transform_10, window_bounds = array<i64: 1, 8, 512>}]} {
    %c0 = arith.constant 0 : index
    %c0_0 = arith.constant 0 : index
    %c0_1 = arith.constant 0 : index
    %0 = vector.load %arg1[%c0, %c0_0, %c0_1] : memref<1x8x512xf32, #tpu.memory_space<vmem>>, vector<1x8x512xf32>
    %1 = vector.shape_cast %0 : vector<1x8x512xf32> to vector<8x512xf32>
    %cst = arith.constant 0.000000e+00 : f32
    %2 = vector.broadcast %cst : f32 to vector<8x128xf32>
    %c0_2 = arith.constant 0 : index
    %c0_3 = arith.constant 0 : index
    %3 = vector.load %arg13[%c0_2, %c0_3] : memref<8x768xf32, #tpu.memory_space<vmem>>, vector<8x128xf32>
    tpu.vector_store %arg13[%c0_2, %c0_3], %2 {strides = array<i32>} : memref<8x768xf32, #tpu.memory_space<vmem>>, vector<8x128xf32>,
    %c0_4 = arith.constant 0 : index
    %c640 = arith.constant 640 : index
    %4 = vector.load %arg13[%c0_4, %c640] : memref<8x768xf32, #tpu.memory_space<vmem>>, vector<8x128xf32>
    tpu.vector_store %arg13[%c0_4, %c640], %2 {strides = array<i32>} : memref<8x768xf32, #tpu.memory_space<vmem>>, vector<8x128xf32>,
    %c0_5 = arith.constant 0 : index
    %c0_6 = arith.constant 0 : index
    %5 = vector.load %arg3[%c0_5, %c0_6] : memref<8x1xf32, #tpu.memory_space<vmem>>, vector<8x1xf32>
    %c0_7 = arith.constant 0 : index
    %c0_8 = arith.constant 0 : index
    %6 = vector.load %arg4[%c0_7, %c0_8] : memref<8x1xf32, #tpu.memory_space<vmem>>, vector<8x1xf32>
    %cst_9 = arith.constant dense<0.000000e+00> : vector<8xf32>
    %7 = vector.multi_reduction <add>, %1, %cst_9 [1] : vector<8x512xf32> to vector<8xf32>
    %8 = vector.shape_cast %7 : vector<8xf32> to vector<8x1xf32>
    %9 = arith.mulf %1, %1 : vector<8x512xf32>
    %cst_10 = arith.constant dense<0.000000e+00> : vector<8xf32>
    %10 = vector.multi_reduction <add>, %9, %cst_10 [1] : vector<8x512xf32> to vector<8xf32>
    %11 = vector.shape_cast %10 : vector<8xf32> to vector<8x1xf32>
    %cst_11 = arith.constant dense<0.000000e+00> : vector<8xf32>
    %12 = vector.multi_reduction <add>, %8, %cst_11 [1] : vector<8x1xf32> to vector<8xf32>
    %13 = vector.shape_cast %12 : vector<8xf32> to vector<8x1xf32>
    %cst_12 = arith.constant dense<0.000000e+00> : vector<8xf32>
    %14 = vector.multi_reduction <add>, %11, %cst_12 [1] : vector<8x1xf32> to vector<8xf32>
    %15 = vector.shape_cast %14 : vector<8xf32> to vector<8x1xf32>
    %cst_13 = arith.constant 0.001953125 : f32
    %16 = vector.broadcast %cst_13 : f32 to vector<8x1xf32>
    %17 = arith.mulf %13, %16 : vector<8x1xf32>
    %cst_14 = arith.constant 0.001953125 : f32
    %18 = vector.broadcast %cst_14 : f32 to vector<8x1xf32>
    %19 = arith.mulf %15, %18 : vector<8x1xf32>
    %20 = arith.mulf %17, %17 : vector<8x1xf32>
    %21 = arith.subf %19, %20 : vector<8x1xf32>
    %cst_15 = arith.constant 9.99999974E-6 : f32
    %22 = vector.broadcast %cst_15 : f32 to vector<8x1xf32>
    %23 = arith.addf %21, %22 : vector<8x1xf32>
    %24 = math.rsqrt %23 : vector<8x1xf32>
    %25 = arith.mulf %24, %5 : vector<8x1xf32>
    %26 = arith.mulf %17, %25 : vector<8x1xf32>
    %27 = arith.subf %6, %26 : vector<8x1xf32>
    %28 = vector.broadcast %25 : vector<8x1xf32> to vector<8x512xf32>
    %29 = arith.mulf %1, %28 : vector<8x512xf32>
    %30 = vector.broadcast %27 : vector<8x1xf32> to vector<8x512xf32>
    %31 = arith.addf %29, %30 : vector<8x512xf32>
    %cst_16 = arith.constant 0.000000e+00 : f32
    %32 = vector.broadcast %cst_16 : f32 to vector<8x512xf32>
    %33 = arith.maximumf %31, %32 : vector<8x512xf32>
    %c0_17 = arith.constant 0 : index
    %c0_18 = arith.constant 0 : index
    %34 = vector.load %arg6[%c0_17, %c0_18] : memref<8x1xf32, #tpu.memory_space<vmem>>, vector<8x1xf32>
    %c0_19 = arith.constant 0 : index
    %c128 = arith.constant 128 : index
    %35 = vector.load %arg13[%c0_19, %c128] : memref<8x768xf32, #tpu.memory_space<vmem>>, vector<8x512xf32>
    tpu.vector_store %arg13[%c0_19, %c128], %33 {strides = array<i32>} : memref<8x768xf32, #tpu.memory_space<vmem>>, vector<8x512xf32>,
    %c0_20 = arith.constant 0 : index
    %c0_21 = arith.constant 0 : index
    %36 = vector.load %arg2[%c0_20, %c0_21] : memref<9x512xf32, #tpu.memory_space<vmem>>, vector<1x512xf32>
    %37 = vector.shape_cast %36 : vector<1x512xf32> to vector<1x512xf32>
    %38 = vector.broadcast %37 : vector<1x512xf32> to vector<8x512xf32>
    %c1 = arith.constant 1 : index
    %c0_22 = arith.constant 0 : index
    %39 = vector.load %arg2[%c1, %c0_22] : memref<9x512xf32, #tpu.memory_space<vmem>>, vector<1x512xf32>
    %40 = vector.shape_cast %39 : vector<1x512xf32> to vector<1x512xf32>
    %41 = vector.broadcast %40 : vector<1x512xf32> to vector<8x512xf32>
    %c2 = arith.constant 2 : index
    %c0_23 = arith.constant 0 : index
    %42 = vector.load %arg2[%c2, %c0_23] : memref<9x512xf32, #tpu.memory_space<vmem>>, vector<1x512xf32>
    %43 = vector.shape_cast %42 : vector<1x512xf32> to vector<1x512xf32>
    %44 = vector.broadcast %43 : vector<1x512xf32> to vector<8x512xf32>
    %c3 = arith.constant 3 : index
    %c0_24 = arith.constant 0 : index
    %45 = vector.load %arg2[%c3, %c0_24] : memref<9x512xf32, #tpu.memory_space<vmem>>, vector<1x512xf32>
    %46 = vector.shape_cast %45 : vector<1x512xf32> to vector<1x512xf32>
    %47 = vector.broadcast %46 : vector<1x512xf32> to vector<8x512xf32>
    %c5 = arith.constant 5 : index
    %c0_25 = arith.constant 0 : index
    %48 = vector.load %arg2[%c5, %c0_25] : memref<9x512xf32, #tpu.memory_space<vmem>>, vector<1x512xf32>
    %49 = vector.shape_cast %48 : vector<1x512xf32> to vector<1x512xf32>
    %50 = vector.broadcast %49 : vector<1x512xf32> to vector<8x512xf32>
    %c6 = arith.constant 6 : index
    %c0_26 = arith.constant 0 : index
    %51 = vector.load %arg2[%c6, %c0_26] : memref<9x512xf32, #tpu.memory_space<vmem>>, vector<1x512xf32>
    %52 = vector.shape_cast %51 : vector<1x512xf32> to vector<1x512xf32>
    %53 = vector.broadcast %52 : vector<1x512xf32> to vector<8x512xf32>
    %c7 = arith.constant 7 : index
    %c0_27 = arith.constant 0 : index
    %54 = vector.load %arg2[%c7, %c0_27] : memref<9x512xf32, #tpu.memory_space<vmem>>, vector<1x512xf32>
    %55 = vector.shape_cast %54 : vector<1x512xf32> to vector<1x512xf32>
    %56 = vector.broadcast %55 : vector<1x512xf32> to vector<8x512xf32>
    %c8 = arith.constant 8 : index
    %c0_28 = arith.constant 0 : index
    %57 = vector.load %arg2[%c8, %c0_28] : memref<9x512xf32, #tpu.memory_space<vmem>>, vector<1x512xf32>
    %58 = vector.shape_cast %57 : vector<1x512xf32> to vector<1x512xf32>
    %59 = vector.broadcast %58 : vector<1x512xf32> to vector<8x512xf32>
    %c0_29 = arith.constant 0 : index
    %c55 = arith.constant 55 : index
    %60 = vector.load %arg13[%c0_29, %c55] : memref<8x768xf32, #tpu.memory_space<vmem>>, vector<8x512xf32>
    %61 = arith.mulf %60, %38 : vector<8x512xf32>
    %62 = arith.truncf %61 : vector<8x512xf32> to vector<8x512xbf16>
    %c0_30 = arith.constant 0 : index
    %c0_31 = arith.constant 0 : index
    %63 = vector.load %arg12[%c0_30, %c0_31] : memref<72x512xbf16, #tpu.memory_space<vmem>>, vector<8x512xbf16>
    tpu.vector_store %arg12[%c0_30, %c0_31], %62 {strides = array<i32>} : memref<72x512xbf16, #tpu.memory_space<vmem>>, vector<8x512xbf16>,
    %c0_32 = arith.constant 0 : index
    %c56 = arith.constant 56 : index
    %64 = vector.load %arg13[%c0_32, %c56] : memref<8x768xf32, #tpu.memory_space<vmem>>, vector<8x512xf32>
    %65 = arith.mulf %64, %41 : vector<8x512xf32>
    %66 = arith.truncf %65 : vector<8x512xf32> to vector<8x512xbf16>
    %c8_33 = arith.constant 8 : index
    %c0_34 = arith.constant 0 : index
    %67 = vector.load %arg12[%c8_33, %c0_34] : memref<72x512xbf16, #tpu.memory_space<vmem>>, vector<8x512xbf16>
    tpu.vector_store %arg12[%c8_33, %c0_34], %66 {strides = array<i32>} : memref<72x512xbf16, #tpu.memory_space<vmem>>, vector<8x512xbf16>,
    %c0_35 = arith.constant 0 : index
    %c57 = arith.constant 57 : index
    %68 = vector.load %arg13[%c0_35, %c57] : memref<8x768xf32, #tpu.memory_space<vmem>>, vector<8x512xf32>
    %69 = arith.mulf %68, %44 : vector<8x512xf32>
    %70 = arith.truncf %69 : vector<8x512xf32> to vector<8x512xbf16>
    %c16 = arith.constant 16 : index
    %c0_36 = arith.constant 0 : index
    %71 = vector.load %arg12[%c16, %c0_36] : memref<72x512xbf16, #tpu.memory_space<vmem>>, vector<8x512xbf16>
    tpu.vector_store %arg12[%c16, %c0_36], %70 {strides = array<i32>} : memref<72x512xbf16, #tpu.memory_space<vmem>>, vector<8x512xbf16>,
    %c0_37 = arith.constant 0 : index
    %c63 = arith.constant 63 : index
    %72 = vector.load %arg13[%c0_37, %c63] : memref<8x768xf32, #tpu.memory_space<vmem>>, vector<8x512xf32>
    %73 = arith.mulf %72, %47 : vector<8x512xf32>
    %74 = arith.truncf %73 : vector<8x512xf32> to vector<8x512xbf16>
    %c24 = arith.constant 24 : index
    %c0_38 = arith.constant 0 : index
    %75 = vector.load %arg12[%c24, %c0_38] : memref<72x512xbf16, #tpu.memory_space<vmem>>, vector<8x512xbf16>
    tpu.vector_store %arg12[%c24, %c0_38], %74 {strides = array<i32>} : memref<72x512xbf16, #tpu.memory_space<vmem>>, vector<8x512xbf16>,
    %c0_39 = arith.constant 0 : index
    %c64 = arith.constant 64 : index
    %76 = vector.load %arg13[%c0_39, %c64] : memref<8x768xf32, #tpu.memory_space<vmem>>, vector<8x512xf32>
    %77 = arith.truncf %76 : vector<8x512xf32> to vector<8x512xbf16>
    %c32 = arith.constant 32 : index
    %c0_40 = arith.constant 0 : index
    %78 = vector.load %arg12[%c32, %c0_40] : memref<72x512xbf16, #tpu.memory_space<vmem>>, vector<8x512xbf16>
    tpu.vector_store %arg12[%c32, %c0_40], %77 {strides = array<i32>} : memref<72x512xbf16, #tpu.memory_space<vmem>>, vector<8x512xbf16>,
    %c0_41 = arith.constant 0 : index
    %c65 = arith.constant 65 : index
    %79 = vector.load %arg13[%c0_41, %c65] : memref<8x768xf32, #tpu.memory_space<vmem>>, vector<8x512xf32>
    %80 = arith.mulf %79, %50 : vector<8x512xf32>
    %81 = arith.truncf %80 : vector<8x512xf32> to vector<8x512xbf16>
    %c40 = arith.constant 40 : index
    %c0_42 = arith.constant 0 : index
    %82 = vector.load %arg12[%c40, %c0_42] : memref<72x512xbf16, #tpu.memory_space<vmem>>, vector<8x512xbf16>
    tpu.vector_store %arg12[%c40, %c0_42], %81 {strides = array<i32>} : memref<72x512xbf16, #tpu.memory_space<vmem>>, vector<8x512xbf16>,
    %c0_43 = arith.constant 0 : index
    %c71 = arith.constant 71 : index
    %83 = vector.load %arg13[%c0_43, %c71] : memref<8x768xf32, #tpu.memory_space<vmem>>, vector<8x512xf32>
    %84 = arith.mulf %83, %53 : vector<8x512xf32>
    %85 = arith.truncf %84 : vector<8x512xf32> to vector<8x512xbf16>
    %c48 = arith.constant 48 : index
    %c0_44 = arith.constant 0 : index
    %86 = vector.load %arg12[%c48, %c0_44] : memref<72x512xbf16, #tpu.memory_space<vmem>>, vector<8x512xbf16>
    tpu.vector_store %arg12[%c48, %c0_44], %85 {strides = array<i32>} : memref<72x512xbf16, #tpu.memory_space<vmem>>, vector<8x512xbf16>,
    %c0_45 = arith.constant 0 : index
    %c72 = arith.constant 72 : index
    %87 = vector.load %arg13[%c0_45, %c72] : memref<8x768xf32, #tpu.memory_space<vmem>>, vector<8x512xf32>
    %88 = arith.mulf %87, %56 : vector<8x512xf32>
    %89 = arith.truncf %88 : vector<8x512xf32> to vector<8x512xbf16>
    %c56_46 = arith.constant 56 : index
    %c0_47 = arith.constant 0 : index
    %90 = vector.load %arg12[%c56_46, %c0_47] : memref<72x512xbf16, #tpu.memory_space<vmem>>, vector<8x512xbf16>
    tpu.vector_store %arg12[%c56_46, %c0_47], %89 {strides = array<i32>} : memref<72x512xbf16, #tpu.memory_space<vmem>>, vector<8x512xbf16>,
    %c0_48 = arith.constant 0 : index
    %c73 = arith.constant 73 : index
    %91 = vector.load %arg13[%c0_48, %c73] : memref<8x768xf32, #tpu.memory_space<vmem>>, vector<8x512xf32>
    %92 = arith.mulf %91, %59 : vector<8x512xf32>
    %93 = arith.truncf %92 : vector<8x512xf32> to vector<8x512xbf16>
    %c64_49 = arith.constant 64 : index
    %c0_50 = arith.constant 0 : index
    %94 = vector.load %arg12[%c64_49, %c0_50] : memref<72x512xbf16, #tpu.memory_space<vmem>>, vector<8x512xbf16>
    tpu.vector_store %arg12[%c64_49, %c0_50], %93 {strides = array<i32>} : memref<72x512xbf16, #tpu.memory_space<vmem>>, vector<8x512xbf16>,
    %c0_51 = arith.constant 0 : index
    %c0_52 = arith.constant 0 : index
    %c0_53 = arith.constant 0 : index
    %95 = vector.load %arg5[%c0_51, %c0_52, %c0_53] : memref<3x8x72xbf16, #tpu.memory_space<vmem>>, vector<1x8x72xbf16>
    %96 = vector.shape_cast %95 : vector<1x8x72xbf16> to vector<8x72xbf16>
    %c0_54 = arith.constant 0 : index
    %c0_55 = arith.constant 0 : index
    %97 = vector.load %arg12[%c0_54, %c0_55] : memref<72x512xbf16, #tpu.memory_space<vmem>>, vector<72x512xbf16>
    %cst_56 = arith.constant dense<0.000000e+00> : vector<8x512xf32>
    %98 = tpu.matmul %96, %97, %cst_56 {dimension_numbers = #tpu.dot_dimension_numbers<[1], [0], [0], [1], [0, 0, 1, 1], [], []>} : vector<8x72xbf16>, vector<72x512xbf16>, vector<8x512xf32> -> vector<8x512xf32>
    %c0_57 = arith.constant 0 : index
    %c119 = arith.constant 119 : index
    %99 = vector.load %arg13[%c0_57, %c119] : memref<8x768xf32, #tpu.memory_space<vmem>>, vector<8x512xf32>
    %100 = arith.mulf %99, %38 : vector<8x512xf32>
    %101 = arith.truncf %100 : vector<8x512xf32> to vector<8x512xbf16>
    %c0_58 = arith.constant 0 : index
    %c0_59 = arith.constant 0 : index
    %102 = vector.load %arg12[%c0_58, %c0_59] : memref<72x512xbf16, #tpu.memory_space<vmem>>, vector<8x512xbf16>
    tpu.vector_store %arg12[%c0_58, %c0_59], %101 {strides = array<i32>} : memref<72x512xbf16, #tpu.memory_space<vmem>>, vector<8x512xbf16>,
    %c0_60 = arith.constant 0 : index
    %c120 = arith.constant 120 : index
    %103 = vector.load %arg13[%c0_60, %c120] : memref<8x768xf32, #tpu.memory_space<vmem>>, vector<8x512xf32>
    %104 = arith.mulf %103, %41 : vector<8x512xf32>
    %105 = arith.truncf %104 : vector<8x512xf32> to vector<8x512xbf16>
    %c8_61 = arith.constant 8 : index
    %c0_62 = arith.constant 0 : index
    %106 = vector.load %arg12[%c8_61, %c0_62] : memref<72x512xbf16, #tpu.memory_space<vmem>>, vector<8x512xbf16>
    tpu.vector_store %arg12[%c8_61, %c0_62], %105 {strides = array<i32>} : memref<72x512xbf16, #tpu.memory_space<vmem>>, vector<8x512xbf16>,
    %c0_63 = arith.constant 0 : index
    %c121 = arith.constant 121 : index
    %107 = vector.load %arg13[%c0_63, %c121] : memref<8x768xf32, #tpu.memory_space<vmem>>, vector<8x512xf32>
    %108 = arith.mulf %107, %44 : vector<8x512xf32>
    %109 = arith.truncf %108 : vector<8x512xf32> to vector<8x512xbf16>
    %c16_64 = arith.constant 16 : index
    %c0_65 = arith.constant 0 : index
    %110 = vector.load %arg12[%c16_64, %c0_65] : memref<72x512xbf16, #tpu.memory_space<vmem>>, vector<8x512xbf16>
    tpu.vector_store %arg12[%c16_64, %c0_65], %109 {strides = array<i32>} : memref<72x512xbf16, #tpu.memory_space<vmem>>, vector<8x512xbf16>,
    %c0_66 = arith.constant 0 : index
    %c127 = arith.constant 127 : index
    %111 = vector.load %arg13[%c0_66, %c127] : memref<8x768xf32, #tpu.memory_space<vmem>>, vector<8x512xf32>
    %112 = arith.mulf %111, %47 : vector<8x512xf32>
    %113 = arith.truncf %112 : vector<8x512xf32> to vector<8x512xbf16>
    %c24_67 = arith.constant 24 : index
    %c0_68 = arith.constant 0 : index
    %114 = vector.load %arg12[%c24_67, %c0_68] : memref<72x512xbf16, #tpu.memory_space<vmem>>, vector<8x512xbf16>
    tpu.vector_store %arg12[%c24_67, %c0_68], %113 {strides = array<i32>} : memref<72x512xbf16, #tpu.memory_space<vmem>>, vector<8x512xbf16>,
    %c0_69 = arith.constant 0 : index
    %c128_70 = arith.constant 128 : index
    %115 = vector.load %arg13[%c0_69, %c128_70] : memref<8x768xf32, #tpu.memory_space<vmem>>, vector<8x512xf32>
    %116 = arith.truncf %115 : vector<8x512xf32> to vector<8x512xbf16>
    %c32_71 = arith.constant 32 : index
    %c0_72 = arith.constant 0 : index
    %117 = vector.load %arg12[%c32_71, %c0_72] : memref<72x512xbf16, #tpu.memory_space<vmem>>, vector<8x512xbf16>
    tpu.vector_store %arg12[%c32_71, %c0_72], %116 {strides = array<i32>} : memref<72x512xbf16, #tpu.memory_space<vmem>>, vector<8x512xbf16>,
    %c0_73 = arith.constant 0 : index
    %c129 = arith.constant 129 : index
    %118 = vector.load %arg13[%c0_73, %c129] : memref<8x768xf32, #tpu.memory_space<vmem>>, vector<8x512xf32>
    %119 = arith.mulf %118, %50 : vector<8x512xf32>
    %120 = arith.truncf %119 : vector<8x512xf32> to vector<8x512xbf16>
    %c40_74 = arith.constant 40 : index
    %c0_75 = arith.constant 0 : index
    %121 = vector.load %arg12[%c40_74, %c0_75] : memref<72x512xbf16, #tpu.memory_space<vmem>>, vector<8x512xbf16>
    tpu.vector_store %arg12[%c40_74, %c0_75], %120 {strides = array<i32>} : memref<72x512xbf16, #tpu.memory_space<vmem>>, vector<8x512xbf16>,
    %c0_76 = arith.constant 0 : index
    %c135 = arith.constant 135 : index
    %122 = vector.load %arg13[%c0_76, %c135] : memref<8x768xf32, #tpu.memory_space<vmem>>, vector<8x512xf32>
    %123 = arith.mulf %122, %53 : vector<8x512xf32>
    %124 = arith.truncf %123 : vector<8x512xf32> to vector<8x512xbf16>
    %c48_77 = arith.constant 48 : index
    %c0_78 = arith.constant 0 : index
    %125 = vector.load %arg12[%c48_77, %c0_78] : memref<72x512xbf16, #tpu.memory_space<vmem>>, vector<8x512xbf16>
    tpu.vector_store %arg12[%c48_77, %c0_78], %124 {strides = array<i32>} : memref<72x512xbf16, #tpu.memory_space<vmem>>, vector<8x512xbf16>,
    %c0_79 = arith.constant 0 : index
    %c136 = arith.constant 136 : index
    %126 = vector.load %arg13[%c0_79, %c136] : memref<8x768xf32, #tpu.memory_space<vmem>>, vector<8x512xf32>
    %127 = arith.mulf %126, %56 : vector<8x512xf32>
    %128 = arith.truncf %127 : vector<8x512xf32> to vector<8x512xbf16>
    %c56_80 = arith.constant 56 : index
    %c0_81 = arith.constant 0 : index
    %129 = vector.load %arg12[%c56_80, %c0_81] : memref<72x512xbf16, #tpu.memory_space<vmem>>, vector<8x512xbf16>
    tpu.vector_store %arg12[%c56_80, %c0_81], %128 {strides = array<i32>} : memref<72x512xbf16, #tpu.memory_space<vmem>>, vector<8x512xbf16>,
    %c0_82 = arith.constant 0 : index
    %c137 = arith.constant 137 : index
    %130 = vector.load %arg13[%c0_82, %c137] : memref<8x768xf32, #tpu.memory_space<vmem>>, vector<8x512xf32>
    %131 = arith.mulf %130, %59 : vector<8x512xf32>
    %132 = arith.truncf %131 : vector<8x512xf32> to vector<8x512xbf16>
    %c64_83 = arith.constant 64 : index
    %c0_84 = arith.constant 0 : index
    %133 = vector.load %arg12[%c64_83, %c0_84] : memref<72x512xbf16, #tpu.memory_space<vmem>>, vector<8x512xbf16>
    tpu.vector_store %arg12[%c64_83, %c0_84], %132 {strides = array<i32>} : memref<72x512xbf16, #tpu.memory_space<vmem>>, vector<8x512xbf16>,
    %c1_85 = arith.constant 1 : index
    %c0_86 = arith.constant 0 : index
    %c0_87 = arith.constant 0 : index
    %134 = vector.load %arg5[%c1_85, %c0_86, %c0_87] : memref<3x8x72xbf16, #tpu.memory_space<vmem>>, vector<1x8x72xbf16>
    %135 = vector.shape_cast %134 : vector<1x8x72xbf16> to vector<8x72xbf16>
    %c0_88 = arith.constant 0 : index
    %c0_89 = arith.constant 0 : index
    %136 = vector.load %arg12[%c0_88, %c0_89] : memref<72x512xbf16, #tpu.memory_space<vmem>>, vector<72x512xbf16>
    %cst_90 = arith.constant dense<0.000000e+00> : vector<8x512xf32>
    %137 = tpu.matmul %135, %136, %cst_90 {dimension_numbers = #tpu.dot_dimension_numbers<[1], [0], [0], [1], [0, 0, 1, 1], [], []>} : vector<8x72xbf16>, vector<72x512xbf16>, vector<8x512xf32> -> vector<8x512xf32>
    %138 = arith.addf %98, %137 : vector<8x512xf32>
    %c0_91 = arith.constant 0 : index
    %c183 = arith.constant 183 : index
    %139 = vector.load %arg13[%c0_91, %c183] : memref<8x768xf32, #tpu.memory_space<vmem>>, vector<8x512xf32>
    %140 = arith.mulf %139, %38 : vector<8x512xf32>
    %141 = arith.truncf %140 : vector<8x512xf32> to vector<8x512xbf16>
    %c0_92 = arith.constant 0 : index
    %c0_93 = arith.constant 0 : index
    %142 = vector.load %arg12[%c0_92, %c0_93] : memref<72x512xbf16, #tpu.memory_space<vmem>>, vector<8x512xbf16>
    tpu.vector_store %arg12[%c0_92, %c0_93], %141 {strides = array<i32>} : memref<72x512xbf16, #tpu.memory_space<vmem>>, vector<8x512xbf16>,
    %c0_94 = arith.constant 0 : index
    %c184 = arith.constant 184 : index
    %143 = vector.load %arg13[%c0_94, %c184] : memref<8x768xf32, #tpu.memory_space<vmem>>, vector<8x512xf32>
    %144 = arith.mulf %143, %41 : vector<8x512xf32>
    %145 = arith.truncf %144 : vector<8x512xf32> to vector<8x512xbf16>
    %c8_95 = arith.constant 8 : index
    %c0_96 = arith.constant 0 : index
    %146 = vector.load %arg12[%c8_95, %c0_96] : memref<72x512xbf16, #tpu.memory_space<vmem>>, vector<8x512xbf16>
    tpu.vector_store %arg12[%c8_95, %c0_96], %145 {strides = array<i32>} : memref<72x512xbf16, #tpu.memory_space<vmem>>, vector<8x512xbf16>,
    %c0_97 = arith.constant 0 : index
    %c185 = arith.constant 185 : index
    %147 = vector.load %arg13[%c0_97, %c185] : memref<8x768xf32, #tpu.memory_space<vmem>>, vector<8x512xf32>
    %148 = arith.mulf %147, %44 : vector<8x512xf32>
    %149 = arith.truncf %148 : vector<8x512xf32> to vector<8x512xbf16>
    %c16_98 = arith.constant 16 : index
    %c0_99 = arith.constant 0 : index
    %150 = vector.load %arg12[%c16_98, %c0_99] : memref<72x512xbf16, #tpu.memory_space<vmem>>, vector<8x512xbf16>
    tpu.vector_store %arg12[%c16_98, %c0_99], %149 {strides = array<i32>} : memref<72x512xbf16, #tpu.memory_space<vmem>>, vector<8x512xbf16>,
    %c0_100 = arith.constant 0 : index
    %c191 = arith.constant 191 : index
    %151 = vector.load %arg13[%c0_100, %c191] : memref<8x768xf32, #tpu.memory_space<vmem>>, vector<8x512xf32>
    %152 = arith.mulf %151, %47 : vector<8x512xf32>
    %153 = arith.truncf %152 : vector<8x512xf32> to vector<8x512xbf16>
    %c24_101 = arith.constant 24 : index
    %c0_102 = arith.constant 0 : index
    %154 = vector.load %arg12[%c24_101, %c0_102] : memref<72x512xbf16, #tpu.memory_space<vmem>>, vector<8x512xbf16>
    tpu.vector_store %arg12[%c24_101, %c0_102], %153 {strides = array<i32>} : memref<72x512xbf16, #tpu.memory_space<vmem>>, vector<8x512xbf16>,
    %c0_103 = arith.constant 0 : index
    %c192 = arith.constant 192 : index
    %155 = vector.load %arg13[%c0_103, %c192] : memref<8x768xf32, #tpu.memory_space<vmem>>, vector<8x512xf32>
    %156 = arith.truncf %155 : vector<8x512xf32> to vector<8x512xbf16>
    %c32_104 = arith.constant 32 : index
    %c0_105 = arith.constant 0 : index
    %157 = vector.load %arg12[%c32_104, %c0_105] : memref<72x512xbf16, #tpu.memory_space<vmem>>, vector<8x512xbf16>
    tpu.vector_store %arg12[%c32_104, %c0_105], %156 {strides = array<i32>} : memref<72x512xbf16, #tpu.memory_space<vmem>>, vector<8x512xbf16>,
    %c0_106 = arith.constant 0 : index
    %c193 = arith.constant 193 : index
    %158 = vector.load %arg13[%c0_106, %c193] : memref<8x768xf32, #tpu.memory_space<vmem>>, vector<8x512xf32>
    %159 = arith.mulf %158, %50 : vector<8x512xf32>
    %160 = arith.truncf %159 : vector<8x512xf32> to vector<8x512xbf16>
    %c40_107 = arith.constant 40 : index
    %c0_108 = arith.constant 0 : index
    %161 = vector.load %arg12[%c40_107, %c0_108] : memref<72x512xbf16, #tpu.memory_space<vmem>>, vector<8x512xbf16>
    tpu.vector_store %arg12[%c40_107, %c0_108], %160 {strides = array<i32>} : memref<72x512xbf16, #tpu.memory_space<vmem>>, vector<8x512xbf16>,
    %c0_109 = arith.constant 0 : index
    %c199 = arith.constant 199 : index
    %162 = vector.load %arg13[%c0_109, %c199] : memref<8x768xf32, #tpu.memory_space<vmem>>, vector<8x512xf32>
    %163 = arith.mulf %162, %53 : vector<8x512xf32>
    %164 = arith.truncf %163 : vector<8x512xf32> to vector<8x512xbf16>
    %c48_110 = arith.constant 48 : index
    %c0_111 = arith.constant 0 : index
    %165 = vector.load %arg12[%c48_110, %c0_111] : memref<72x512xbf16, #tpu.memory_space<vmem>>, vector<8x512xbf16>
    tpu.vector_store %arg12[%c48_110, %c0_111], %164 {strides = array<i32>} : memref<72x512xbf16, #tpu.memory_space<vmem>>, vector<8x512xbf16>,
    %c0_112 = arith.constant 0 : index
    %c200 = arith.constant 200 : index
    %166 = vector.load %arg13[%c0_112, %c200] : memref<8x768xf32, #tpu.memory_space<vmem>>, vector<8x512xf32>
    %167 = arith.mulf %166, %56 : vector<8x512xf32>
    %168 = arith.truncf %167 : vector<8x512xf32> to vector<8x512xbf16>
    %c56_113 = arith.constant 56 : index
    %c0_114 = arith.constant 0 : index
    %169 = vector.load %arg12[%c56_113, %c0_114] : memref<72x512xbf16, #tpu.memory_space<vmem>>, vector<8x512xbf16>
    tpu.vector_store %arg12[%c56_113, %c0_114], %168 {strides = array<i32>} : memref<72x512xbf16, #tpu.memory_space<vmem>>, vector<8x512xbf16>,
    %c0_115 = arith.constant 0 : index
    %c201 = arith.constant 201 : index
    %170 = vector.load %arg13[%c0_115, %c201] : memref<8x768xf32, #tpu.memory_space<vmem>>, vector<8x512xf32>
    %171 = arith.mulf %170, %59 : vector<8x512xf32>
    %172 = arith.truncf %171 : vector<8x512xf32> to vector<8x512xbf16>
    %c64_116 = arith.constant 64 : index
    %c0_117 = arith.constant 0 : index
    %173 = vector.load %arg12[%c64_116, %c0_117] : memref<72x512xbf16, #tpu.memory_space<vmem>>, vector<8x512xbf16>
    tpu.vector_store %arg12[%c64_116, %c0_117], %172 {strides = array<i32>} : memref<72x512xbf16, #tpu.memory_space<vmem>>, vector<8x512xbf16>,
    %c2_118 = arith.constant 2 : index
    %c0_119 = arith.constant 0 : index
    %c0_120 = arith.constant 0 : index
    %174 = vector.load %arg5[%c2_118, %c0_119, %c0_120] : memref<3x8x72xbf16, #tpu.memory_space<vmem>>, vector<1x8x72xbf16>
    %175 = vector.shape_cast %174 : vector<1x8x72xbf16> to vector<8x72xbf16>
    %c0_121 = arith.constant 0 : index
    %c0_122 = arith.constant 0 : index
    %176 = vector.load %arg12[%c0_121, %c0_122] : memref<72x512xbf16, #tpu.memory_space<vmem>>, vector<72x512xbf16>
    %cst_123 = arith.constant dense<0.000000e+00> : vector<8x512xf32>
    %177 = tpu.matmul %175, %176, %cst_123 {dimension_numbers = #tpu.dot_dimension_numbers<[1], [0], [0], [1], [0, 0, 1, 1], [], []>} : vector<8x72xbf16>, vector<72x512xbf16>, vector<8x512xf32> -> vector<8x512xf32>
    %178 = arith.addf %138, %177 : vector<8x512xf32>
    %179 = vector.broadcast %34 : vector<8x1xf32> to vector<8x512xf32>
    %180 = arith.addf %178, %179 : vector<8x512xf32>
    %c0_124 = arith.constant 0 : index
    %c0_125 = arith.constant 0 : index
    %181 = vector.load %arg7[%c0_124, %c0_125] : memref<8x1xf32, #tpu.memory_space<vmem>>, vector<8x1xf32>
    %c0_126 = arith.constant 0 : index
    %c0_127 = arith.constant 0 : index
    %182 = vector.load %arg8[%c0_126, %c0_127] : memref<8x1xf32, #tpu.memory_space<vmem>>, vector<8x1xf32>
    %cst_128 = arith.constant dense<0.000000e+00> : vector<8xf32>
    %183 = vector.multi_reduction <add>, %180, %cst_128 [1] : vector<8x512xf32> to vector<8xf32>
    %184 = vector.shape_cast %183 : vector<8xf32> to vector<8x1xf32>
    %185 = arith.mulf %180, %180 : vector<8x512xf32>
    %cst_129 = arith.constant dense<0.000000e+00> : vector<8xf32>
    %186 = vector.multi_reduction <add>, %185, %cst_129 [1] : vector<8x512xf32> to vector<8xf32>
    %187 = vector.shape_cast %186 : vector<8xf32> to vector<8x1xf32>
    %cst_130 = arith.constant dense<0.000000e+00> : vector<8xf32>
    %188 = vector.multi_reduction <add>, %184, %cst_130 [1] : vector<8x1xf32> to vector<8xf32>
    %189 = vector.shape_cast %188 : vector<8xf32> to vector<8x1xf32>
    %cst_131 = arith.constant dense<0.000000e+00> : vector<8xf32>
    %190 = vector.multi_reduction <add>, %187, %cst_131 [1] : vector<8x1xf32> to vector<8xf32>
    %191 = vector.shape_cast %190 : vector<8xf32> to vector<8x1xf32>
    %cst_132 = arith.constant 0.001953125 : f32
    %192 = vector.broadcast %cst_132 : f32 to vector<8x1xf32>
    %193 = arith.mulf %189, %192 : vector<8x1xf32>
    %cst_133 = arith.constant 0.001953125 : f32
    %194 = vector.broadcast %cst_133 : f32 to vector<8x1xf32>
    %195 = arith.mulf %191, %194 : vector<8x1xf32>
    %196 = arith.mulf %193, %193 : vector<8x1xf32>
    %197 = arith.subf %195, %196 : vector<8x1xf32>
    %cst_134 = arith.constant 9.99999974E-6 : f32
    %198 = vector.broadcast %cst_134 : f32 to vector<8x1xf32>
    %199 = arith.addf %197, %198 : vector<8x1xf32>
    %200 = math.rsqrt %199 : vector<8x1xf32>
    %201 = arith.mulf %200, %181 : vector<8x1xf32>
    %202 = arith.mulf %193, %201 : vector<8x1xf32>
    %203 = arith.subf %182, %202 : vector<8x1xf32>
    %204 = vector.broadcast %201 : vector<8x1xf32> to vector<8x512xf32>
    %205 = arith.mulf %180, %204 : vector<8x512xf32>
    %206 = vector.broadcast %203 : vector<8x1xf32> to vector<8x512xf32>
    %207 = arith.addf %205, %206 : vector<8x512xf32>
    %cst_135 = arith.constant 0.000000e+00 : f32
    %208 = vector.broadcast %cst_135 : f32 to vector<8x512xf32>
    %209 = arith.maximumf %207, %208 : vector<8x512xf32>
    %c0_136 = arith.constant 0 : index
    %c0_137 = arith.constant 0 : index
    %210 = vector.load %arg10[%c0_136, %c0_137] : memref<8x1xf32, #tpu.memory_space<vmem>>, vector<8x1xf32>
    %c0_138 = arith.constant 0 : index
    %c128_139 = arith.constant 128 : index
    %211 = vector.load %arg13[%c0_138, %c128_139] : memref<8x768xf32, #tpu.memory_space<vmem>>, vector<8x512xf32>
    tpu.vector_store %arg13[%c0_138, %c128_139], %209 {strides = array<i32>} : memref<8x768xf32, #tpu.memory_space<vmem>>, vector<8x512xf32>,
    %c0_140 = arith.constant 0 : index
    %c0_141 = arith.constant 0 : index
    %212 = vector.load %arg2[%c0_140, %c0_141] : memref<9x512xf32, #tpu.memory_space<vmem>>, vector<1x512xf32>
    %213 = vector.shape_cast %212 : vector<1x512xf32> to vector<1x512xf32>
    %214 = vector.broadcast %213 : vector<1x512xf32> to vector<8x512xf32>
    %c1_142 = arith.constant 1 : index
    %c0_143 = arith.constant 0 : index
    %215 = vector.load %arg2[%c1_142, %c0_143] : memref<9x512xf32, #tpu.memory_space<vmem>>, vector<1x512xf32>
    %216 = vector.shape_cast %215 : vector<1x512xf32> to vector<1x512xf32>
    %217 = vector.broadcast %216 : vector<1x512xf32> to vector<8x512xf32>
    %c2_144 = arith.constant 2 : index
    %c0_145 = arith.constant 0 : index
    %218 = vector.load %arg2[%c2_144, %c0_145] : memref<9x512xf32, #tpu.memory_space<vmem>>, vector<1x512xf32>
    %219 = vector.shape_cast %218 : vector<1x512xf32> to vector<1x512xf32>
    %220 = vector.broadcast %219 : vector<1x512xf32> to vector<8x512xf32>
    %c3_146 = arith.constant 3 : index
    %c0_147 = arith.constant 0 : index
    %221 = vector.load %arg2[%c3_146, %c0_147] : memref<9x512xf32, #tpu.memory_space<vmem>>, vector<1x512xf32>
    %222 = vector.shape_cast %221 : vector<1x512xf32> to vector<1x512xf32>
    %223 = vector.broadcast %222 : vector<1x512xf32> to vector<8x512xf32>
    %c5_148 = arith.constant 5 : index
    %c0_149 = arith.constant 0 : index
    %224 = vector.load %arg2[%c5_148, %c0_149] : memref<9x512xf32, #tpu.memory_space<vmem>>, vector<1x512xf32>
    %225 = vector.shape_cast %224 : vector<1x512xf32> to vector<1x512xf32>
    %226 = vector.broadcast %225 : vector<1x512xf32> to vector<8x512xf32>
    %c6_150 = arith.constant 6 : index
    %c0_151 = arith.constant 0 : index
    %227 = vector.load %arg2[%c6_150, %c0_151] : memref<9x512xf32, #tpu.memory_space<vmem>>, vector<1x512xf32>
    %228 = vector.shape_cast %227 : vector<1x512xf32> to vector<1x512xf32>
    %229 = vector.broadcast %228 : vector<1x512xf32> to vector<8x512xf32>
    %c7_152 = arith.constant 7 : index
    %c0_153 = arith.constant 0 : index
    %230 = vector.load %arg2[%c7_152, %c0_153] : memref<9x512xf32, #tpu.memory_space<vmem>>, vector<1x512xf32>
    %231 = vector.shape_cast %230 : vector<1x512xf32> to vector<1x512xf32>
    %232 = vector.broadcast %231 : vector<1x512xf32> to vector<8x512xf32>
    %c8_154 = arith.constant 8 : index
    %c0_155 = arith.constant 0 : index
    %233 = vector.load %arg2[%c8_154, %c0_155] : memref<9x512xf32, #tpu.memory_space<vmem>>, vector<1x512xf32>
    %234 = vector.shape_cast %233 : vector<1x512xf32> to vector<1x512xf32>
    %235 = vector.broadcast %234 : vector<1x512xf32> to vector<8x512xf32>
    %c0_156 = arith.constant 0 : index
    %c55_157 = arith.constant 55 : index
    %236 = vector.load %arg13[%c0_156, %c55_157] : memref<8x768xf32, #tpu.memory_space<vmem>>, vector<8x512xf32>
    %237 = arith.mulf %236, %214 : vector<8x512xf32>
    %238 = arith.truncf %237 : vector<8x512xf32> to vector<8x512xbf16>
    %c0_158 = arith.constant 0 : index
    %c0_159 = arith.constant 0 : index
    %239 = vector.load %arg12[%c0_158, %c0_159] : memref<72x512xbf16, #tpu.memory_space<vmem>>, vector<8x512xbf16>
    tpu.vector_store %arg12[%c0_158, %c0_159], %238 {strides = array<i32>} : memref<72x512xbf16, #tpu.memory_space<vmem>>, vector<8x512xbf16>,
    %c0_160 = arith.constant 0 : index
    %c56_161 = arith.constant 56 : index
    %240 = vector.load %arg13[%c0_160, %c56_161] : memref<8x768xf32, #tpu.memory_space<vmem>>, vector<8x512xf32>
    %241 = arith.mulf %240, %217 : vector<8x512xf32>
    %242 = arith.truncf %241 : vector<8x512xf32> to vector<8x512xbf16>
    %c8_162 = arith.constant 8 : index
    %c0_163 = arith.constant 0 : index
    %243 = vector.load %arg12[%c8_162, %c0_163] : memref<72x512xbf16, #tpu.memory_space<vmem>>, vector<8x512xbf16>
    tpu.vector_store %arg12[%c8_162, %c0_163], %242 {strides = array<i32>} : memref<72x512xbf16, #tpu.memory_space<vmem>>, vector<8x512xbf16>,
    %c0_164 = arith.constant 0 : index
    %c57_165 = arith.constant 57 : index
    %244 = vector.load %arg13[%c0_164, %c57_165] : memref<8x768xf32, #tpu.memory_space<vmem>>, vector<8x512xf32>
    %245 = arith.mulf %244, %220 : vector<8x512xf32>
    %246 = arith.truncf %245 : vector<8x512xf32> to vector<8x512xbf16>
    %c16_166 = arith.constant 16 : index
    %c0_167 = arith.constant 0 : index
    %247 = vector.load %arg12[%c16_166, %c0_167] : memref<72x512xbf16, #tpu.memory_space<vmem>>, vector<8x512xbf16>
    tpu.vector_store %arg12[%c16_166, %c0_167], %246 {strides = array<i32>} : memref<72x512xbf16, #tpu.memory_space<vmem>>, vector<8x512xbf16>,
    %c0_168 = arith.constant 0 : index
    %c63_169 = arith.constant 63 : index
    %248 = vector.load %arg13[%c0_168, %c63_169] : memref<8x768xf32, #tpu.memory_space<vmem>>, vector<8x512xf32>
    %249 = arith.mulf %248, %223 : vector<8x512xf32>
    %250 = arith.truncf %249 : vector<8x512xf32> to vector<8x512xbf16>
    %c24_170 = arith.constant 24 : index
    %c0_171 = arith.constant 0 : index
    %251 = vector.load %arg12[%c24_170, %c0_171] : memref<72x512xbf16, #tpu.memory_space<vmem>>, vector<8x512xbf16>
    tpu.vector_store %arg12[%c24_170, %c0_171], %250 {strides = array<i32>} : memref<72x512xbf16, #tpu.memory_space<vmem>>, vector<8x512xbf16>,
    %c0_172 = arith.constant 0 : index
    %c64_173 = arith.constant 64 : index
    %252 = vector.load %arg13[%c0_172, %c64_173] : memref<8x768xf32, #tpu.memory_space<vmem>>, vector<8x512xf32>
    %253 = arith.truncf %252 : vector<8x512xf32> to vector<8x512xbf16>
    %c32_174 = arith.constant 32 : index
    %c0_175 = arith.constant 0 : index
    %254 = vector.load %arg12[%c32_174, %c0_175] : memref<72x512xbf16, #tpu.memory_space<vmem>>, vector<8x512xbf16>
    tpu.vector_store %arg12[%c32_174, %c0_175], %253 {strides = array<i32>} : memref<72x512xbf16, #tpu.memory_space<vmem>>, vector<8x512xbf16>,
    %c0_176 = arith.constant 0 : index
    %c65_177 = arith.constant 65 : index
    %255 = vector.load %arg13[%c0_176, %c65_177] : memref<8x768xf32, #tpu.memory_space<vmem>>, vector<8x512xf32>
    %256 = arith.mulf %255, %226 : vector<8x512xf32>
    %257 = arith.truncf %256 : vector<8x512xf32> to vector<8x512xbf16>
    %c40_178 = arith.constant 40 : index
    %c0_179 = arith.constant 0 : index
    %258 = vector.load %arg12[%c40_178, %c0_179] : memref<72x512xbf16, #tpu.memory_space<vmem>>, vector<8x512xbf16>
    tpu.vector_store %arg12[%c40_178, %c0_179], %257 {strides = array<i32>} : memref<72x512xbf16, #tpu.memory_space<vmem>>, vector<8x512xbf16>,
    %c0_180 = arith.constant 0 : index
    %c71_181 = arith.constant 71 : index
    %259 = vector.load %arg13[%c0_180, %c71_181] : memref<8x768xf32, #tpu.memory_space<vmem>>, vector<8x512xf32>
    %260 = arith.mulf %259, %229 : vector<8x512xf32>
    %261 = arith.truncf %260 : vector<8x512xf32> to vector<8x512xbf16>
    %c48_182 = arith.constant 48 : index
    %c0_183 = arith.constant 0 : index
    %262 = vector.load %arg12[%c48_182, %c0_183] : memref<72x512xbf16, #tpu.memory_space<vmem>>, vector<8x512xbf16>
    tpu.vector_store %arg12[%c48_182, %c0_183], %261 {strides = array<i32>} : memref<72x512xbf16, #tpu.memory_space<vmem>>, vector<8x512xbf16>,
    %c0_184 = arith.constant 0 : index
    %c72_185 = arith.constant 72 : index
    %263 = vector.load %arg13[%c0_184, %c72_185] : memref<8x768xf32, #tpu.memory_space<vmem>>, vector<8x512xf32>
    %264 = arith.mulf %263, %232 : vector<8x512xf32>
    %265 = arith.truncf %264 : vector<8x512xf32> to vector<8x512xbf16>
    %c56_186 = arith.constant 56 : index
    %c0_187 = arith.constant 0 : index
    %266 = vector.load %arg12[%c56_186, %c0_187] : memref<72x512xbf16, #tpu.memory_space<vmem>>, vector<8x512xbf16>
    tpu.vector_store %arg12[%c56_186, %c0_187], %265 {strides = array<i32>} : memref<72x512xbf16, #tpu.memory_space<vmem>>, vector<8x512xbf16>,
    %c0_188 = arith.constant 0 : index
    %c73_189 = arith.constant 73 : index
    %267 = vector.load %arg13[%c0_188, %c73_189] : memref<8x768xf32, #tpu.memory_space<vmem>>, vector<8x512xf32>
    %268 = arith.mulf %267, %235 : vector<8x512xf32>
    %269 = arith.truncf %268 : vector<8x512xf32> to vector<8x512xbf16>
    %c64_190 = arith.constant 64 : index
    %c0_191 = arith.constant 0 : index
    %270 = vector.load %arg12[%c64_190, %c0_191] : memref<72x512xbf16, #tpu.memory_space<vmem>>, vector<8x512xbf16>
    tpu.vector_store %arg12[%c64_190, %c0_191], %269 {strides = array<i32>} : memref<72x512xbf16, #tpu.memory_space<vmem>>, vector<8x512xbf16>,
    %c0_192 = arith.constant 0 : index
    %c0_193 = arith.constant 0 : index
    %c0_194 = arith.constant 0 : index
    %271 = vector.load %arg9[%c0_192, %c0_193, %c0_194] : memref<3x8x72xbf16, #tpu.memory_space<vmem>>, vector<1x8x72xbf16>
    %272 = vector.shape_cast %271 : vector<1x8x72xbf16> to vector<8x72xbf16>
    %c0_195 = arith.constant 0 : index
    %c0_196 = arith.constant 0 : index
    %273 = vector.load %arg12[%c0_195, %c0_196] : memref<72x512xbf16, #tpu.memory_space<vmem>>, vector<72x512xbf16>
    %cst_197 = arith.constant dense<0.000000e+00> : vector<8x512xf32>
    %274 = tpu.matmul %272, %273, %cst_197 {dimension_numbers = #tpu.dot_dimension_numbers<[1], [0], [0], [1], [0, 0, 1, 1], [], []>} : vector<8x72xbf16>, vector<72x512xbf16>, vector<8x512xf32> -> vector<8x512xf32>
    %c0_198 = arith.constant 0 : index
    %c119_199 = arith.constant 119 : index
    %275 = vector.load %arg13[%c0_198, %c119_199] : memref<8x768xf32, #tpu.memory_space<vmem>>, vector<8x512xf32>
    %276 = arith.mulf %275, %214 : vector<8x512xf32>
    %277 = arith.truncf %276 : vector<8x512xf32> to vector<8x512xbf16>
    %c0_200 = arith.constant 0 : index
    %c0_201 = arith.constant 0 : index
    %278 = vector.load %arg12[%c0_200, %c0_201] : memref<72x512xbf16, #tpu.memory_space<vmem>>, vector<8x512xbf16>
    tpu.vector_store %arg12[%c0_200, %c0_201], %277 {strides = array<i32>} : memref<72x512xbf16, #tpu.memory_space<vmem>>, vector<8x512xbf16>,
    %c0_202 = arith.constant 0 : index
    %c120_203 = arith.constant 120 : index
    %279 = vector.load %arg13[%c0_202, %c120_203] : memref<8x768xf32, #tpu.memory_space<vmem>>, vector<8x512xf32>
    %280 = arith.mulf %279, %217 : vector<8x512xf32>
    %281 = arith.truncf %280 : vector<8x512xf32> to vector<8x512xbf16>
    %c8_204 = arith.constant 8 : index
    %c0_205 = arith.constant 0 : index
    %282 = vector.load %arg12[%c8_204, %c0_205] : memref<72x512xbf16, #tpu.memory_space<vmem>>, vector<8x512xbf16>
    tpu.vector_store %arg12[%c8_204, %c0_205], %281 {strides = array<i32>} : memref<72x512xbf16, #tpu.memory_space<vmem>>, vector<8x512xbf16>,
    %c0_206 = arith.constant 0 : index
    %c121_207 = arith.constant 121 : index
    %283 = vector.load %arg13[%c0_206, %c121_207] : memref<8x768xf32, #tpu.memory_space<vmem>>, vector<8x512xf32>
    %284 = arith.mulf %283, %220 : vector<8x512xf32>
    %285 = arith.truncf %284 : vector<8x512xf32> to vector<8x512xbf16>
    %c16_208 = arith.constant 16 : index
    %c0_209 = arith.constant 0 : index
    %286 = vector.load %arg12[%c16_208, %c0_209] : memref<72x512xbf16, #tpu.memory_space<vmem>>, vector<8x512xbf16>
    tpu.vector_store %arg12[%c16_208, %c0_209], %285 {strides = array<i32>} : memref<72x512xbf16, #tpu.memory_space<vmem>>, vector<8x512xbf16>,
    %c0_210 = arith.constant 0 : index
    %c127_211 = arith.constant 127 : index
    %287 = vector.load %arg13[%c0_210, %c127_211] : memref<8x768xf32, #tpu.memory_space<vmem>>, vector<8x512xf32>
    %288 = arith.mulf %287, %223 : vector<8x512xf32>
    %289 = arith.truncf %288 : vector<8x512xf32> to vector<8x512xbf16>
    %c24_212 = arith.constant 24 : index
    %c0_213 = arith.constant 0 : index
    %290 = vector.load %arg12[%c24_212, %c0_213] : memref<72x512xbf16, #tpu.memory_space<vmem>>, vector<8x512xbf16>
    tpu.vector_store %arg12[%c24_212, %c0_213], %289 {strides = array<i32>} : memref<72x512xbf16, #tpu.memory_space<vmem>>, vector<8x512xbf16>,
    %c0_214 = arith.constant 0 : index
    %c128_215 = arith.constant 128 : index
    %291 = vector.load %arg13[%c0_214, %c128_215] : memref<8x768xf32, #tpu.memory_space<vmem>>, vector<8x512xf32>
    %292 = arith.truncf %291 : vector<8x512xf32> to vector<8x512xbf16>
    %c32_216 = arith.constant 32 : index
    %c0_217 = arith.constant 0 : index
    %293 = vector.load %arg12[%c32_216, %c0_217] : memref<72x512xbf16, #tpu.memory_space<vmem>>, vector<8x512xbf16>
    tpu.vector_store %arg12[%c32_216, %c0_217], %292 {strides = array<i32>} : memref<72x512xbf16, #tpu.memory_space<vmem>>, vector<8x512xbf16>,
    %c0_218 = arith.constant 0 : index
    %c129_219 = arith.constant 129 : index
    %294 = vector.load %arg13[%c0_218, %c129_219] : memref<8x768xf32, #tpu.memory_space<vmem>>, vector<8x512xf32>
    %295 = arith.mulf %294, %226 : vector<8x512xf32>
    %296 = arith.truncf %295 : vector<8x512xf32> to vector<8x512xbf16>
    %c40_220 = arith.constant 40 : index
    %c0_221 = arith.constant 0 : index
    %297 = vector.load %arg12[%c40_220, %c0_221] : memref<72x512xbf16, #tpu.memory_space<vmem>>, vector<8x512xbf16>
    tpu.vector_store %arg12[%c40_220, %c0_221], %296 {strides = array<i32>} : memref<72x512xbf16, #tpu.memory_space<vmem>>, vector<8x512xbf16>,
    %c0_222 = arith.constant 0 : index
    %c135_223 = arith.constant 135 : index
    %298 = vector.load %arg13[%c0_222, %c135_223] : memref<8x768xf32, #tpu.memory_space<vmem>>, vector<8x512xf32>
    %299 = arith.mulf %298, %229 : vector<8x512xf32>
    %300 = arith.truncf %299 : vector<8x512xf32> to vector<8x512xbf16>
    %c48_224 = arith.constant 48 : index
    %c0_225 = arith.constant 0 : index
    %301 = vector.load %arg12[%c48_224, %c0_225] : memref<72x512xbf16, #tpu.memory_space<vmem>>, vector<8x512xbf16>
    tpu.vector_store %arg12[%c48_224, %c0_225], %300 {strides = array<i32>} : memref<72x512xbf16, #tpu.memory_space<vmem>>, vector<8x512xbf16>,
    %c0_226 = arith.constant 0 : index
    %c136_227 = arith.constant 136 : index
    %302 = vector.load %arg13[%c0_226, %c136_227] : memref<8x768xf32, #tpu.memory_space<vmem>>, vector<8x512xf32>
    %303 = arith.mulf %302, %232 : vector<8x512xf32>
    %304 = arith.truncf %303 : vector<8x512xf32> to vector<8x512xbf16>
    %c56_228 = arith.constant 56 : index
    %c0_229 = arith.constant 0 : index
    %305 = vector.load %arg12[%c56_228, %c0_229] : memref<72x512xbf16, #tpu.memory_space<vmem>>, vector<8x512xbf16>
    tpu.vector_store %arg12[%c56_228, %c0_229], %304 {strides = array<i32>} : memref<72x512xbf16, #tpu.memory_space<vmem>>, vector<8x512xbf16>,
    %c0_230 = arith.constant 0 : index
    %c137_231 = arith.constant 137 : index
    %306 = vector.load %arg13[%c0_230, %c137_231] : memref<8x768xf32, #tpu.memory_space<vmem>>, vector<8x512xf32>
    %307 = arith.mulf %306, %235 : vector<8x512xf32>
    %308 = arith.truncf %307 : vector<8x512xf32> to vector<8x512xbf16>
    %c64_232 = arith.constant 64 : index
    %c0_233 = arith.constant 0 : index
    %309 = vector.load %arg12[%c64_232, %c0_233] : memref<72x512xbf16, #tpu.memory_space<vmem>>, vector<8x512xbf16>
    tpu.vector_store %arg12[%c64_232, %c0_233], %308 {strides = array<i32>} : memref<72x512xbf16, #tpu.memory_space<vmem>>, vector<8x512xbf16>,
    %c1_234 = arith.constant 1 : index
    %c0_235 = arith.constant 0 : index
    %c0_236 = arith.constant 0 : index
    %310 = vector.load %arg9[%c1_234, %c0_235, %c0_236] : memref<3x8x72xbf16, #tpu.memory_space<vmem>>, vector<1x8x72xbf16>
    %311 = vector.shape_cast %310 : vector<1x8x72xbf16> to vector<8x72xbf16>
    %c0_237 = arith.constant 0 : index
    %c0_238 = arith.constant 0 : index
    %312 = vector.load %arg12[%c0_237, %c0_238] : memref<72x512xbf16, #tpu.memory_space<vmem>>, vector<72x512xbf16>
    %cst_239 = arith.constant dense<0.000000e+00> : vector<8x512xf32>
    %313 = tpu.matmul %311, %312, %cst_239 {dimension_numbers = #tpu.dot_dimension_numbers<[1], [0], [0], [1], [0, 0, 1, 1], [], []>} : vector<8x72xbf16>, vector<72x512xbf16>, vector<8x512xf32> -> vector<8x512xf32>
    %314 = arith.addf %274, %313 : vector<8x512xf32>
    %c0_240 = arith.constant 0 : index
    %c183_241 = arith.constant 183 : index
    %315 = vector.load %arg13[%c0_240, %c183_241] : memref<8x768xf32, #tpu.memory_space<vmem>>, vector<8x512xf32>
    %316 = arith.mulf %315, %214 : vector<8x512xf32>
    %317 = arith.truncf %316 : vector<8x512xf32> to vector<8x512xbf16>
    %c0_242 = arith.constant 0 : index
    %c0_243 = arith.constant 0 : index
    %318 = vector.load %arg12[%c0_242, %c0_243] : memref<72x512xbf16, #tpu.memory_space<vmem>>, vector<8x512xbf16>
    tpu.vector_store %arg12[%c0_242, %c0_243], %317 {strides = array<i32>} : memref<72x512xbf16, #tpu.memory_space<vmem>>, vector<8x512xbf16>,
    %c0_244 = arith.constant 0 : index
    %c184_245 = arith.constant 184 : index
    %319 = vector.load %arg13[%c0_244, %c184_245] : memref<8x768xf32, #tpu.memory_space<vmem>>, vector<8x512xf32>
    %320 = arith.mulf %319, %217 : vector<8x512xf32>
    %321 = arith.truncf %320 : vector<8x512xf32> to vector<8x512xbf16>
    %c8_246 = arith.constant 8 : index
    %c0_247 = arith.constant 0 : index
    %322 = vector.load %arg12[%c8_246, %c0_247] : memref<72x512xbf16, #tpu.memory_space<vmem>>, vector<8x512xbf16>
    tpu.vector_store %arg12[%c8_246, %c0_247], %321 {strides = array<i32>} : memref<72x512xbf16, #tpu.memory_space<vmem>>, vector<8x512xbf16>,
    %c0_248 = arith.constant 0 : index
    %c185_249 = arith.constant 185 : index
    %323 = vector.load %arg13[%c0_248, %c185_249] : memref<8x768xf32, #tpu.memory_space<vmem>>, vector<8x512xf32>
    %324 = arith.mulf %323, %220 : vector<8x512xf32>
    %325 = arith.truncf %324 : vector<8x512xf32> to vector<8x512xbf16>
    %c16_250 = arith.constant 16 : index
    %c0_251 = arith.constant 0 : index
    %326 = vector.load %arg12[%c16_250, %c0_251] : memref<72x512xbf16, #tpu.memory_space<vmem>>, vector<8x512xbf16>
    tpu.vector_store %arg12[%c16_250, %c0_251], %325 {strides = array<i32>} : memref<72x512xbf16, #tpu.memory_space<vmem>>, vector<8x512xbf16>,
    %c0_252 = arith.constant 0 : index
    %c191_253 = arith.constant 191 : index
    %327 = vector.load %arg13[%c0_252, %c191_253] : memref<8x768xf32, #tpu.memory_space<vmem>>, vector<8x512xf32>
    %328 = arith.mulf %327, %223 : vector<8x512xf32>
    %329 = arith.truncf %328 : vector<8x512xf32> to vector<8x512xbf16>
    %c24_254 = arith.constant 24 : index
    %c0_255 = arith.constant 0 : index
    %330 = vector.load %arg12[%c24_254, %c0_255] : memref<72x512xbf16, #tpu.memory_space<vmem>>, vector<8x512xbf16>
    tpu.vector_store %arg12[%c24_254, %c0_255], %329 {strides = array<i32>} : memref<72x512xbf16, #tpu.memory_space<vmem>>, vector<8x512xbf16>,
    %c0_256 = arith.constant 0 : index
    %c192_257 = arith.constant 192 : index
    %331 = vector.load %arg13[%c0_256, %c192_257] : memref<8x768xf32, #tpu.memory_space<vmem>>, vector<8x512xf32>
    %332 = arith.truncf %331 : vector<8x512xf32> to vector<8x512xbf16>
    %c32_258 = arith.constant 32 : index
    %c0_259 = arith.constant 0 : index
    %333 = vector.load %arg12[%c32_258, %c0_259] : memref<72x512xbf16, #tpu.memory_space<vmem>>, vector<8x512xbf16>
    tpu.vector_store %arg12[%c32_258, %c0_259], %332 {strides = array<i32>} : memref<72x512xbf16, #tpu.memory_space<vmem>>, vector<8x512xbf16>,
    %c0_260 = arith.constant 0 : index
    %c193_261 = arith.constant 193 : index
    %334 = vector.load %arg13[%c0_260, %c193_261] : memref<8x768xf32, #tpu.memory_space<vmem>>, vector<8x512xf32>
    %335 = arith.mulf %334, %226 : vector<8x512xf32>
    %336 = arith.truncf %335 : vector<8x512xf32> to vector<8x512xbf16>
    %c40_262 = arith.constant 40 : index
    %c0_263 = arith.constant 0 : index
    %337 = vector.load %arg12[%c40_262, %c0_263] : memref<72x512xbf16, #tpu.memory_space<vmem>>, vector<8x512xbf16>
    tpu.vector_store %arg12[%c40_262, %c0_263], %336 {strides = array<i32>} : memref<72x512xbf16, #tpu.memory_space<vmem>>, vector<8x512xbf16>,
    %c0_264 = arith.constant 0 : index
    %c199_265 = arith.constant 199 : index
    %338 = vector.load %arg13[%c0_264, %c199_265] : memref<8x768xf32, #tpu.memory_space<vmem>>, vector<8x512xf32>
    %339 = arith.mulf %338, %229 : vector<8x512xf32>
    %340 = arith.truncf %339 : vector<8x512xf32> to vector<8x512xbf16>
    %c48_266 = arith.constant 48 : index
    %c0_267 = arith.constant 0 : index
    %341 = vector.load %arg12[%c48_266, %c0_267] : memref<72x512xbf16, #tpu.memory_space<vmem>>, vector<8x512xbf16>
    tpu.vector_store %arg12[%c48_266, %c0_267], %340 {strides = array<i32>} : memref<72x512xbf16, #tpu.memory_space<vmem>>, vector<8x512xbf16>,
    %c0_268 = arith.constant 0 : index
    %c200_269 = arith.constant 200 : index
    %342 = vector.load %arg13[%c0_268, %c200_269] : memref<8x768xf32, #tpu.memory_space<vmem>>, vector<8x512xf32>
    %343 = arith.mulf %342, %232 : vector<8x512xf32>
    %344 = arith.truncf %343 : vector<8x512xf32> to vector<8x512xbf16>
    %c56_270 = arith.constant 56 : index
    %c0_271 = arith.constant 0 : index
    %345 = vector.load %arg12[%c56_270, %c0_271] : memref<72x512xbf16, #tpu.memory_space<vmem>>, vector<8x512xbf16>
    tpu.vector_store %arg12[%c56_270, %c0_271], %344 {strides = array<i32>} : memref<72x512xbf16, #tpu.memory_space<vmem>>, vector<8x512xbf16>,
    %c0_272 = arith.constant 0 : index
    %c201_273 = arith.constant 201 : index
    %346 = vector.load %arg13[%c0_272, %c201_273] : memref<8x768xf32, #tpu.memory_space<vmem>>, vector<8x512xf32>
    %347 = arith.mulf %346, %235 : vector<8x512xf32>
    %348 = arith.truncf %347 : vector<8x512xf32> to vector<8x512xbf16>
    %c64_274 = arith.constant 64 : index
    %c0_275 = arith.constant 0 : index
    %349 = vector.load %arg12[%c64_274, %c0_275] : memref<72x512xbf16, #tpu.memory_space<vmem>>, vector<8x512xbf16>
    tpu.vector_store %arg12[%c64_274, %c0_275], %348 {strides = array<i32>} : memref<72x512xbf16, #tpu.memory_space<vmem>>, vector<8x512xbf16>,
    %c2_276 = arith.constant 2 : index
    %c0_277 = arith.constant 0 : index
    %c0_278 = arith.constant 0 : index
    %350 = vector.load %arg9[%c2_276, %c0_277, %c0_278] : memref<3x8x72xbf16, #tpu.memory_space<vmem>>, vector<1x8x72xbf16>
    %351 = vector.shape_cast %350 : vector<1x8x72xbf16> to vector<8x72xbf16>
    %c0_279 = arith.constant 0 : index
    %c0_280 = arith.constant 0 : index
    %352 = vector.load %arg12[%c0_279, %c0_280] : memref<72x512xbf16, #tpu.memory_space<vmem>>, vector<72x512xbf16>
    %cst_281 = arith.constant dense<0.000000e+00> : vector<8x512xf32>
    %353 = tpu.matmul %351, %352, %cst_281 {dimension_numbers = #tpu.dot_dimension_numbers<[1], [0], [0], [1], [0, 0, 1, 1], [], []>} : vector<8x72xbf16>, vector<72x512xbf16>, vector<8x512xf32> -> vector<8x512xf32>
    %354 = arith.addf %314, %353 : vector<8x512xf32>
    %355 = vector.broadcast %210 : vector<8x1xf32> to vector<8x512xf32>
    %356 = arith.addf %354, %355 : vector<8x512xf32>
    %357 = arith.addf %1, %356 : vector<8x512xf32>
    %358 = vector.shape_cast %357 : vector<8x512xf32> to vector<1x8x512xf32>
    %c0_282 = arith.constant 0 : index
    %c0_283 = arith.constant 0 : index
    %c0_284 = arith.constant 0 : index
    %359 = vector.load %arg11[%c0_282, %c0_283, %c0_284] : memref<1x8x512xf32, #tpu.memory_space<vmem>>, vector<1x8x512xf32>
    tpu.vector_store %arg11[%c0_282, %c0_283, %c0_284], %358 {strides = array<i32>} : memref<1x8x512xf32, #tpu.memory_space<vmem>>, vector<1x8x512xf32>,
    return
  }
  func.func @transform_0(%arg0: i32) -> (i32, i32, i32) {
    %c0_i32 = arith.constant 0 : i32
    %c0_i32_0 = arith.constant 0 : i32
    %c0_i32_1 = arith.constant 0 : i32
    return %arg0, %c0_i32, %c0_i32_0 : i32, i32, i32
  }
  func.func @transform_1(%arg0: i32) -> (i32, i32) {
    %c0_i32 = arith.constant 0 : i32
    %c0_i32_0 = arith.constant 0 : i32
    %c0_i32_1 = arith.constant 0 : i32
    return %c0_i32, %c0_i32_0 : i32, i32
  }
  func.func @transform_2(%arg0: i32) -> (i32, i32) {
    %c0_i32 = arith.constant 0 : i32
    %c0_i32_0 = arith.constant 0 : i32
    %c0_i32_1 = arith.constant 0 : i32
    return %c0_i32, %c0_i32_0 : i32, i32
  }
  func.func @transform_3(%arg0: i32) -> (i32, i32) {
    %c0_i32 = arith.constant 0 : i32
    %c0_i32_0 = arith.constant 0 : i32
    %c0_i32_1 = arith.constant 0 : i32
    return %c0_i32, %c0_i32_0 : i32, i32
  }
  func.func @transform_4(%arg0: i32) -> (i32, i32, i32) {
    %c0_i32 = arith.constant 0 : i32
    %c0_i32_0 = arith.constant 0 : i32
    %c0_i32_1 = arith.constant 0 : i32
    %c0_i32_2 = arith.constant 0 : i32
    return %c0_i32, %c0_i32_0, %c0_i32_1 : i32, i32, i32
  }
  func.func @transform_5(%arg0: i32) -> (i32, i32) {
    %c0_i32 = arith.constant 0 : i32
    %c0_i32_0 = arith.constant 0 : i32
    %c0_i32_1 = arith.constant 0 : i32
    return %c0_i32, %c0_i32_0 : i32, i32
  }
  func.func @transform_6(%arg0: i32) -> (i32, i32) {
    %c0_i32 = arith.constant 0 : i32
    %c0_i32_0 = arith.constant 0 : i32
    %c0_i32_1 = arith.constant 0 : i32
    return %c0_i32, %c0_i32_0 : i32, i32
  }
  func.func @transform_7(%arg0: i32) -> (i32, i32) {
    %c0_i32 = arith.constant 0 : i32
    %c0_i32_0 = arith.constant 0 : i32
    %c0_i32_1 = arith.constant 0 : i32
    return %c0_i32, %c0_i32_0 : i32, i32
  }
  func.func @transform_8(%arg0: i32) -> (i32, i32, i32) {
    %c0_i32 = arith.constant 0 : i32
    %c0_i32_0 = arith.constant 0 : i32
    %c0_i32_1 = arith.constant 0 : i32
    %c0_i32_2 = arith.constant 0 : i32
    return %c0_i32, %c0_i32_0, %c0_i32_1 : i32, i32, i32
  }
  func.func @transform_9(%arg0: i32) -> (i32, i32) {
    %c0_i32 = arith.constant 0 : i32
    %c0_i32_0 = arith.constant 0 : i32
    %c0_i32_1 = arith.constant 0 : i32
    return %c0_i32, %c0_i32_0 : i32, i32
  }
  func.func @transform_10(%arg0: i32) -> (i32, i32, i32) {
    %c0_i32 = arith.constant 0 : i32
    %c0_i32_0 = arith.constant 0 : i32
    %c0_i32_1 = arith.constant 0 : i32
    return %arg0, %c0_i32, %c0_i32_0 : i32, i32, i32
  }
}

</mosaic_0001>

<bundles_post_ra>
// kernel: tpu_custom_call.1
= control target key start
LH: loop header
LB: loop body
LE: loop exit
PB: predicated region body
PF: predicated region fallthrough
CT: control target
= control target key end

     0   :  { %s8737_s0 = inlined_call_operand.hbm [shape: f32[2,8,512], index: 0, kind: input, shape index: {}]   ;;  %s8738_s1 = inlined_call_operand.hbm [shape: f32[9,512], index: 1, kind: input, shape index: {}]   ;;  %s8739_s2 = inlined_call_operand.vmem [shape: f32[8,1], index: 2, kind: input, shape index: {}]   ;;  %s8740_s3 = inlined_call_operand.vmem [shape: f32[8,1], index: 3, kind: input, shape index: {}]   ;;  %s8741_s4 = inlined_call_operand.vmem [shape: bf16[3,8,72], index: 4, kind: input, shape index: {}]   ;;  %s8742_s5 = inlined_call_operand.vmem [shape: f32[8,1], index: 5, kind: input, shape index: {}]   ;;  %s8743_s6 = inlined_call_operand.vmem [shape: f32[8,1], index: 6, kind: input, shape index: {}]   ;;  %s8744_s7 = inlined_call_operand.vmem [shape: f32[8,1], index: 7, kind: input, shape index: {}]   ;;  %s8745_s8 = inlined_call_operand.vmem [shape: bf16[3,8,72], index: 8, kind: input, shape index: {}]   ;;  %s8746_s9 = inlined_call_operand.vmem [shape: f32[8,1], index: 9, kind: input, shape index: {}]   ;;  %s8747_s10 = inlined_call_operand.hbm [shape: f32[2,8,512], index: 10, kind: output, shape index: {}]  }
   0x1   :  { %8915 = sst [smem:[#allocation62_spill]] %s8737_s0 }
   0x2   :  { %8916 = sst [smem:[#allocation63_spill]] %s8738_s1 }
   0x3   :  { %8917 = sst [smem:[#allocation64_spill]] %s8739_s2 }
   0x4   :  { %8918 = sst [smem:[#allocation65_spill]] %s8740_s3 }
   0x5   :  { %8919 = sst [smem:[#allocation66_spill]] %s8741_s4 }
   0x6   :  { %8920 = sst [smem:[#allocation67_spill]] %s8742_s5 }
   0x7   :  { %15 = vsyncpa [#allocation5], 0 }
   0x8   :  { %17 = vsyncpa [#allocation5 + $0x1], 0 }
   0x9   :  { %18 = vsyncpa [#allocation8], 0 }
   0xa   :  { %19 = vsyncpa [#allocation6], 0 }
   0xb   :  { %21 = vsyncpa [#allocation6 + $0x1], 0  ;;  %s5866_s13 = smov 0   ;;  %s5868_s14 = smov 0  }
   0xc   :  { %s5870_s15 = smov 0   ;;  %s5872_s16 = smov 0  }
   0xd LB: > { %8921 = sst [smem:[#allocation13_spill]] %s5772_s13  ;;  %s5887_s17 = sadd.s32 4294967295, %s5784_s16   ;;  %s5784_s16 = sphi %s5872_s16, %s9283_s16   ;;  %s5780_s15 = sphi %s5870_s15, %s9287_s15   ;;  %s5776_s14 = sphi %s5868_s14, %s9286_s14   ;;  %s5772_s13 = sphi %s5866_s13, %s9285_s13  }
   0xe   : > { %s5081_s18 = sadd.s32 4294967294, %s5784_s16   ;;  %p47_p0 = scmp.ne.s32.totalorder %s5776_s14, %s5772_s13 }
   0xf   : > { %p8750_p1 = scmp.eq.s32.totalorder %s5887_s17, 0  ;;  %p266_p3 = scmp.eq.s32.totalorder %s5081_s18, 1 }
  0x10   : > { %p5082_p5 = scmp.ge.s32.totalorder %s5784_s16, 1  ;;  %p273_p7 = scmp.lt.s32.totalorder %s5784_s16, 3 }
  0x11   : > { %p5896_p4 = por %p8750_p1, %p47_p0  ;;  %p5901_p6 = por %p266_p3, %p47_p0 }
  0x12   : > { %p5906_p8 = pnand %p5082_p5, %p273_p7  ;;  %s5786_s22 = smov [#allocation7]  }
  0x13   : > { %s8922_s19 = scalar_select %p5896_p4, 1, 0 }
  0x14   : > { %s8923_s20 = scalar_select %p5901_p6, 1, 0 }
  0x15   : > { %s8925_s21 = scalar_select %p5906_p8, 1, 0 }
  0x16   : > { %8924 = sst [smem:[#allocation14_spill]] %s8923_s20  ;;  %s285_s23 = sshll.u32 %s5786_s22, 4  ;;  %s5910_s23 = int_to_ptr.vmem [resolvable:$true] %s285_s23 }
  0x17   : > { %p5575_p9 = pneg %p5906_p8  ;;  %s5922_s25 = sadd.s32 1, %s5784_s16  }
  0x18   : > { %8927 = sst [smem:[#allocation15_spill]] %s5922_s25  ;;  %s34_s26 = sadd.s32 1, %s5780_s15 }
  0x19   : > { %p5917_p11 = pnand %p5575_p9, %p8750_p1  ;;  %s31_s27 = ssub.s32 %s5784_s16, %s5922_s25 }
  0x1a   : > { %s8928_s1 = sld [smem:[#allocation63_spill]] }
  0x1b   : > { %p5658_p13 = pneg %p5917_p11 }
  0x20   : > { %s5656_s30 = scalar_lea.hbm %s8928_s1, 1024 }
  0x21   : > { %p5657_p12 = scmp.ne.s32.totalorder %s8928_s1, %s5656_s30  ;;  %p5663_p5 = scmp.lt.u32.totalorder %s5656_s30, %s8928_s1 }
  0x23   : > { %p5659_p0 = pnand %p5658_p13, %p5657_p12 }
  0x25   : > { %p5660_p3 = pneg %p5659_p0 }
  0x27   : > { %p5665_p7 = pnand %p5663_p5, %p5660_p3 }
  0x29   : > { %5668 = shalt.err (!%p5665_p7)
}
  0x2a   : > { %s5669_s25 = scalar_lea.vmem %s5910_s23, 1024  ;;  %p5677_p2 = scmp.lt.s32.totalorder %s5910_s23, %s5910_s23 }
  0x2b   : > { %p5670_p9 = scmp.ne.s32.totalorder %s5910_s23, %s5669_s25  ;;  %p5678_p6 = scmp.lt.s32.totalorder %s5669_s25, %s5669_s25 }
  0x2d   : > { %p5672_p10 = pnand %p5670_p9, %p5658_p13  ;;  %p5679_p4 = por %p5678_p6, %p5677_p2 }
  0x2f   : > { %p5673_p1 = pneg %p5672_p10 }
  0x31   : > { %p5680_p8 = pnand %p5679_p4, %p5673_p1 }
  0x33   : > { %5683 = shalt.err (!%p5680_p8)
}
  0x34   : > { %s5787_s28 = smov 512   ;;  %s5788_s29 = smov 32  }
  0x35   : > { %5578 = dma.hbm_to_vmem [thread:$0]  (!%p5917_p11), %s8928_s1, 1024, %s5910_s23, [#allocation8], %s5787_s28, %s5787_s28, %s5788_s29  }
  0x36   : > { %p32_p2 = scmp.eq.s32.totalorder %s31_s27, 0  ;;  %p41_p1 = scmp.ne.s32.totalorder %s5780_s15, %s5776_s14 }
  0x37   : > { %p42_p4 = scmp.eq.s32.totalorder %s5784_s16, 0  ;;  %p5588_p6 = scmp.lt.s32.totalorder %s5784_s16, 2 }
  0x38   : > { %s5953_s25 = scalar_select %p32_p2, %s5780_s15, %s34_s26  }
  0x39   : > { %p43_p8 = por %p42_p4, %p41_p1  ;;  %p8930_p10 = scmp.eq.s32.totalorder %s5887_s17, 1 }
  0x3a   : > { %8929 = sst [smem:[#allocation16_spill]] %s5953_s25  ;;  %s323_s18 = sand.u32 1, %s5780_s15  }
  0x3b   : > { %p5957_p12 = por %p8930_p10, %p41_p1  ;;  %s5405_s22 = sshll.u32 %s5784_s16, 9 }
  0x3c   : > { %s5085_s20 = sshll.u32 %s323_s18, 5  ;;  %s8932_s0 = sld [smem:[#allocation62_spill]] }
  0x3d   : > { %s327_s23 = scalar_lea.vmem [#allocation4], %s5085_s20  ;;  %p5968_p11 = pnand %p5588_p6, %p43_p8 }
  0x3e   : > { %s335_s26 = sshll.u32 %s327_s23, 4  ;;  %s324_s28 = scalar_lea.sflag [#allocation5], %s323_s18  ;;  %s5972_s26 = int_to_ptr.vmem [resolvable:$true] %s335_s26 }
  0x3f   : > { %p5686_p0 = pneg %p5968_p11 }
  0x42   : > { %s5966_s30 = scalar_lea.hbm %s8932_s0, %s5405_s22  ;;  %s5689_s11 = scalar_lea.hbm %s8932_s0, 1024 }
  0x43   : > { %s5684_s29 = scalar_lea.hbm %s5966_s30, 512  ;;  %p5690_p7 = scmp.lt.u32.totalorder %s5966_s30, %s8932_s0 }
  0x44   : > { %p5685_p13 = scmp.ne.s32.totalorder %s5966_s30, %s5684_s29  ;;  %p5691_p9 = scmp.lt.u32.totalorder %s5689_s11, %s5684_s29 }
  0x45   : > { %p5693_p1 = scmp.lt.u32.totalorder %s5684_s29, %s5966_s30 }
  0x46   : > { %p5687_p3 = pnand %p5686_p0, %p5685_p13  ;;  %p5692_p2 = por %p5691_p9, %p5690_p7 }
  0x48   : > { %p5688_p5 = pneg %p5687_p3  ;;  %p5694_p4 = por %p5693_p1, %p5692_p2 }
  0x4a   : > { %p5695_p6 = pnand %p5694_p4, %p5688_p5 }
  0x4c   : > { %5698 = shalt.err (!%p5695_p6)
}
  0x4d   : > { %s5699_s18 = scalar_lea.vmem %s5972_s26, 512  ;;  %s5789_s23 = smov [#allocation4]  }
  0x4e   : > { %p5700_p8 = scmp.ne.s32.totalorder %s5972_s26, %s5699_s18  ;;  %s5704_s13 = sshll.u32 %s5789_s23, 4  ;;  %s5705_s13 = int_to_ptr.vmem [resolvable:$false] %s5704_s13 }
  0x4f   : > { %s5706_s20 = scalar_lea.vmem %s5705_s13, 1024  ;;  %p5707_p3 = scmp.lt.s32.totalorder %s5972_s26, %s5705_s13 }
  0x50   : > { %p5702_p10 = pnand %p5700_p8, %p5686_p0  ;;  %p5708_p7 = scmp.lt.s32.totalorder %s5706_s20, %s5699_s18 }
  0x52   : > { %p5703_p13 = pneg %p5702_p10  ;;  %p5709_p9 = por %p5708_p7, %p5707_p3 }
  0x54   : > { %p5710_p2 = pnand %p5709_p9, %p5703_p13 }
  0x56   : > { %5713 = shalt.err (!%p5710_p2)
}
  0x57   : > { %5582 = dma.hbm_to_vmem [thread:$0]  (!%p5968_p11), %s5966_s30, 512, %s5972_s26, %s324_s28  }
  0x58   : > { %p8934_p5 = scmp.ne.s32.totalorder %s8925_s21, 0 }
  0x5a   : > { %344 = sbr.rel (%p8934_p5) target bundleno = 1790 (0x6fe), region = 60 }
  0x61   : > { %s6002_s29 = sand.u32 1, %s5776_s14   ;;  %p8935_p0 = scmp.ne.s32.totalorder %s8922_s19, 0 }
  0x62   : > { %s8755_s11 = sshll.u32 %s6002_s29, 5  ;;  %s347_s22 = scalar_lea.sflag [#allocation5], %s6002_s29 }
  0x63   : > { %s6008_s24 = scalar_lea.vmem [#allocation4], %s8755_s11 }
  0x64   : > { %5759 = dma.done.wait (%p8935_p0), %s347_s22, 512  }
  0x65   : > { %5761 = vsyncadd (%p8935_p0), %s347_s22, 4294966784  ;;  %p8936_p11 = scmp.eq.s32.totalorder %s5887_s17, 0 }
  0x67   : > { %5763 = dma.done.wait (%p8936_p11), [#allocation8], 1024   ;;  %p8937_p1 = pmov %p8936_p11 }
  0x68   : > { %v454_v0 = vlaneseq  ;;  %v6021_v3 = vld [vmem:[%s6008_s24] sm:$0xff]  ;;  %v6024_v4 = vld [vmem:[%s6008_s24 + $0x8] sm:$0xff]  ;;  %v6027_v5 = vld [vmem:[%s6008_s24 + $0x10] sm:$0xff]  ;;  %s8849_s19 = smov 119   ;;  %s8845_s21 = smov 120   ;;  %v8775_v60 = vmov 0  }
  0x69   : > { %5765 = vsyncadd (%p8937_p1), [#allocation8], 4294966272  ;;  %v400_v7 = vadd.f32 %v6024_v4, %v6021_v3  ;;  %v405_v8 = vmul.f32 %v6021_v3, %v6021_v3  ;;  %v406_v9 = vmul.f32 %v6024_v4, %v6024_v4  ;;  %v407_v10 = vmul.f32 %v6027_v5, %v6027_v5  ;;  %v452_v11 = vld [vmem:[#allocation7] ss:$8 sm:$0xf]  ;;  %s8843_s30 = smov 121   ;;  %5646 = vset.pattern.permute.xlu1 %v8775_v60 }
  0x6a   : > { %v455_v1 = vshrl.u32 %v454_v0, 7  ;;  %v6040_v12 = vld [vmem:[%s6008_s24 + $0x18] sm:$0xff]  ;;  %s8841_s26 = smov 127   ;;  %s8758_s27 = smov 1   ;;  %1852 = vmatprep.mubr.bf16.mxu0 %v8775_v60  ;;  %1893 = vmatprep.mubr.bf16.mxu1 %v8775_v60  ;;  %vm8884_vm0 = vcmask 973824   ;;  %vm1244_vm1 = vcmask 982016  }
  0x6b   : > { %v401_v14 = vadd.f32 %v400_v7, %v6027_v5  ;;  %v408_v15 = vmul.f32 %v6040_v12, %v6040_v12  ;;  %v409_v16 = vadd.f32 %v406_v9, %v405_v8  ;;  %v471_v24 = vld [vmem:[#allocation7 + $0x1] ss:$8 sm:$0xf]  ;;  %v490_v28 = vld [vmem:[#allocation7 + $0x2] ss:$8 sm:$0xf]  ;;  %5647 = vset.pattern.permute.xlu0 %v8775_v60 }
  0x6c   : > { %v6018_v2 = vsub.s32 1, %v455_v1  ;;  %v6029_v6 = vsub.s32 2, %v455_v1  ;;  %v6053_v18 = vsub.s32 3, %v455_v1  ;;  %v6061_v23 = vsub.s32 0, %v455_v1  ;;  %s8760_s28 = smov 7   ;;  %s8762_s18 = smov 8  }
  0x6d   : > { %v402_v19 = vadd.f32 %v401_v14, %v6040_v12  ;;  %v410_v20 = vadd.f32 %v409_v16, %v407_v10  ;;  %v509_v32 = vld [vmem:[#allocation7 + $0x3] ss:$8 sm:$0xf]  ;;  %v528_v37 = vld [vmem:[#allocation7 + $0x5] ss:$8 sm:$0xf] }
  0x6e   : > { %8938 = vst [vmem:[#allocation17_spill] sm:$0xff] %v6018_v2  ;;  %8939 = vst [vmem:[#allocation18_spill] sm:$0xff] %v6029_v6  ;;  %v6043_v13 = vrot.slane %v452_v11, %v6018_v2  ;;  %v6051_v17 = vrot.slane %v452_v11, %v6029_v6  ;;  %v6059_v22 = vrot.slane %v452_v11, %v6053_v18  ;;  %v547_v42 = vld [vmem:[#allocation7 + $0x6] ss:$8 sm:$0xf]  ;;  %s8839_s23 = smov 9  }
  0x6f   : > { %8940 = vst [vmem:[#allocation19_spill] sm:$0xff] %v6053_v18  ;;  %403 = vadd.xlane.f32.xlu0 %v402_v19  ;;  %v411_v21 = vadd.f32 %v410_v20, %v408_v15  ;;  %8941 = vst [vmem:[#allocation20_spill] sm:$0xff] %v6061_v23  ;;  %v6066_v25 = vrot.slane %v471_v24, %v6061_v23  ;;  %v6071_v26 = vrot.slane %v471_v24, %v6018_v2  ;;  %v566_v47 = vld [vmem:[#allocation7 + $0x7] ss:$8 sm:$0xf]  ;;  %s8756_s13 = smov 55  }
  0x70   : > { %1175 = vrot.lane.b32.xlu1 %v6043_v13, %s8849_s19  ;;  %v6076_v27 = vrot.slane %v471_v24, %v6029_v6  ;;  %v6081_v29 = vrot.slane %v490_v28, %v6061_v23  ;;  %v6086_v30 = vrot.slane %v490_v28, %v6029_v6  ;;  %v457_v31 = vrot.slane %v452_v11, %v6061_v23  ;;  %v585_v52 = vld [vmem:[#allocation7 + $0x20] ss:$8 sm:$0xf]  ;;  %s8852_s20 = smov 56   ;;  %s8772_s22 = smov 57  }
  0x71   : > { %v6092_v33 = vrot.slane %v509_v32, %v6061_v23  ;;  %v6096_v34 = vrot.slane %v471_v24, %v6053_v18  ;;  %v6101_v35 = vrot.slane %v509_v32, %v6029_v6  ;;  %v6106_v36 = vrot.slane %v490_v28, %v6018_v2  ;;  %s8770_s11 = smov 63   ;;  %s8953_s2 = sld [smem:[#allocation64_spill]] }
  0x72   : > { %v6111_v38 = vrot.slane %v528_v37, %v6061_v23  ;;  %v507_v39 = vrot.slane %v490_v28, %v6053_v18  ;;  %v541_v40 = vrot.slane %v528_v37, %v6029_v6  ;;  %v518_v41 = vrot.slane %v509_v32, %v6018_v2  ;;  %s8954_s3 = sld [smem:[#allocation65_spill]]  ;;  %s9074_s5 = sld [smem:[#allocation67_spill]] }
  0x73   : > { %412 = vadd.xlane.f32.xlu0 %v411_v21  ;;  %v552_v43 = vrot.slane %v547_v42, %v6061_v23  ;;  %v526_v44 = vrot.slane %v509_v32, %v6053_v18  ;;  %v560_v45 = vrot.slane %v547_v42, %v6029_v6  ;;  %v537_v46 = vrot.slane %v528_v37, %v6018_v2  ;;  %s9083_s0 = smov 127   ;;  %s9087_s4 = sld [smem:[#allocation66_spill]] }
  0x74   : > { %1177 = vrot.lane.b32.xlu1 %v6051_v17, %s8849_s19  ;;  %v571_v48 = vrot.slane %v566_v47, %v6061_v23  ;;  %v545_v49 = vrot.slane %v528_v37, %v6053_v18  ;;  %v579_v50 = vrot.slane %v566_v47, %v6029_v6  ;;  %v556_v51 = vrot.slane %v547_v42, %v6018_v2  ;;  %s9089_s1 = smov 9  }
  0x75   : > { %v590_v53 = vrot.slane %v585_v52, %v6061_v23  ;;  %v564_v54 = vrot.slane %v547_v42, %v6053_v18  ;;  %v598_v55 = vrot.slane %v585_v52, %v6029_v6  ;;  %v575_v56 = vrot.slane %v566_v47, %v6018_v2 }
  0x76   : > { %v583_v57 = vrot.slane %v566_v47, %v6053_v18  ;;  %v594_v58 = vrot.slane %v585_v52, %v6018_v2  ;;  %v602_v59 = vrot.slane %v585_v52, %v6053_v18  ;;  %vm8885_vm2 = vcmask 990208  }
  0x77   : > { %vm1370_vm3 = vcmask 1039360   ;;  %vm1412_vm4 = vcmask 7168   ;;  %vm1349_vm5 = vcmask 56320   ;;  %vm8856_vm6 = vcmask 64512  }
  0x78   : > { %1179 = vrot.lane.b32.xlu1 %v6059_v22, %s8849_s19  ;;  %vm8854_vm7 = vcmask 72704   ;;  %vm8851_vm8 = vcmask 449536   ;;  %vm680_vm9 = vcmask 457728   ;;  %vm743_vm10 = vcmask 465920  }
  0x79   : > { %vm806_vm11 = vcmask 515072   ;;  %vm848_vm12 = vcmask 531456   ;;  %vm785_vm13 = vcmask 580608   ;;  %vm722_vm14 = vcmask 588800  }
  0x7a   : > { %vm659_vm15 = vcmask 596992  }
  0x7c   : > { %1236 = vrot.lane.b32.xlu1 %v6066_v25, %s8845_s21 }
  0x80   : > { %1238 = vrot.lane.b32.xlu1 %v6071_v26, %s8845_s21 }
  0x84   : > { %1240 = vrot.lane.b32.xlu1 %v6076_v27, %s8845_s21 }
  0x88   : > { %1299 = vrot.lane.b32.xlu1 %v6081_v29, %s8843_s30 }
  0x89   : > { %1173 = vrot.lane.b32.xlu0 %v457_v31, %s8849_s19 }
  0x8c   : > { %1303 = vrot.lane.b32.xlu1 %v6086_v30, %s8843_s30 }
  0x8d   : > { %1242 = vrot.lane.b32.xlu0 %v6096_v34, %s8845_s21 }
  0x90   : > { %1362 = vrot.lane.b32.xlu1 %v6092_v33, %s8841_s26 }
  0x91   : > { %1301 = vrot.lane.b32.xlu0 %v6106_v36, %s8843_s30 }
  0x94   : > { %1366 = vrot.lane.b32.xlu1 %v6101_v35, %s8841_s26 }
  0x95   : > { %1305 = vrot.lane.b32.xlu0 %v507_v39, %s8843_s30 }
  0x98   : > { %1447 = vrot.lane.b32.xlu1 %v6111_v38, %s8758_s27 }
  0x99   : > { %1364 = vrot.lane.b32.xlu0 %v518_v41, %s8841_s26 }
  0x9c   : > { %1451 = vrot.lane.b32.xlu1 %v541_v40, %s8758_s27 }
  0x9d   : > { %1368 = vrot.lane.b32.xlu0 %v526_v44, %s8841_s26 }
  0xa0   : > { %1510 = vrot.lane.b32.xlu1 %v552_v43, %s8760_s28 }
  0xa1   : > { %1449 = vrot.lane.b32.xlu0 %v537_v46, %s8758_s27 }
  0xa4   : > { %1514 = vrot.lane.b32.xlu1 %v560_v45, %s8760_s28 }
  0xa5   : > { %1453 = vrot.lane.b32.xlu0 %v545_v49, %s8758_s27  ;;  %s8768_s27 = smov 71  }
  0xa8   : > { %1573 = vrot.lane.b32.xlu1 %v571_v48, %s8762_s18 }
  0xa9   : > { %1512 = vrot.lane.b32.xlu0 %v556_v51, %s8760_s28 }
  0xac   : > { %1577 = vrot.lane.b32.xlu1 %v579_v50, %s8762_s18 }
  0xad   : > { %1516 = vrot.lane.b32.xlu0 %v564_v54, %s8760_s28  ;;  %s8764_s28 = smov 72  }
  0xb0   : > { %1636 = vrot.lane.b32.xlu1 %v590_v53, %s8839_s23 }
  0xb1   : > { %1575 = vrot.lane.b32.xlu0 %v575_v56, %s8762_s18 }
  0xb4   : > { %1640 = vrot.lane.b32.xlu1 %v598_v55, %s8839_s23 }
  0xb5   : > { %1579 = vrot.lane.b32.xlu0 %v583_v57, %s8762_s18  ;;  %s8847_s18 = smov 73  }
  0xb8   : > { %608 = vrot.lane.b32.xlu1 %v457_v31, %s8756_s13 }
  0xb9   : > { %1638 = vrot.lane.b32.xlu0 %v594_v58, %s8839_s23 }
  0xbc   : > { %612 = vrot.lane.b32.xlu1 %v6051_v17, %s8756_s13 }
  0xbd   : > { %1642 = vrot.lane.b32.xlu0 %v602_v59, %s8839_s23 }
  0xc0   : > { %672 = vrot.lane.b32.xlu1 %v6066_v25, %s8852_s20 }
  0xc1   : > { %610 = vrot.lane.b32.xlu0 %v6043_v13, %s8756_s13 }
  0xc4   : > { %676 = vrot.lane.b32.xlu1 %v6076_v27, %s8852_s20 }
  0xc5   : > { %614 = vrot.lane.b32.xlu0 %v6059_v22, %s8756_s13  ;;  %s8766_s13 = smov 65  }
  0xc8   : > { %735 = vrot.lane.b32.xlu1 %v6081_v29, %s8772_s22 }
  0xc9   : > { %674 = vrot.lane.b32.xlu0 %v6071_v26, %s8852_s20 }
  0xcc   : > { %739 = vrot.lane.b32.xlu1 %v6086_v30, %s8772_s22 }
  0xcd   : > { %678 = vrot.lane.b32.xlu0 %v6096_v34, %s8852_s20 }
  0xd0   : > { %798 = vrot.lane.b32.xlu1 %v6092_v33, %s8770_s11 }
  0xd1   : > { %737 = vrot.lane.b32.xlu0 %v6106_v36, %s8772_s22 }
  0xd4   : > { %802 = vrot.lane.b32.xlu1 %v6101_v35, %s8770_s11 }
  0xd5   : > { %741 = vrot.lane.b32.xlu0 %v507_v39, %s8772_s22 }
  0xd8   : > { %902 = vrot.lane.b32.xlu1 %v6111_v38, %s8766_s13 }
  0xd9   : > { %800 = vrot.lane.b32.xlu0 %v518_v41, %s8770_s11 }
  0xdc   : > { %906 = vrot.lane.b32.xlu1 %v541_v40, %s8766_s13 }
  0xdd   : > { %804 = vrot.lane.b32.xlu0 %v526_v44, %s8770_s11 }
  0xe0   : > { %965 = vrot.lane.b32.xlu1 %v552_v43, %s8768_s27 }
  0xe1   : > { %904 = vrot.lane.b32.xlu0 %v537_v46, %s8766_s13 }
  0xe2   : > { %v6212_v9 = vpop.permute.xlu1 %1175 }
  0xe4   : > { %969 = vrot.lane.b32.xlu1 %v560_v45, %s8768_s27 }
  0xe5   : > { %908 = vrot.lane.b32.xlu0 %v545_v49, %s8766_s13 }
  0xe6   : > { %v6216_v11 = vpop.permute.xlu1 %1177 }
  0xe8   : > { %1028 = vrot.lane.b32.xlu1 %v571_v48, %s8764_s28 }
  0xe9   : > { %967 = vrot.lane.b32.xlu0 %v556_v51, %s8768_s27 }
  0xea   : > { %v6223_v16 = vpop.permute.xlu1 %1179 }
  0xec   : > { %1032 = vrot.lane.b32.xlu1 %v579_v50, %s8764_s28 }
  0xed   : > { %971 = vrot.lane.b32.xlu0 %v564_v54, %s8768_s27 }
  0xee   : > { %v6228_v20 = vpop.permute.xlu1 %1236 }
  0xf0   : > { %1091 = vrot.lane.b32.xlu1 %v590_v53, %s8847_s18 }
  0xf1   : > { %1030 = vrot.lane.b32.xlu0 %v575_v56, %s8764_s28 }
  0xf2   : > { %v6236_v26 = vpop.permute.xlu1 %1238 }
  0xf4   : > { %1095 = vrot.lane.b32.xlu1 %v598_v55, %s8847_s18 }
  0xf5   : > { %1034 = vrot.lane.b32.xlu0 %v583_v57, %s8764_s28  ;;  %v8774_v57 = vmov 0.0|0.0  }
  0xf6   : > { %v6241_v30 = vpop.permute.xlu1 %1240 }
  0xf9   : > { %1093 = vrot.lane.b32.xlu0 %v594_v58, %s8847_s18 }
  0xfa   : > { %v6249_v34 = vpop.permute.xlu1 %1299 }
  0xfc   : > { %v404_v61 = vpop.xlane.xlu0 %403 }
  0xfd   : > { %1097 = vrot.lane.b32.xlu0 %v602_v59, %s8847_s18  ;;  %v416_v53 = vmul.f32 0.001953125, %v404_v61 }
  0xfe   : > { %v6254_v37 = vpop.permute.xlu1 %1303 }
 0x100   : > { %v413_v62 = vpop.xlane.xlu0 %412 }
 0x101   : > { %v417_v58 = vmul.f32 0.001953125, %v413_v62 }
 0x102   : > { %v6262_v42 = vpop.permute.xlu1 %1362 }
 0x104   : > { %v6202_v63 = vpop.permute.xlu0 %1173 }
 0x106   : > { %v6267_v46 = vpop.permute.xlu1 %1366 }
 0x108   : > { %v6204_v0 = vpop.permute.xlu0 %1242 }
 0x10a   : > { %v6275_v50 = vpop.permute.xlu1 %1447 }
 0x10c   : > { %v6206_v1 = vpop.permute.xlu0 %1301 }
 0x10e   : > { %v6280_v54 = vpop.permute.xlu1 %1451 }
 0x110   : > { %v6208_v7 = vpop.permute.xlu0 %1305 }
 0x112   : > { %v6290_v61 = vpop.permute.xlu1 %1510 }
 0x114   : > { %v6210_v8 = vpop.permute.xlu0 %1364 }
 0x118   : > { %v6214_v10 = vpop.permute.xlu0 %1368 }
 0x11c   : > { %v6218_v13 = vpop.permute.xlu0 %1449 }
 0x120   : > { %v6220_v14 = vpop.permute.xlu0 %1453 }
 0x121   : > { %v1468_v15 = vmul.f32 0.0, %v6220_v14 }
 0x123   : > { %v5449_v17 = vpack.c.bf16 %v1468_v15, %v1468_v15  ;;  %v418_v15 = vmul.f32 %v416_v53, %v416_v53 }
 0x124   : > { %v6225_v19 = vpop.permute.xlu0 %1512 }
 0x125   : > { %1491 = vrot.lane.b32.xlu1 %v5449_v17, %s8841_s26 }
 0x128   : > { %v6230_v21 = vpop.permute.xlu0 %1516 }
 0x129   : > { %v1531_v22 = vmul.f32 0.0, %v6230_v21 }
 0x12b   : > { %v5452_v24 = vpack.c.bf16 %v1531_v22, %v1531_v22  ;;  %v419_v22 = vsub.f32 %v417_v58, %v418_v15 }
 0x12c   : > { %v6233_v25 = vpop.permute.xlu0 %1575 }
 0x12d   : > { %1554 = vrot.lane.b32.xlu0 %v5452_v24, %s8843_s30 }
 0x130   : > { %v6238_v27 = vpop.permute.xlu0 %1579 }
 0x131   : > { %v1594_v28 = vmul.f32 0.0, %v6238_v27 }
 0x133   : > { %v5455_v29 = vpack.c.bf16 %v1594_v28, %v1594_v28 }
 0x134   : > { %v6243_v31 = vpop.permute.xlu0 %1638 }
 0x135   : > { %8942 = vst [vmem:[#allocation21_spill] sm:$0xff] %v6243_v31  ;;  %1617 = vrot.lane.b32.xlu1 %v5455_v29, %s8845_s21  ;;  %v420_v29 = vadd.f32 1e-05, %v419_v22 }
 0x137   : > { %5648 = vrsqrt.f32 %v420_v29 }
 0x138   : > { %v6246_v32 = vpop.permute.xlu0 %1642 }
 0x139   : > { %8943 = vst [vmem:[#allocation22_spill] sm:$0xff] %v6246_v32  ;;  %v1657_v33 = vmul.f32 0.0, %v6246_v32 }
 0x13b   : > { %v5458_v35 = vpack.c.bf16 %v1657_v33, %v1657_v33 }
 0x13c   : > { %v6251_v36 = vpop.permute.xlu0 %610 }
 0x13d   : > { %1680 = vrot.lane.b32.xlu0 %v5458_v35, %s8849_s19  ;;  %v6295_v35 = vpop.permute.xlu1 %1514 }
 0x140   : > { %v6256_v38 = vpop.permute.xlu0 %614 }
 0x141   : > { %8944 = vst [vmem:[#allocation23_spill] sm:$0xff] %v6256_v38  ;;  %v2098_v39 = vmul.f32 0.0, %v6256_v38 }
 0x143   : > { %v5461_v40 = vpack.c.bf16 %v2098_v39, %v2098_v39 }
 0x144   : > { %v6259_v41 = vpop.permute.xlu0 %674 }
 0x145   : > { %2121 = vrot.lane.b32.xlu0 %v5461_v40, %s8847_s18 }
 0x148   : > { %v6264_v43 = vpop.permute.xlu0 %678 }
 0x149   : > { %8945 = vst [vmem:[#allocation24_spill] sm:$0xff] %v6264_v43  ;;  %v2143_v44 = vmul.f32 0.0, %v6264_v43 }
 0x14b   : > { %v5464_v45 = vpack.c.bf16 %v2143_v44, %v2143_v44  ;;  %v6303_v44 = vpop.permute.xlu1 %1573 }
 0x14c   : > { %v6269_v47 = vpop.permute.xlu0 %737 }
 0x14d   : > { %2166 = vrot.lane.b32.xlu1 %v5464_v45, %s8764_s28  ;;  %s8837_s28 = smov 64  }
 0x150   : > { %v6272_v48 = vpop.permute.xlu0 %741 }
 0x151   : > { %8946 = vst [vmem:[#allocation25_spill] sm:$0xff] %v6272_v48  ;;  %v2188_v49 = vmul.f32 0.0, %v6272_v48 }
 0x153   : > { %v5467_v51 = vpack.c.bf16 %v2188_v49, %v2188_v49 }
 0x154   : > { %v6277_v52 = vpop.permute.xlu0 %800 }
 0x155   : > { %2211 = vrot.lane.b32.xlu0 %v5467_v51, %s8768_s27  ;;  %v5649_v51 = vpop.eup %5648  ;;  %s8990_s27 = smov 7  }
 0x158   : > { %v6282_v55 = vpop.permute.xlu0 %804 }
 0x159   : > { %8947 = vst [vmem:[#allocation26_spill] sm:$0xff] %v6282_v55  ;;  %v2233_v56 = vmul.f32 0.0, %v6282_v55  ;;  %2296 = vrot.lane.b32.xlu0 %v8774_v57, %s8837_s28 }
 0x15b   : > { %v5470_v59 = vpack.c.bf16 %v2233_v56, %v2233_v56  ;;  %v6308_v56 = vpop.permute.xlu1 %1577 }
 0x15c   : > { %v6287_v17 = vpop.permute.xlu0 %904 }
 0x15d   : > { %2256 = vrot.lane.b32.xlu1 %v5470_v59, %s8766_s13  ;;  %v398_v59 = vld [vmem:[%s8953_s2] sm:$0xff]  ;;  %s8991_s13 = smov 1   ;;  %s9091_s2 = smov 56  }
 0x15f   : > { %v6317_v29 = vpop.permute.xlu1 %1636 }
 0x160   : > { %v6292_v24 = vpop.permute.xlu0 %908 }
 0x161   : > { %8948 = vst [vmem:[#allocation27_spill] sm:$0xff] %v6292_v24  ;;  %v2318_v28 = vmul.f32 0.0, %v6292_v24 }
 0x163   : > { %v5476_v33 = vpack.c.bf16 %v2318_v28, %v2318_v28  ;;  %v422_v28 = vmul.f32 %v5649_v51, %v398_v59  ;;  %v6322_v57 = vpop.permute.xlu1 %1640 }
 0x164   : > { %v6297_v39 = vpop.permute.xlu0 %967  ;;  %8955 = vst [vmem:[#allocation32_spill] sm:$0xff] %v6322_v57 }
 0x165   : > { %8949 = vst [vmem:[#allocation28_spill] sm:$0xff] %v6297_v39  ;;  %2341 = vrot.lane.b32.xlu1 %v5476_v33, %s8770_s11  ;;  %v423_v33 = vmul.f32 %v422_v28, %v416_v53  ;;  %s8979_s11 = smov 8  }
 0x167   : > { %v6324_v60 = vpop.permute.xlu1 %608 }
 0x168   : > { %v6300_v62 = vpop.permute.xlu0 %971 }
 0x169   : > { %8950 = vst [vmem:[#allocation29_spill] sm:$0xff] %v6300_v62  ;;  %v2363_v40 = vmul.f32 0.0, %v6300_v62 }
 0x16b   : > { %v5479_v45 = vpack.c.bf16 %v2363_v40, %v2363_v40  ;;  %v399_v40 = vld [vmem:[%s8954_s3] sm:$0xff]  ;;  %v6326_v6 = vpop.permute.xlu1 %612  ;;  %s9101_s3 = smov 73  }
 0x16c   : > { %v6305_v49 = vpop.permute.xlu0 %1030 }
 0x16d   : > { %8951 = vst [vmem:[#allocation30_spill] sm:$0xff] %v6305_v49  ;;  %2386 = vrot.lane.b32.xlu0 %v5479_v45, %s8772_s22  ;;  %v424_v45 = vsub.f32 %v399_v40, %v423_v33  ;;  %s9023_s22 = smov 72  }
 0x170   : > { %v6310_v58 = vpop.permute.xlu0 %1034 }
 0x171   : > { %8952 = vst [vmem:[#allocation31_spill] sm:$0xff] %v6310_v58  ;;  %v2408_v15 = vmul.f32 0.0, %v6310_v58 }
 0x173   : > { %v5482_v22 = vpack.c.bf16 %v2408_v15, %v2408_v15  ;;  %v6328_v15 = vpop.permute.xlu1 %672 }
 0x175   : > { %2431 = vrot.lane.b32.xlu1 %v5482_v22, %s8852_s20 }
 0x177   : > { %v6330_v51 = vpop.permute.xlu1 %676 }
 0x179   : > { %427 = vperm.xlu1 %5646, %v422_v28  }
 0x17b   : > { %v6332_v59 = vpop.permute.xlu1 %735 }
 0x17d   : > { %436 = vperm.xlu1 %5646, %v424_v45  }
 0x17f   : > { %v6334_v53 = vpop.permute.xlu1 %739 }
 0x183   : > { %v6336_v22 = vpop.permute.xlu1 %798 }
 0x187   : > { %v6338_v18 = vpop.permute.xlu1 %802 }
 0x18b   : > { %v6340_v28 = vpop.permute.xlu1 %902 }
 0x18c   : > { %8956 = vst [vmem:[#allocation33_spill] sm:$0xff] %v6340_v28 }
 0x18f   : > { %v6342_v33 = vpop.permute.xlu1 %906 }
 0x190   : > { %8957 = vst [vmem:[#allocation34_spill] sm:$0xff] %v6342_v33 }
 0x193   : > { %v6344_v40 = vpop.permute.xlu1 %965 }
 0x194   : > { %8958 = vst [vmem:[#allocation35_spill] sm:$0xff] %v6344_v40 }
 0x197   : > { %v6346_v45 = vpop.permute.xlu1 %969 }
 0x198   : > { %8959 = vst [vmem:[#allocation36_spill] sm:$0xff] %v6346_v45 }
 0x19b   : > { %v6348_v2 = vpop.permute.xlu1 %1028 }
 0x19c   : > { %8960 = vst [vmem:[#allocation37_spill] sm:$0xff] %v6348_v2 }
 0x19f   : > { %v6350_v23 = vpop.permute.xlu1 %1032 }
 0x1a0   : > { %8961 = vst [vmem:[#allocation38_spill] sm:$0xff] %v6350_v23 }
 0x1a3   : > { %v6352_v32 = vpop.permute.xlu1 %1091 }
 0x1a4   : > { %8962 = vst [vmem:[#allocation39_spill] sm:$0xff] %v6352_v32 }
 0x1a7   : > { %v6354_v57 = vpop.permute.xlu1 %1095 }
 0x1a8   : > { %8963 = vst [vmem:[#allocation40_spill] sm:$0xff] %v6354_v57 }
 0x1ab   : > { %v6356_v58 = vpop.permute.xlu1 %1491 }
 0x1ac   : > { %8964 = vst [vmem:[#allocation41_spill] sm:$0xff] %v6356_v58 }
 0x1af   : > { %v6358_v49 = vpop.permute.xlu1 %1617 }
 0x1b0   : > { %8965 = vst [vmem:[#allocation42_spill] sm:$0xff] %v6358_v49 }
 0x1bf   : > { %v6360_v62 = vpop.permute.xlu1 %2166 }
 0x1c0   : > { %8966 = vst [vmem:[#allocation43_spill] sm:$0xff] %v6360_v62 }
 0x1cf   : > { %v6362_v39 = vpop.permute.xlu1 %2256 }
 0x1d0   : > { %8967 = vst [vmem:[#allocation44_spill] sm:$0xff] %v6362_v39  ;;  %v6493_v39 = vsel %vm8856_vm6, %v6308_v56, %v6238_v27  ;;  %v6514_v27 = vsel %vm8851_vm8, %v6326_v6, %v6256_v38  ;;  %v6555_v38 = vsel %vm806_vm11, %v6336_v22, %v6277_v52 }
 0x1d7   : > { %v6364_v24 = vpop.permute.xlu1 %2341 }
 0x1d8   : > { %8968 = vst [vmem:[#allocation45_spill] sm:$0xff] %v6364_v24 }
 0x1e7   : > { %v6366_v40 = vpop.permute.xlu1 %2431 }
 0x1e8   : > { %8969 = vst [vmem:[#allocation46_spill] sm:$0xff] %v6366_v40 }
 0x1f8   : > { %v428_v45 = vpop.permute.xlu1 %427 }
 0x1f9   : > { %v430_v2 = vmul.f32 %v428_v45, %v6021_v3  ;;  %v431_v23 = vmul.f32 %v428_v45, %v6024_v4  ;;  %v432_v32 = vmul.f32 %v428_v45, %v6027_v5  ;;  %v433_v57 = vmul.f32 %v428_v45, %v6040_v12 }
 0x1fa   : > { %v8803_v5 = vmov 0.0  }
 0x1fc   : > { %v437_v58 = vpop.permute.xlu1 %436 }
 0x1fd   : > { %v439_v49 = vadd.f32 %v437_v58, %v430_v2  ;;  %v440_v33 = vadd.f32 %v437_v58, %v431_v23  ;;  %v441_v62 = vadd.f32 %v437_v58, %v432_v32  ;;  %v442_v28 = vadd.f32 %v437_v58, %v433_v57 }
 0x1fe   : > { %v1183_v23 = vsel %vm8884_vm0, %v6212_v9, %v6216_v11  ;;  %v1184_v32 = vsel %vm8884_vm0, %v6216_v11, %v6223_v16  ;;  %v1245_v57 = vsel %vm1244_vm1, %v6228_v20, %v6236_v26  ;;  %v1182_v58 = vsel %vm8884_vm0, %v6202_v63, %v6212_v9 }
 0x1ff   : > { %v6372_v40 = vmax.f32 %v439_v49, 0.0  ;;  %v6374_v24 = vmax.f32 %v440_v33, 0.0  ;;  %v6376_v3 = vmax.f32 %v441_v62, 0.0  ;;  %v6378_v4 = vmax.f32 %v442_v28, 0.0 }
 0x200   : > { %v6394_v62 = vmul.f32 0.0, %v6228_v20  ;;  %v1246_v49 = vsel %vm1244_vm1, %v6236_v26, %v6241_v30  ;;  %v1247_v11 = vsel %vm1244_vm1, %v6241_v30, %v6204_v0  ;;  %v6410_v20 = vsel %vm8885_vm2, %v6249_v34, %v6206_v1 }
 0x201   : > { %v5419_v2 = vpack.c.bf16 %v6376_v3, %v6374_v24  ;;  %v5418_v12 = vpack.c.bf16 %v6372_v40, %v8803_v5  ;;  %v1309_v26 = vsel %vm8885_vm2, %v6206_v1, %v6254_v37  ;;  %v1310_v9 = vsel %vm8885_vm2, %v6254_v37, %v6208_v7 }
 0x202   : > { %v6421_v30 = vsel %vm1370_vm3, %v6262_v42, %v6210_v8  ;;  %v6425_v28 = vpack.c.bf16 %v6374_v24, %v6372_v40  ;;  %v5420_v33 = vpack.c.bf16 %v6378_v4, %v6378_v4  ;;  %v1192_v45 = vmul.f32 %v1183_v23, %v6374_v24 }
 0x203   : > { %881 = vrot.lane.b32.xlu0 %v5419_v2, %s8837_s28  ;;  %879 = vrot.lane.b32.xlu1 %v5418_v12, %s8837_s28  ;;  %v1193_v1 = vmul.f32 %v1184_v32, %v6376_v3  ;;  %v1372_v37 = vsel %vm1370_vm3, %v6210_v8, %v6267_v46  ;;  %v1373_v2 = vsel %vm1370_vm3, %v6267_v46, %v6214_v10  ;;  %v6448_v23 = vmul.f32 0.0, %v6249_v34 }
 0x204   : > { %8970 = vst [vmem:[#allocation47_spill] sm:$0xff] %v6425_v28  ;;  %v6440_v12 = vsel %vm1412_vm4, %v6275_v50, %v6218_v13  ;;  %v6445_v5 = vsel %vm1412_vm4, %v6218_v13, %v6280_v54  ;;  %v6453_v8 = vsel %vm1412_vm4, %v6280_v54, %v6220_v14  ;;  %v6458_v46 = vsel %vm1349_vm5, %v6290_v61, %v6225_v19 }
 0x205   : > { %v6463_v32 = vsel %vm1349_vm5, %v6225_v19, %v6295_v35  ;;  %v6471_v13 = vsel %vm1349_vm5, %v6295_v35, %v6230_v21  ;;  %v6476_v14 = vsel %vm8856_vm6, %v6303_v44, %v6233_v25  ;;  %v6481_v19 = vsel %vm8856_vm6, %v6233_v25, %v6308_v56 }
 0x206   : > { %v6485_v34 = vpack.c.bf16 %v6378_v4, %v6376_v3  ;;  %v5434_v54 = vpack.c.bf16 %v1193_v1, %v1192_v45  ;;  %v1256_v21 = vmul.f32 %v1247_v11, %v6376_v3  ;;  %v1191_v35 = vmul.f32 %v1182_v58, %v6372_v40 }
 0x207   : > { %2292 = vrot.lane.b32.xlu0 %v6425_v28, %s8837_s28  ;;  %883 = vrot.lane.b32.xlu1 %v5420_v33, %s8837_s28  ;;  %v1255_v33 = vmul.f32 %v1246_v49, %v6374_v24  ;;  %v6498_v25 = vsel %vm8854_vm7, %v6317_v29, %v6243_v31  ;;  %v6503_v45 = vsel %vm8851_vm8, %v6324_v60, %v6251_v36  ;;  %v1190_v58 = vmul.f32 0.0, %v6202_v63 }
 0x208   : > { %8971 = vst [vmem:[#allocation48_spill] sm:$0xff] %v6485_v34  ;;  %v6508_v49 = vsel %vm8851_vm8, %v6251_v36, %v6326_v6  ;;  %v6519_v56 = vsel %vm680_vm9, %v6328_v15, %v6259_v41  ;;  %v6524_v11 = vsel %vm680_vm9, %v6259_v41, %v6330_v51  ;;  %v6532_v6 = vsel %vm680_vm9, %v6330_v51, %v6264_v43  ;;  %v1094_v51 = vpop.permute.xlu0 %1093 }
 0x209   : > { %v6537_v63 = vsel %vm743_vm10, %v6332_v59, %v6269_v47  ;;  %v6542_v36 = vsel %vm743_vm10, %v6269_v47, %v6334_v53  ;;  %v1257_v41 = vmul.f32 %v6204_v0, %v6378_v4  ;;  %v6549_v1 = vsel %vm743_vm10, %v6334_v53, %v6272_v48  ;;  %v8972_v53 = vld [vmem:[#allocation33_spill] sm:$0xff]  ;;  %v8977_v48 = vld [vmem:[#allocation35_spill] sm:$0xff] }
 0x20a   : > { %v5433_v28 = vpack.c.bf16 %v1191_v35, %v1190_v58  ;;  %v6560_v47 = vsel %vm806_vm11, %v6277_v52, %v6338_v18  ;;  %v6565_v0 = vsel %vm806_vm11, %v6338_v18, %v6282_v55  ;;  %v8975_v35 = vld [vmem:[#allocation27_spill] sm:$0xff]  ;;  %v8976_v58 = vld [vmem:[#allocation28_spill] sm:$0xff]  ;;  %v1318_v31 = vmul.f32 %v1309_v26, %v6374_v24 }
 0x20b   : > { %1215 = vrot.lane.b32.xlu0 %v5434_v54, %s8839_s23  ;;  %2294 = vrot.lane.b32.xlu1 %v6485_v34, %s8837_s28  ;;  %v5437_v54 = vpack.c.bf16 %v1256_v21, %v1255_v33  ;;  %v1254_v34 = vmul.f32 %v1245_v57, %v6372_v40  ;;  %v6570_v33 = vsel %vm848_vm12, %v8972_v53, %v6287_v17  ;;  %v8974_v57 = vld [vmem:[#allocation34_spill] sm:$0xff]  ;;  %v8980_v55 = vld [vmem:[#allocation36_spill] sm:$0xff]  ;;  %s9025_s28 = smov 71   ;;  %vm657_vm8 = vcmask 1043456  }
 0x20c   : > { %8973 = vst [vmem:[#allocation33_spill] sm:$0xff] %v6570_v33  ;;  %v6575_v21 = vsel %vm848_vm12, %v6287_v17, %v8974_v57  ;;  %v6580_v52 = vsel %vm848_vm12, %v8974_v57, %v8975_v35  ;;  %v6585_v18 = vsel %vm785_vm13, %v8977_v48, %v8976_v58  ;;  %v6592_v17 = vsel %vm785_vm13, %v8976_v58, %v8980_v55  ;;  %v8982_v58 = vld [vmem:[#allocation30_spill] sm:$0xff] }
 0x20d   : > { %8978 = vst [vmem:[#allocation34_spill] sm:$0xff] %v6585_v18  ;;  %v5438_v43 = vpack.c.bf16 %v1257_v41, %v1257_v41  ;;  %v1319_v57 = vmul.f32 %v1310_v9, %v6376_v3  ;;  %v5436_v35 = vpack.c.bf16 %v1254_v34, %v6394_v62  ;;  %v1194_v18 = vmul.f32 %v6223_v16, %v6378_v4  ;;  %v8983_v41 = vld [vmem:[#allocation37_spill] sm:$0xff] }
 0x20e   : > { %v1381_v48 = vmul.f32 %v1372_v37, %v6374_v24  ;;  %v6609_v26 = vsel %vm722_vm14, %v8983_v41, %v8982_v58  ;;  %v1317_v62 = vmul.f32 %v6410_v20, %v6372_v40  ;;  %v1383_v16 = vmul.f32 %v6214_v10, %v6378_v4  ;;  %v8985_v37 = vld [vmem:[#allocation38_spill] sm:$0xff] }
 0x20f   : > { %1278 = vrot.lane.b32.xlu0 %v5437_v54, %s8979_s11  ;;  %1213 = vrot.lane.b32.xlu1 %v5433_v28, %s8839_s23  ;;  %v1382_v54 = vmul.f32 %v1373_v2, %v6376_v3  ;;  %v8981_v28 = vld [vmem:[#allocation29_spill] sm:$0xff]  ;;  %8984 = vst [vmem:[#allocation28_spill] sm:$0xff] %v6609_v26  ;;  %v1379_v9 = vmul.f32 0.0, %v6262_v42  ;;  %v6619_v2 = vsel %vm722_vm14, %v8982_v58, %v8985_v37  ;;  %v8987_v42 = vld [vmem:[#allocation39_spill] sm:$0xff]  ;;  %v8989_v58 = vld [vmem:[#allocation40_spill] sm:$0xff] }
 0x210   : > { %v6604_v33 = vsel %vm785_vm13, %v8980_v55, %v8981_v28  ;;  %v8986_v55 = vld [vmem:[#allocation31_spill] sm:$0xff]  ;;  %v6626_v28 = vpop.permute.xlu0 %1097  ;;  %v1380_v10 = vmul.f32 %v6421_v30, %v6372_v40  ;;  %v6634_v20 = vsel %vm659_vm15, %v8987_v42, %v1094_v51  ;;  %v6638_v26 = vsel %vm659_vm15, %v1094_v51, %v8989_v58 }
 0x211   : > { %v6624_v34 = vsel %vm722_vm14, %v8985_v37, %v8986_v55  ;;  %8988 = vst [vmem:[#allocation36_spill] sm:$0xff] %v6634_v20  ;;  %v6643_v37 = vsel %vm659_vm15, %v8989_v58, %v6626_v28  ;;  %v5440_v55 = vpack.c.bf16 %v1319_v57, %v1318_v31  ;;  %v5443_v41 = vpack.c.bf16 %v1382_v54, %v1381_v48 }
 0x212   : > { %v6649_v30 = vmul.f32 %v6575_v21, %v6374_v24  ;;  %v5439_v20 = vpack.c.bf16 %v1317_v62, %v6448_v23  ;;  %v5444_v42 = vpack.c.bf16 %v1383_v16, %v1383_v16  ;;  %v1467_v51 = vmul.f32 %v6453_v8, %v6378_v4 }
 0x213   : > { %1280 = vrot.lane.b32.xlu0 %v5438_v43, %s8979_s11  ;;  %1276 = vrot.lane.b32.xlu1 %v5436_v35, %s8979_s11  ;;  %v5435_v43 = vpack.c.bf16 %v1194_v18, %v1194_v18  ;;  %v1466_v35 = vmul.f32 %v6445_v5, %v6376_v3  ;;  %v6656_v58 = vmul.f32 %v6580_v52, %v6376_v3 }
 0x214   : > { %v5442_v31 = vpack.c.bf16 %v1380_v10, %v1379_v9  ;;  %v1320_v48 = vmul.f32 %v6208_v7, %v6378_v4  ;;  %v6664_v5 = vmul.f32 %v6290_v61, %v6372_v40  ;;  %v6668_v23 = vmul.f32 %v6458_v46, %v6374_v24 }
 0x215   : > { %v6672_v8 = vmul.f32 %v6275_v50, %v6372_v40  ;;  %v1465_v18 = vmul.f32 %v6440_v12, %v6374_v24  ;;  %v6680_v7 = vmul.f32 %v6303_v44, %v6372_v40  ;;  %v6684_v61 = vmul.f32 %v6476_v14, %v6374_v24 }
 0x216   : > { %v6688_v46 = vmul.f32 %v6592_v17, %v6374_v24  ;;  %v6692_v50 = vmul.f32 %v6604_v33, %v6376_v3  ;;  %v6696_v12 = vmul.f32 %v6463_v32, %v6376_v3  ;;  %v6700_v44 = vmul.f32 %v6471_v13, %v6378_v4  ;;  %v9005_v32 = vld [vmem:[#allocation33_spill] sm:$0xff] }
 0x217   : > { %1341 = vrot.lane.b32.xlu0 %v5440_v55, %s8990_s27  ;;  %1217 = vrot.lane.b32.xlu1 %v5435_v43, %s8839_s23  ;;  %v6704_v14 = vmul.f32 %v6619_v2, %v6374_v24  ;;  %v6708_v54 = vmul.f32 %v6624_v34, %v6376_v3  ;;  %v5448_v62 = vpack.c.bf16 %v1467_v51, %v1466_v35  ;;  %s9027_s23 = smov 65  }
 0x218   : > { %v5441_v16 = vpack.c.bf16 %v1320_v48, %v1320_v48  ;;  %v5450_v13 = vpack.c.bf16 %v6668_v23, %v6664_v5  ;;  %v5447_v9 = vpack.c.bf16 %v1465_v18, %v6672_v8  ;;  %v6719_v55 = vmul.f32 %v6317_v29, %v6372_v40 }
 0x219   : > { %v6733_v43 = vmul.f32 %v6643_v37, %v6376_v3  ;;  %v6737_v35 = vmul.f32 %v6324_v60, %v6372_v40  ;;  %v5453_v29 = vpack.c.bf16 %v6684_v61, %v6680_v7  ;;  %v5451_v51 = vpack.c.bf16 %v6700_v44, %v6696_v12 }
 0x21a   : > { %v6749_v48 = vmul.f32 %v6503_v45, %v6374_v24  ;;  %v6755_v5 = vmul.f32 %v6493_v39, %v6378_v4  ;;  %v6761_v8 = vmul.f32 %v6508_v49, %v6376_v3  ;;  %v6767_v18 = vmul.f32 %v6514_v27, %v6378_v4 }
 0x21b   : > { %1404 = vrot.lane.b32.xlu0 %v5443_v41, %s8991_s13  ;;  %1339 = vrot.lane.b32.xlu1 %v5439_v20, %s8990_s27  ;;  %v6725_v41 = vmul.f32 %v6498_v25, %v6374_v24  ;;  %v6729_v20 = vmul.f32 %v6638_v26, %v6374_v24  ;;  %v6745_v25 = vmul.f32 %v6481_v19, %v6376_v3 }
 0x21c   : > { %8992 = vst [vmem:[#allocation30_spill] sm:$0xff] %v6761_v8  ;;  %v6775_v39 = vmul.f32 %v6519_v56, %v6374_v24  ;;  %v6783_v7 = vmul.f32 %v6532_v6, %v6378_v4  ;;  %v6787_v61 = vmul.f32 %v6332_v59, %v6372_v40  ;;  %v6791_v12 = vmul.f32 %v6537_v63, %v6374_v24 }
 0x21d   : > { %v6799_v23 = vmul.f32 %v6542_v36, %v6376_v3  ;;  %v6803_v10 = vmul.f32 %v6549_v1, %v6378_v4  ;;  %v6813_v19 = vmul.f32 %v6336_v22, %v6372_v40  ;;  %v6831_v44 = vmul.f32 %v8972_v53, %v6372_v40 }
 0x21e   : > { %8994 = vst [vmem:[#allocation40_spill] sm:$0xff] %v6775_v39  ;;  %8996 = vst [vmem:[#allocation50_spill] sm:$0xff] %v6783_v7  ;;  %v6839_v57 = vmul.f32 %v6575_v21, %v6376_v3  ;;  %v9011_v39 = vld [vmem:[#allocation34_spill] sm:$0xff]  ;;  %v9015_v21 = vld [vmem:[#allocation28_spill] sm:$0xff] }
 0x21f   : > { %1406 = vrot.lane.b32.xlu0 %v5444_v42, %s8991_s13  ;;  %1402 = vrot.lane.b32.xlu1 %v5442_v31, %s8991_s13  ;;  %v6771_v42 = vmul.f32 %v6328_v15, %v6372_v40  ;;  %v6779_v31 = vmul.f32 %v6524_v11, %v6376_v3  ;;  %8997 = vst [vmem:[#allocation51_spill] sm:$0xff] %v6787_v61  ;;  %8998 = vst [vmem:[#allocation52_spill] sm:$0xff] %v6791_v12 }
 0x220   : > { %8999 = vst [vmem:[#allocation53_spill] sm:$0xff] %v6799_v23  ;;  %9000 = vst [vmem:[#allocation54_spill] sm:$0xff] %v6803_v10  ;;  %v6835_v61 = vmul.f32 %v9005_v32, %v6374_v24  ;;  %v6843_v23 = vmul.f32 %v6580_v52, %v6378_v4  ;;  %v6855_v8 = vmul.f32 %v9011_v39, %v6374_v24  ;;  %v9016_v10 = vld [vmem:[#allocation39_spill] sm:$0xff] }
 0x221   : > { %8993 = vst [vmem:[#allocation38_spill] sm:$0xff] %v6771_v42  ;;  %8995 = vst [vmem:[#allocation49_spill] sm:$0xff] %v6779_v31  ;;  %v6819_v42 = vmul.f32 %v6555_v38, %v6374_v24  ;;  %v9009_v31 = vld [vmem:[#allocation35_spill] sm:$0xff]  ;;  %v6865_v12 = vmul.f32 %v6592_v17, %v6376_v3  ;;  %v6883_v52 = vmul.f32 %v6619_v2, %v6376_v3 }
 0x222   : > { %9001 = vst [vmem:[#allocation55_spill] sm:$0xff] %v6813_v19  ;;  %9004 = vst [vmem:[#allocation58_spill] sm:$0xff] %v6831_v44  ;;  %v6851_v7 = vmul.f32 %v9009_v31, %v6372_v40  ;;  %v6879_v44 = vmul.f32 %v9015_v21, %v6374_v24  ;;  %v6887_v17 = vmul.f32 %v6624_v34, %v6378_v4 }
 0x223   : > { %1489 = vrot.lane.b32.xlu0 %v5448_v62, %s8841_s26  ;;  %1343 = vrot.lane.b32.xlu1 %v5441_v16, %s8990_s27  ;;  %v6823_v62 = vmul.f32 %v6560_v47, %v6376_v3  ;;  %v6827_v16 = vmul.f32 %v6565_v0, %v6378_v4  ;;  %9006 = vst [vmem:[#allocation33_spill] sm:$0xff] %v6835_v61  ;;  %9007 = vst [vmem:[#allocation59_spill] sm:$0xff] %v6839_v57  ;;  %v9019_v61 = vld [vmem:[#allocation32_spill] sm:$0xff] }
 0x224   : > { %9008 = vst [vmem:[#allocation60_spill] sm:$0xff] %v6843_v23  ;;  %9010 = vst [vmem:[#allocation35_spill] sm:$0xff] %v6851_v7  ;;  %v9018_v7 = vld [vmem:[#allocation36_spill] sm:$0xff]  ;;  %v6903_v2 = vmul.f32 %v6638_v26, %v6376_v3  ;;  %v6907_v34 = vmul.f32 %v6643_v37, %v6378_v4  ;;  %v9021_v26 = vld [vmem:[#allocation22_spill] sm:$0xff]  ;;  %v5456_v37 = vpack.c.bf16 %v6725_v41, %v6719_v55 }
 0x225   : > { %9002 = vst [vmem:[#allocation56_spill] sm:$0xff] %v6823_v62  ;;  %9003 = vst [vmem:[#allocation57_spill] sm:$0xff] %v6827_v16  ;;  %v6871_v62 = vmul.f32 %v6604_v33, %v6378_v4  ;;  %v6891_v33 = vmul.f32 %v9016_v10, %v6372_v40  ;;  %v9020_v16 = vld [vmem:[#allocation21_spill] sm:$0xff]  ;;  %v628_v57 = vmul.f32 %v6514_v27, %v6376_v3  ;;  %v625_v27 = vmul.f32 0.0, %v6324_v60 }
 0x226   : > { %9012 = vst [vmem:[#allocation34_spill] sm:$0xff] %v6855_v8  ;;  %v6895_v8 = vmul.f32 %v9018_v7, %v6374_v24  ;;  %v1646_v19 = vsel %vm8854_vm7, %v9020_v16, %v9019_v61  ;;  %v627_v16 = vmul.f32 %v6508_v49, %v6374_v24  ;;  %v691_v49 = vmul.f32 %v6524_v11, %v6374_v24 }
 0x227   : > { %1550 = vrot.lane.b32.xlu0 %v5450_v13, %s8843_s30  ;;  %1487 = vrot.lane.b32.xlu1 %v5447_v9, %s8841_s26  ;;  %v9013_v13 = vld [vmem:[#allocation37_spill] sm:$0xff]  ;;  %9017 = vst [vmem:[#allocation28_spill] sm:$0xff] %v6891_v33  ;;  %v1655_v23 = vmul.f32 %v1646_v19, %v6376_v3  ;;  %v690_v11 = vmul.f32 %v6519_v56, %v6372_v40  ;;  %s9030_s26 = smov 63  }
 0x228   : > { %v6875_v9 = vmul.f32 %v9013_v13, %v6372_v40  ;;  %v5407_v55 = vpack.c.bf16 %v628_v57, %v627_v16  ;;  %v689_v57 = vmul.f32 0.0, %v6328_v15  ;;  %v754_v60 = vmul.f32 %v6542_v36, %v6374_v24 }
 0x229   : > { %v817_v16 = vmul.f32 %v6560_v47, %v6374_v24  ;;  %v818_v36 = vmul.f32 %v6565_v0, %v6376_v3  ;;  %v816_v24 = vmul.f32 %v6555_v38, %v6372_v40  ;;  %v815_v47 = vmul.f32 0.0, %v6336_v22 }
 0x22a   : > { %9014 = vst [vmem:[#allocation37_spill] sm:$0xff] %v6875_v9  ;;  %v1647_v9 = vsel %vm8854_vm7, %v9019_v61, %v9021_v26  ;;  %v692_v61 = vmul.f32 %v6532_v6, %v6376_v3  ;;  %v920_v38 = vmul.f32 %v9005_v32, %v6372_v40  ;;  %v919_v22 = vmul.f32 0.0, %v8972_v53 }
 0x22b   : > { %1613 = vrot.lane.b32.xlu0 %v5453_v29, %s8845_s21  ;;  %1552 = vrot.lane.b32.xlu1 %v5451_v51, %s8843_s30  ;;  %v5484_v29 = vpack.c.bf16 %v6907_v34, %v6903_v2  ;;  %v5454_v51 = vpack.c.bf16 %v6755_v5, %v6745_v25  ;;  %v1656_v33 = vmul.f32 %v1647_v9, %v6378_v4  ;;  %v9022_v9 = vld [vmem:[#allocation24_spill] sm:$0xff]  ;;  %s9032_s30 = smov 57  }
 0x22c   : > { %v626_v25 = vmul.f32 %v6503_v45, %v6372_v40  ;;  %v5410_v5 = vpack.c.bf16 %v692_v61, %v691_v49  ;;  %v693_v26 = vmul.f32 %v9022_v9, %v6378_v4  ;;  %v755_v45 = vmul.f32 %v6549_v1, %v6376_v3 }
 0x22d   : > { %v5457_v41 = vpack.c.bf16 %v1656_v33, %v1655_v23  ;;  %v5409_v23 = vpack.c.bf16 %v690_v11, %v689_v57  ;;  %v9024_v33 = vld [vmem:[#allocation23_spill] sm:$0xff]  ;;  %v753_v1 = vmul.f32 %v6537_v63, %v6372_v40  ;;  %v5416_v49 = vpack.c.bf16 %v818_v36, %v817_v16  ;;  %v9028_v63 = vld [vmem:[#allocation25_spill] sm:$0xff] }
 0x22e   : > { %v5406_v19 = vpack.c.bf16 %v626_v25, %v625_v27  ;;  %v5411_v6 = vpack.c.bf16 %v693_v26, %v693_v26  ;;  %v5413_v15 = vpack.c.bf16 %v755_v45, %v754_v60  ;;  %v756_v0 = vmul.f32 %v9028_v63, %v6378_v4  ;;  %v9029_v27 = vld [vmem:[#allocation27_spill] sm:$0xff]  ;;  %v9056_v63 = vld [vmem:[#allocation57_spill] sm:$0xff] }
 0x22f   : > { %1676 = vrot.lane.b32.xlu0 %v5456_v37, %s8849_s19  ;;  %1615 = vrot.lane.b32.xlu1 %v5454_v51, %s8845_s21  ;;  %v629_v37 = vmul.f32 %v9024_v33, %v6378_v4  ;;  %v752_v51 = vmul.f32 0.0, %v6332_v59  ;;  %v5415_v59 = vpack.c.bf16 %v816_v24, %v815_v47  ;;  %v5421_v26 = vpack.c.bf16 %v920_v38, %v919_v22  ;;  %v9035_v45 = vld [vmem:[#allocation31_spill] sm:$0xff]  ;;  %v7014_v33 = vpop.permute.xlu0 %1554  ;;  %s9037_s21 = smov 55  }
 0x230   : > { %v5414_v25 = vpack.c.bf16 %v756_v0, %v756_v0  ;;  %v983_v11 = vmul.f32 %v9011_v39, %v6372_v40  ;;  %v982_v57 = vmul.f32 0.0, %v9009_v31  ;;  %v1046_v53 = vmul.f32 %v9015_v21, %v6372_v40  ;;  %v9034_v31 = vld [vmem:[#allocation29_spill] sm:$0xff]  ;;  %v9054_v47 = vld [vmem:[#allocation55_spill] sm:$0xff]  ;;  %v9057_v0 = vld [vmem:[#allocation56_spill] sm:$0xff] }
 0x231   : > { %v5408_v56 = vpack.c.bf16 %v629_v37, %v629_v37  ;;  %v986_v60 = vmul.f32 %v9034_v31, %v6378_v4  ;;  %v9036_v21 = vpack.c.bf16 %v6708_v54, %v6704_v14 }
 0x232   : > { %v5424_v32 = vpack.c.bf16 %v983_v11, %v982_v57  ;;  %v9065_v11 = vld [vmem:[#allocation34_spill] sm:$0xff]  ;;  %v9066_v57 = vld [vmem:[#allocation35_spill] sm:$0xff] }
 0x233   : > { %650 = vrot.lane.b32.xlu0 %v5407_v55, %s8847_s18  ;;  %1678 = vrot.lane.b32.xlu1 %v5457_v41, %s8849_s19  ;;  %v5412_v55 = vpack.c.bf16 %v753_v1, %v752_v51  ;;  %v9026_v41 = vld [vmem:[#allocation26_spill] sm:$0xff]  ;;  %s9077_s19 = smov 119  }
 0x234   : > { %v819_v61 = vmul.f32 %v9026_v41, %v6378_v4  ;;  %v9045_v51 = vld [vmem:[#allocation50_spill] sm:$0xff] }
 0x236   : > { %v5417_v3 = vpack.c.bf16 %v819_v61, %v819_v61  ;;  %v9052_v61 = vld [vmem:[#allocation53_spill] sm:$0xff] }
 0x237   : > { %714 = vrot.lane.b32.xlu0 %v5410_v5, %s9023_s22  ;;  %648 = vrot.lane.b32.xlu1 %v5406_v19, %s8847_s18  ;;  %v923_v5 = vmul.f32 %v9029_v27, %v6378_v4  ;;  %v9031_v19 = vpack.c.bf16 %v6656_v58, %v6649_v30  ;;  %v1045_v30 = vmul.f32 0.0, %v9013_v13  ;;  %v9033_v58 = vpack.c.bf16 %v6692_v50, %v6688_v46  ;;  %v9059_v27 = vld [vmem:[#allocation33_spill] sm:$0xff] }
 0x238   : > { %v5426_v13 = vpack.c.bf16 %v986_v60, %v986_v60  ;;  %v1109_v46 = vmul.f32 %v9018_v7, %v6372_v40  ;;  %v1108_v50 = vmul.f32 0.0, %v9016_v10  ;;  %v9038_v40 = vpack.c.bf16 %v6733_v43, %v6729_v20  ;;  %v9040_v7 = vld [vmem:[#allocation30_spill] sm:$0xff]  ;;  %v9042_v20 = vld [vmem:[#allocation40_spill] sm:$0xff] }
 0x239   : > { %v5423_v9 = vpack.c.bf16 %v923_v5, %v923_v5  ;;  %v5427_v39 = vpack.c.bf16 %v1046_v53, %v1045_v30  ;;  %v9039_v10 = vpack.c.bf16 %v6749_v48, %v6737_v35  ;;  %v9041_v16 = vpack.c.bf16 %v6767_v18, %v9040_v7  ;;  %v9043_v43 = vld [vmem:[#allocation38_spill] sm:$0xff]  ;;  %v9048_v35 = vld [vmem:[#allocation52_spill] sm:$0xff]  ;;  %v9049_v48 = vld [vmem:[#allocation51_spill] sm:$0xff] }
 0x23a   : > { %v5430_v37 = vpack.c.bf16 %v1109_v46, %v1108_v50  ;;  %v9044_v36 = vpack.c.bf16 %v9042_v20, %v9043_v43  ;;  %v9050_v41 = vpack.c.bf16 %v9048_v35, %v9049_v48  ;;  %v9051_v18 = vld [vmem:[#allocation54_spill] sm:$0xff]  ;;  %v2453_v60 = vmul.f32 0.0, %v6626_v28 }
 0x23b   : > { %716 = vrot.lane.b32.xlu0 %v5411_v6, %s9023_s22  ;;  %712 = vrot.lane.b32.xlu1 %v5409_v23, %s9023_s22  ;;  %v1049_v6 = vmul.f32 %v9035_v45, %v6378_v4  ;;  %v9053_v24 = vpack.c.bf16 %v9051_v18, %v9052_v61  ;;  %v9060_v5 = vld [vmem:[#allocation58_spill] sm:$0xff]  ;;  %v9079_v18 = vld [vmem:[#allocation19_spill] sm:$0xff] }
 0x23c   : > { %v9061_v38 = vpack.c.bf16 %v9059_v27, %v9060_v5 }
 0x23d   : > { %v5429_v23 = vpack.c.bf16 %v1049_v6, %v1049_v6 }
 0x23f   : > { %777 = vrot.lane.b32.xlu0 %v5413_v15, %s9025_s28  ;;  %652 = vrot.lane.b32.xlu1 %v5408_v56, %s8847_s18  ;;  %v1112_v15 = vmul.f32 %v6626_v28, %v6378_v4  ;;  %v7020_v56 = vpop.permute.xlu0 %1680 }
 0x241   : > { %v5432_v14 = vpack.c.bf16 %v1112_v15, %v1112_v15 }
 0x243   : > { %840 = vrot.lane.b32.xlu0 %v5416_v49, %s9027_s23  ;;  %775 = vrot.lane.b32.xlu1 %v5412_v55, %s9025_s28  ;;  %v7027_v54 = vpop.permute.xlu0 %2121  ;;  %v9046_v49 = vld [vmem:[#allocation49_spill] sm:$0xff] }
 0x244   : > { %v9047_v55 = vpack.c.bf16 %v9045_v51, %v9046_v49 }
 0x247   : > { %842 = vrot.lane.b32.xlu0 %v5417_v3, %s9027_s23  ;;  %838 = vrot.lane.b32.xlu1 %v5415_v59, %s9027_s23  ;;  %v7034_v4 = vpop.permute.xlu0 %2211  ;;  %v9055_v3 = vpack.c.bf16 %v6819_v42, %v9054_v47  ;;  %v9063_v42 = vld [vmem:[#allocation59_spill] sm:$0xff] }
 0x24b   : > { %944 = vrot.lane.b32.xlu0 %v9031_v19, %s9030_s26  ;;  %779 = vrot.lane.b32.xlu1 %v5414_v25, %s9025_s28  ;;  %v7044_v1 = vpop.permute.xlu0 %2296  ;;  %v9058_v25 = vpack.c.bf16 %v9056_v63, %v9057_v0 }
 0x24f   : > { %946 = vrot.lane.b32.xlu0 %v5423_v9, %s9030_s26  ;;  %942 = vrot.lane.b32.xlu1 %v5421_v26, %s9030_s26  ;;  %v7062_v59 = vpop.permute.xlu0 %2386  ;;  %v9062_v9 = vld [vmem:[#allocation60_spill] sm:$0xff] }
 0x250   : > { %v9064_v26 = vpack.c.bf16 %v9062_v9, %v9063_v42  ;;  %v9080_v9 = vld [vmem:[#allocation18_spill] sm:$0xff] }
 0x253   : > { %1007 = vrot.lane.b32.xlu0 %v9033_v58, %s9032_s30  ;;  %1005 = vrot.lane.b32.xlu1 %v5424_v32, %s9032_s30  ;;  %v9067_v32 = vpack.c.bf16 %v9065_v11, %v9066_v57  ;;  %v9068_v58 = vpack.c.bf16 %v6871_v62, %v6865_v12  ;;  %v5485_v62 = vpack.c.bf16 %v2453_v60, %v2453_v60 }
 0x257   : > { %1068 = vrot.lane.b32.xlu1 %v5427_v39, %s8852_s20  ;;  %1070 = vrot.lane.b32.xlu0 %v9036_v21, %s8852_s20  ;;  %v9069_v39 = vld [vmem:[#allocation37_spill] sm:$0xff]  ;;  %v9071_v21 = vpack.c.bf16 %v6887_v17, %v6883_v52 }
 0x258   : > { %v9070_v31 = vpack.c.bf16 %v6879_v44, %v9069_v39  ;;  %v447_v52 = vld [vmem:[%s9074_s5] sm:$0xff]  ;;  %s9105_s5 = smov 64  }
 0x25b   : > { %1009 = vrot.lane.b32.xlu1 %v5426_v13, %s9032_s30  ;;  %1072 = vrot.lane.b32.xlu0 %v5429_v23, %s8852_s20  ;;  %v9072_v13 = vld [vmem:[#allocation28_spill] sm:$0xff] }
 0x25c   : > { %v9073_v12 = vpack.c.bf16 %v6895_v8, %v9072_v13 }
 0x25f   : > { %1131 = vrot.lane.b32.xlu1 %v5430_v37, %s9037_s21  ;;  %1133 = vrot.lane.b32.xlu0 %v9038_v40, %s9037_s21 }
 0x263   : > { %1135 = vrot.lane.b32.xlu1 %v5432_v14, %s9037_s21  ;;  %2117 = vrot.lane.b32.xlu0 %v9039_v10, %s8847_s18  ;;  %v2763_v14 = vld [vmem:[#allocation7] ss:$8 sm:$0xf] }
 0x264   : > { %v9075_v10 = vld [vmem:[#allocation20_spill] sm:$0xff]  ;;  %v7150_v42 = vrot.slane %v2763_v14, %v9080_v9 }
 0x265   : > { %v7117_v2 = vrot.slane %v2763_v14, %v9075_v10 }
 0x267   : > { %2119 = vrot.lane.b32.xlu1 %v9041_v16, %s8847_s18  ;;  %2162 = vrot.lane.b32.xlu0 %v9044_v36, %s9023_s22  ;;  %v9076_v36 = vld [vmem:[#allocation17_spill] sm:$0xff]  ;;  %s9078_s18 = smov 120  }
 0x26b   : > { %2164 = vrot.lane.b32.xlu1 %v9047_v55, %s9023_s22  ;;  %2207 = vrot.lane.b32.xlu0 %v9050_v41, %s9025_s28  ;;  %v7134_v41 = vrot.slane %v2763_v14, %v9076_v36 }
 0x26f   : > { %2209 = vrot.lane.b32.xlu1 %v9053_v24, %s9025_s28  ;;  %2252 = vrot.lane.b32.xlu0 %v9055_v3, %s9027_s23 }
 0x273   : > { %2254 = vrot.lane.b32.xlu1 %v9058_v25, %s9027_s23  ;;  %2337 = vrot.lane.b32.xlu0 %v9061_v38, %s9030_s26  ;;  %v7145_v38 = vld [vmem:[#allocation7 + $0x2] ss:$8 sm:$0xf] }
 0x275   : > { %v7072_v22 = vpop.permute.xlu1 %879  ;;  %v7074_v19 = vpop.permute.xlu0 %881 }
 0x277   : > { %2339 = vrot.lane.b32.xlu1 %v9064_v26, %s9030_s26  ;;  %2382 = vrot.lane.b32.xlu0 %v9067_v32, %s9032_s30  ;;  %v7156_v26 = vrot.slane %v7145_v38, %v9076_v36 }
 0x279   : > { %v7084_v53 = vpop.permute.xlu1 %883  ;;  %v7086_v30 = vpop.permute.xlu0 %2292 }
 0x27b   : > { %2384 = vrot.lane.b32.xlu1 %v9068_v58, %s9032_s30  ;;  %2427 = vrot.lane.b32.xlu0 %v9070_v31, %s8852_s20 }
 0x27d   : > { %v7097_v45 = vpop.permute.xlu1 %2294  ;;  %v1216_v6 = vpop.permute.xlu0 %1215 }
 0x27e   : > { %v1220_v28 = vrot.slane %v1216_v6, 4 }
 0x27f   : > { %2429 = vrot.lane.b32.xlu1 %v9071_v21, %s8852_s20  ;;  %2472 = vrot.lane.b32.xlu0 %v9073_v12, %s9037_s21  ;;  %s9081_s20 = smov 121   ;;  %v7169_v21 = vrot.slane %v7145_v38, %v9079_v18  ;;  %v9082_v12 = vld [vmem:[#allocation41_spill] sm:$0xff] }
 0x281   : > { %v1214_v23 = vpop.permute.xlu1 %1213  ;;  %v1279_v46 = vpop.permute.xlu0 %1278 }
 0x282   : > { %v1219_v44 = vrot.slane %v1214_v23, 4  ;;  %v1283_v50 = vrot.slane %v1279_v46, 4 }
 0x283   : > { %2474 = vrot.lane.b32.xlu1 %v5484_v29, %s9037_s21  ;;  %2476 = vrot.lane.b32.xlu0 %v5485_v62, %s9037_s21  ;;  %v7120_v29 = vld [vmem:[#allocation7 + $0x1] ss:$8 sm:$0xf]  ;;  %v1495_v62 = vrot.slane %v9082_v12, 4  ;;  %v1558_v12 = vrot.slane %v7014_v33, 4  ;;  %v7236_v33 = vrot.slane %v7145_v38, %v9080_v9 }
 0x284   : > { %v1222_v40 = vsel %vm657_vm8, %v1219_v44, %v1220_v28  ;;  %v7128_v51 = vrot.slane %v7120_v29, %v9076_v36  ;;  %v7140_v61 = vrot.slane %v7120_v29, %v9079_v18 }
 0x285   : > { %v1277_v17 = vpop.permute.xlu1 %1276  ;;  %v1281_v8 = vpop.permute.xlu0 %1280  ;;  %v1224_v20 = vsel %vm8854_vm7, %v1214_v23, %v1222_v40  ;;  %v7182_v40 = vrot.slane %v7120_v29, %v9075_v10 }
 0x286   : > { %v1282_v37 = vrot.slane %v1277_v17, 4  ;;  %v1284_v15 = vrot.slane %v1281_v8, 4 }
 0x287   : > { %2702 = vperm.xlu1 %5646, %v447_v52   ;;  %3522 = vrot.lane.b32.xlu0 %v7128_v51, %s9078_s18 }
 0x288   : > { %v1285_v34 = vsel %vm657_vm8, %v1282_v37, %v1283_v50  ;;  %v1288_v48 = vsel %vm657_vm8, %v1283_v50, %v1284_v15  ;;  %v7176_v15 = vld [vmem:[#allocation7 + $0x3] ss:$8 sm:$0xf] }
 0x289   : > { %v1218_v7 = vpop.permute.xlu1 %1217  ;;  %v7122_v16 = vpop.permute.xlu0 %1341  ;;  %v1287_v43 = vsel %vm8856_vm6, %v1277_v17, %v1285_v34  ;;  %v1289_v0 = vsel %vm8856_vm6, %v1279_v46, %v1288_v48  ;;  %vm9092_vm6 = vcmask 449536  }
 0x28a   : > { %v1221_v49 = vrot.slane %v1218_v7, 4  ;;  %v5147_v55 = vcombine.high %v1224_v20, %v1287_v43  ;;  %v5146_v35 = vcombine.low %v1224_v20, %v1287_v43  ;;  %v1346_v11 = vrot.slane %v7122_v16, 4 }
 0x28b   : > { %3459 = vrot.lane.b32.xlu1 %v7117_v2, %s9077_s19  ;;  %3526 = vrot.lane.b32.xlu0 %v7140_v61, %s9078_s18 }
 0x28c   : > { %1820 = vmatprep.subr.bf16.mxu0 %v5147_v55  ;;  %v1225_v24 = vsel %vm657_vm8, %v1220_v28, %v1221_v49 }
 0x28d   : > { %v1340_v47 = vpop.permute.xlu1 %1339  ;;  %1821 = vmatpush1.bf16.msra.mxu0 %v5146_v35  ;;  %v1405_v3 = vpop.permute.xlu0 %1404  ;;  %v1226_v63 = vsel %vm8854_vm7, %v1216_v6, %v1225_v24  ;;  %v7163_v6 = vrot.slane %v2763_v14, %v9079_v18  ;;  %v7188_v14 = vrot.slane %v7176_v15, %v9076_v36  ;;  %vm8857_vm7 = vcmask 523264  }
 0x28e   : > { %v1345_v25 = vrot.slane %v1340_v47, 4  ;;  %v5149_v27 = vcombine.high %v1226_v63, %v1289_v0  ;;  %v5148_v5 = vcombine.low %v1226_v63, %v1289_v0  ;;  %v1409_v39 = vrot.slane %v1405_v3, 4 }
 0x28f   : > { %3461 = vrot.lane.b32.xlu1 %v7134_v41, %s9077_s19  ;;  %3583 = vrot.lane.b32.xlu0 %v7156_v26, %s9081_s20  ;;  %v7200_v63 = vrot.slane %v7120_v29, %v9080_v9  ;;  %v7206_v0 = vrot.slane %v7176_v15, %v9079_v18  ;;  %v9085_v29 = vld [vmem:[#allocation47_spill] sm:$0xff] }
 0x290   : > { %1861 = vmatprep.subr.bf16.mxu1 %v5149_v27  ;;  %v1348_v58 = vsel %vm657_vm8, %v1345_v25, %v1346_v11 }
 0x291   : > { %v1403_v57 = vpop.permute.xlu1 %1402  ;;  %1862 = vmatpush1.bf16.msra.mxu1 %v5148_v5  ;;  %v1407_v32 = vpop.permute.xlu0 %1406  ;;  %v1350_v23 = vsel %vm1349_vm5, %v1340_v47, %v1348_v58 }
 0x292   : > { %v1408_v31 = vrot.slane %v1403_v57, 4  ;;  %v1410_v60 = vrot.slane %v1407_v32, 4 }
 0x293   : > { %3463 = vrot.lane.b32.xlu1 %v7150_v42, %s9077_s19  ;;  %3587 = vrot.lane.b32.xlu0 %v7169_v21, %s9081_s20 }
 0x294   : > { %v1411_v13 = vsel %vm657_vm8, %v1408_v31, %v1409_v39  ;;  %v1414_v44 = vsel %vm657_vm8, %v1409_v39, %v1410_v60  ;;  %v7213_v39 = vld [vmem:[#allocation7 + $0x5] ss:$8 sm:$0xf]  ;;  %v7220_v60 = vrot.slane %v7145_v38, %v9075_v10 }
 0x295   : > { %v1413_v46 = vsel %vm1412_vm4, %v1403_v57, %v1411_v13  ;;  %v1344_v28 = vpop.permute.xlu1 %1343  ;;  %v1490_v52 = vpop.permute.xlu0 %1489  ;;  %v1415_v35 = vsel %vm1412_vm4, %v1405_v3, %v1414_v44  ;;  %v9084_v3 = vld [vmem:[#allocation48_spill] sm:$0xff]  ;;  %v7226_v13 = vrot.slane %v7213_v39, %v9076_v36 }
 0x296   : > { %v1347_v17 = vrot.slane %v1344_v28, 4  ;;  %v1494_v8 = vrot.slane %v1490_v52, 4  ;;  %v5151_v50 = vcombine.high %v1350_v23, %v1413_v46  ;;  %v5150_v37 = vcombine.low %v1350_v23, %v1413_v46  ;;  %v9086_v23 = vld [vmem:[#allocation42_spill] sm:$0xff] }
 0x297   : > { %3465 = vrot.lane.b32.xlu1 %v7163_v6, %s9077_s19  ;;  %3644 = vrot.lane.b32.xlu0 %v7188_v14, %s9083_s0  ;;  %v1621_v46 = vrot.slane %v9086_v23, 4 }
 0x298   : > { %v1351_v34 = vsel %vm657_vm8, %v1346_v11, %v1347_v17  ;;  %v1499_v7 = vsel %vm657_vm8, %v1494_v8, %v1495_v62  ;;  %1822 = vmatprep.subr.bf16.mxu0 %v5151_v50 }
 0x299   : > { %v1500_v20 = vsel %vm1370_vm3, %v1490_v52, %v1499_v7  ;;  %v1488_v43 = vpop.permute.xlu1 %1487  ;;  %1823 = vmatpush1.bf16.msra.mxu0 %v5150_v37  ;;  %v1551_v49 = vpop.permute.xlu0 %1550  ;;  %v1352_v55 = vsel %vm1349_vm5, %v7122_v16, %v1351_v34  ;;  %v7242_v37 = vrot.slane %v7213_v39, %v9079_v18  ;;  %v1684_v34 = vrot.slane %v7020_v56, 4 }
 0x29a   : > { %v1493_v48 = vrot.slane %v1488_v43, 4  ;;  %v5153_v24 = vcombine.high %v1352_v55, %v1415_v35  ;;  %v5152_v47 = vcombine.low %v1352_v55, %v1415_v35  ;;  %v5157_v25 = vcombine.high %v9084_v3, %v1500_v20 }
 0x29b   : > { %3520 = vrot.lane.b32.xlu1 %v7182_v40, %s9078_s18  ;;  %v5156_v31 = vcombine.low %v9084_v3, %v1500_v20  ;;  %3648 = vrot.lane.b32.xlu0 %v7206_v0, %s9083_s0  ;;  %v1556_v62 = vrot.slane %v1551_v49, 4 }
 0x29c   : > { %v1496_v16 = vsel %vm657_vm8, %v1493_v48, %v1494_v8  ;;  %1863 = vmatprep.subr.bf16.mxu1 %v5153_v24 }
 0x29d   : > { %v1498_v27 = vsel %vm1370_vm3, %v1488_v43, %v1496_v16  ;;  %v1553_v5 = vpop.permute.xlu1 %1552  ;;  %1864 = vmatpush1.bf16.msra.mxu1 %v5152_v47  ;;  %v1614_v11 = vpop.permute.xlu0 %1613  ;;  %v7249_v43 = vrot.slane %v7176_v15, %v9075_v10 }
 0x29e   : > { %v1557_v57 = vrot.slane %v1553_v5, 4  ;;  %1865 = vmatprep.subr.bf16.mxu1 %v5157_v25  ;;  %v5155_v32 = vcombine.high %v9085_v29, %v1498_v27  ;;  %v5154_v58 = vcombine.low %v9085_v29, %v1498_v27  ;;  %v1619_v17 = vrot.slane %v1614_v11, 4  ;;  %v7257_v27 = vld [vmem:[#allocation7 + $0x6] ss:$8 sm:$0xf] }
 0x29f   : > { %3524 = vrot.lane.b32.xlu1 %v7200_v63, %s9078_s18  ;;  %3727 = vrot.lane.b32.xlu0 %v7226_v13, %s8991_s13 }
 0x2a0   : > { %1824 = vmatprep.subr.bf16.mxu0 %v5155_v32  ;;  %v1562_v52 = vsel %vm657_vm8, %v1557_v57, %v1558_v12  ;;  %v1559_v50 = vsel %vm657_vm8, %v1556_v62, %v1557_v57 }
 0x2a1   : > { %v1616_v44 = vpop.permute.xlu1 %1615  ;;  %1825 = vmatpush1.bf16.msra.mxu0 %v5154_v58  ;;  %1866 = vmatpush1.bf16.msra.mxu1 %v5156_v31  ;;  %v1677_v28 = vpop.permute.xlu0 %1676  ;;  %v1563_v38 = vsel %vm8885_vm2, %v1553_v5, %v1562_v52  ;;  %v1561_v24 = vsel %vm8885_vm2, %v1551_v49, %v1559_v50  ;;  %v7265_v5 = vrot.slane %v7257_v27, %v9076_v36 }
 0x2a2   : > { %v1620_v8 = vrot.slane %v1616_v44, 4  ;;  %v1682_v56 = vrot.slane %v1677_v28, 4 }
 0x2a3   : > { %3581 = vrot.lane.b32.xlu1 %v7220_v60, %s9081_s20  ;;  %3731 = vrot.lane.b32.xlu0 %v7242_v37, %s8991_s13 }
 0x2a4   : > { %v1625_v7 = vsel %vm657_vm8, %v1620_v8, %v1621_v46  ;;  %v1622_v20 = vsel %vm657_vm8, %v1619_v17, %v1620_v8  ;;  %v7281_v8 = vrot.slane %v7257_v27, %v9079_v18 }
 0x2a5   : > { %v1626_v55 = vsel %vm1244_vm1, %v1616_v44, %v1625_v7  ;;  %v1679_v35 = vpop.permute.xlu1 %1678  ;;  %v7253_v48 = vpop.permute.xlu0 %650  ;;  %v1624_v47 = vsel %vm1244_vm1, %v1614_v11, %v1622_v20  ;;  %v7273_v44 = vrot.slane %v7176_v15, %v9080_v9  ;;  %v5145_v20 = vld [vmem:[%s9087_s4 + $0x4] sm:$0xf] }
 0x2a6   : > { %v1683_v16 = vrot.slane %v1679_v35, 4  ;;  %v5159_v3 = vcombine.high %v1561_v24, %v1624_v47  ;;  %v5161_v25 = vcombine.high %v1563_v38, %v1626_v55  ;;  %v5158_v57 = vcombine.low %v1561_v24, %v1624_v47  ;;  %v7292_v47 = vld [vmem:[#allocation7 + $0x7] ss:$8 sm:$0xf] }
 0x2a7   : > { %v5160_v29 = vcombine.low %v1563_v38, %v1626_v55  ;;  %3585 = vrot.lane.b32.xlu1 %v7236_v33, %s9081_s20  ;;  %3788 = vrot.lane.b32.xlu0 %v7265_v5, %s8990_s27 }
 0x2a8   : > { %v1685_v49 = vsel %vm657_vm8, %v1682_v56, %v1683_v16  ;;  %v1688_v11 = vsel %vm657_vm8, %v1683_v16, %v1684_v34  ;;  %1826 = vmatprep.subr.bf16.mxu0 %v5159_v3  ;;  %1867 = vmatprep.subr.bf16.mxu1 %v5161_v25  ;;  %v7298_v56 = vrot.slane %v7213_v39, %v9075_v10 }
 0x2a9   : > { %v1689_v32 = vsel %vm8884_vm0, %v1679_v35, %v1688_v11  ;;  %v649_v58 = vpop.permute.xlu1 %648  ;;  %1827 = vmatpush1.bf16.msra.mxu0 %v5158_v57  ;;  %1868 = vmatpush1.bf16.msra.mxu1 %v5160_v29  ;;  %v715_v31 = vpop.permute.xlu0 %714  ;;  %v1687_v12 = vsel %vm8884_vm0, %v1677_v28, %v1685_v49  ;;  %v655_v28 = vrot.slane %v7253_v48, 4  ;;  %v7304_v16 = vrot.slane %v7292_v47, %v9076_v36 }
 0x2aa   : > { %v5165_v62 = vcombine.high %v1689_v32, %v1689_v32  ;;  %v654_v23 = vrot.slane %v649_v58, 4  ;;  %v5163_v46 = vcombine.high %v1687_v12, %v1687_v12  ;;  %v5162_v52 = vcombine.low %v1687_v12, %v1687_v12 }
 0x2ab   : > { %v5164_v17 = vcombine.low %v1689_v32, %v1689_v32  ;;  %3642 = vrot.lane.b32.xlu1 %v7249_v43, %s9083_s0  ;;  %v719_v55 = vrot.slane %v715_v31, 4  ;;  %3792 = vrot.lane.b32.xlu0 %v7281_v8, %s8990_s27 }
 0x2ac   : > { %5166 = vmatprep.subr.msk.bf16.mxu0 %vm657_vm8, %v5163_v46  ;;  %5168 = vmatprep.subr.msk.bf16.mxu1 %vm657_vm8, %v5165_v62  ;;  %v1809_v50 = vsel %vm657_vm8, %v5162_v52, 0  ;;  %v658_v38 = vsel %vm657_vm8, %v654_v23, %v655_v28  ;;  %v9088_v23 = vmov 0   ;;  %v7326_v46 = vrot.slane %v7292_v47, %v9079_v18 }
 0x2ad   : > { %v713_v15 = vpop.permute.xlu1 %712  ;;  %v1815_v34 = vsel %vm657_vm8, %v5164_v17, 0  ;;  %v717_v7 = vpop.permute.xlu0 %716  ;;  %1829 = vmatpush1.bf16.msra.mxu0 %v1809_v50  ;;  %v660_v25 = vsel %vm659_vm15, %v649_v58, %v658_v38  ;;  %v7320_v58 = vrot.slane %v7213_v39, %v9080_v9  ;;  %v7332_v38 = vld [vmem:[#allocation7 + $0x20] ss:$8 sm:$0xf] }
 0x2ae   : > { %v718_v35 = vrot.slane %v713_v15, 4  ;;  %1870 = vmatpush1.bf16.msra.mxu1 %v1815_v34  ;;  %v720_v24 = vrot.slane %v717_v7, 4 }
 0x2af   : > { %3646 = vrot.lane.b32.xlu1 %v7273_v44, %s9083_s0  ;;  %3849 = vrot.lane.b32.xlu0 %v7304_v16, %s8979_s11 }
 0x2b0   : > { %v721_v3 = vsel %vm657_vm8, %v718_v35, %v719_v55  ;;  %5167 = vmatmul.mubr.msk.bf16.vlgmr.msra.gmra.mrb[0].mxu0 %vm722_vm14, %v5145_v20  ;;  %v724_v32 = vsel %vm657_vm8, %v719_v55, %v720_v24 }
 0x2b1   : > { %v723_v57 = vsel %vm722_vm14, %v713_v15, %v721_v3  ;;  %v653_v29 = vpop.permute.xlu1 %652  ;;  %v7309_v49 = vpop.permute.xlu0 %777  ;;  %5169 = vmatmul.mubr.msk.bf16.vlgmr.msra.gmra.mrb[0].mxu1 %vm722_vm14, %v5145_v20  ;;  %2039 = vmatprep.mubr.bf16.mxu0 %v9088_v23  ;;  %v725_v34 = vsel %vm722_vm14, %v715_v31, %v724_v32  ;;  %v886_v32 = vrot.slane %v7074_v19, 4 }
 0x2b2   : > { %v5170_v11 = vcombine.low %v660_v25, %v723_v57  ;;  %v656_v12 = vrot.slane %v653_v29, 4  ;;  %v5171_v62 = vcombine.high %v660_v25, %v723_v57  ;;  %2080 = vmatprep.mubr.bf16.mxu1 %v9088_v23  ;;  %v782_v31 = vrot.slane %v7309_v49, 4 }
 0x2b3   : > { %3725 = vrot.lane.b32.xlu1 %v7298_v56, %s8991_s13  ;;  %3853 = vrot.lane.b32.xlu0 %v7326_v46, %s8979_s11  ;;  %v7352_v29 = vrot.slane %v7257_v27, %v9080_v9 }
 0x2b4   : > { %v661_v52 = vsel %vm657_vm8, %v655_v28, %v656_v12  ;;  %2007 = vmatprep.subr.bf16.mxu0 %v5171_v62  ;;  %v7338_v28 = vrot.slane %v7257_v27, %v9075_v10  ;;  %v887_v62 = vrot.slane %v7084_v53, 4 }
 0x2b5   : > { %v776_v17 = vpop.permute.xlu1 %775  ;;  %2008 = vmatpush1.bf16.msra.mxu0 %v5170_v11  ;;  %v841_v15 = vpop.permute.xlu0 %840  ;;  %v662_v50 = vsel %vm659_vm15, %v7253_v48, %v661_v52  ;;  %v7344_v48 = vrot.slane %v7332_v38, %v9076_v36  ;;  %v7358_v36 = vrot.slane %v7332_v38, %v9079_v18  ;;  %v885_v11 = vrot.slane %v7072_v22, 4 }
 0x2b6   : > { %v781_v39 = vrot.slane %v776_v17, 4  ;;  %v5172_v7 = vcombine.low %v662_v50, %v725_v34  ;;  %v5173_v20 = vcombine.high %v662_v50, %v725_v34  ;;  %v845_v3 = vrot.slane %v841_v15, 4 }
 0x2b7   : > { %3729 = vrot.lane.b32.xlu1 %v7320_v58, %s8991_s13  ;;  %3910 = vrot.lane.b32.xlu0 %v7344_v48, %s9089_s1  ;;  %9090 = vst [vmem:[#allocation39_spill] sm:$0xff] %v7358_v36 }
 0x2b8   : > { %2048 = vmatprep.subr.bf16.mxu1 %v5173_v20  ;;  %v784_v24 = vsel %vm657_vm8, %v781_v39, %v782_v31 }
 0x2b9   : > { %v839_v55 = vpop.permute.xlu1 %838  ;;  %2049 = vmatpush1.bf16.msra.mxu1 %v5172_v7  ;;  %v843_v35 = vpop.permute.xlu0 %842  ;;  %v786_v52 = vsel %vm785_vm13, %v776_v17, %v784_v24  ;;  %v888_v17 = vsel %vm657_vm8, %v885_v11, %v886_v32 }
 0x2ba   : > { %v844_v25 = vrot.slane %v839_v55, 4  ;;  %v846_v57 = vrot.slane %v843_v35, 4  ;;  %v7371_v35 = vrot.slane %v7292_v47, %v9075_v10 }
 0x2bb   : > { %3786 = vrot.lane.b32.xlu1 %v7338_v28, %s8990_s27  ;;  %3914 = vrot.lane.b32.xlu0 %v7358_v36, %s9089_s1 }
 0x2bc   : > { %v847_v12 = vsel %vm657_vm8, %v844_v25, %v845_v3  ;;  %v850_v7 = vsel %vm657_vm8, %v845_v3, %v846_v57 }
 0x2bd   : > { %v849_v27 = vsel %vm848_vm12, %v839_v55, %v847_v12  ;;  %v780_v50 = vpop.permute.xlu1 %779  ;;  %v945_v34 = vpop.permute.xlu0 %944  ;;  %v891_v55 = vsel %vm657_vm8, %v886_v32, %v887_v62  ;;  %v851_v12 = vsel %vm848_vm12, %v841_v15, %v850_v7  ;;  %v890_v15 = vsel %vm8857_vm7, %v7072_v22, %v888_v17 }
 0x2be   : > { %v5174_v39 = vcombine.low %v786_v52, %v849_v27  ;;  %v783_v20 = vrot.slane %v780_v50, 4  ;;  %v5175_v18 = vcombine.high %v786_v52, %v849_v27  ;;  %v949_v24 = vrot.slane %v945_v34, 4 }
 0x2bf   : > { %3790 = vrot.lane.b32.xlu1 %v7352_v29, %s8990_s27  ;;  %2914 = vrot.lane.b32.xlu0 %v7134_v41, %s9037_s21  ;;  %v7401_v22 = vrot.slane %v7332_v38, %v9075_v10  ;;  %v7410_v10 = vrot.slane %v7332_v38, %v9080_v9 }
 0x2c0   : > { %v787_v53 = vsel %vm657_vm8, %v782_v31, %v783_v20  ;;  %2009 = vmatprep.subr.bf16.mxu0 %v5175_v18  ;;  %v7385_v31 = vrot.slane %v7292_v47, %v9080_v9  ;;  %v892_v47 = vsel %vm8857_vm7, %v7074_v19, %v891_v55 }
 0x2c1   : > { %v943_v3 = vpop.permute.xlu1 %942  ;;  %2010 = vmatpush1.bf16.msra.mxu0 %v5174_v39  ;;  %v947_v25 = vpop.permute.xlu0 %946  ;;  %v788_v57 = vsel %vm785_vm13, %v7309_v49, %v787_v53 }
 0x2c2   : > { %v948_v52 = vrot.slane %v943_v3, 4  ;;  %v950_v27 = vrot.slane %v947_v25, 4  ;;  %v5176_v50 = vcombine.low %v788_v57, %v851_v12  ;;  %v5177_v36 = vcombine.high %v788_v57, %v851_v12 }
 0x2c3   : > { %3847 = vrot.lane.b32.xlu1 %v7371_v35, %s8979_s11  ;;  %2918 = vrot.lane.b32.xlu0 %v7163_v6, %s9037_s21 }
 0x2c4   : > { %v951_v11 = vsel %vm657_vm8, %v948_v52, %v949_v24  ;;  %v954_v49 = vsel %vm657_vm8, %v949_v24, %v950_v27  ;;  %2050 = vmatprep.subr.bf16.mxu1 %v5177_v36 }
 0x2c5   : > { %v953_v32 = vsel %vm806_vm11, %v943_v3, %v951_v11  ;;  %v1006_v62 = vpop.permute.xlu1 %1005  ;;  %2051 = vmatpush1.bf16.msra.mxu1 %v5176_v50  ;;  %v1008_v39 = vpop.permute.xlu0 %1007  ;;  %v955_v7 = vsel %vm806_vm11, %v945_v34, %v954_v49 }
 0x2c6   : > { %v5178_v20 = vcombine.low %v890_v15, %v953_v32  ;;  %v1011_v41 = vrot.slane %v1006_v62, 4  ;;  %v1012_v18 = vrot.slane %v1008_v39, 4  ;;  %v5179_v53 = vcombine.high %v890_v15, %v953_v32 }
 0x2c7   : > { %v5180_v25 = vcombine.low %v892_v47, %v955_v7  ;;  %v5181_v24 = vcombine.high %v892_v47, %v955_v7  ;;  %3851 = vrot.lane.b32.xlu1 %v7385_v31, %s8979_s11  ;;  %2975 = vrot.lane.b32.xlu0 %v7128_v51, %s9091_s2 }
 0x2c8   : > { %2011 = vmatprep.subr.bf16.mxu0 %v5179_v53  ;;  %v1014_v55 = vsel %vm657_vm8, %v1011_v41, %v1012_v18 }
 0x2c9   : > { %2052 = vmatprep.subr.bf16.mxu1 %v5181_v24  ;;  %v1069_v19 = vpop.permute.xlu1 %1068  ;;  %2012 = vmatpush1.bf16.msra.mxu0 %v5178_v20  ;;  %v1071_v36 = vpop.permute.xlu0 %1070  ;;  %v1016_v12 = vsel %vm743_vm10, %v1006_v62, %v1014_v55 }
 0x2ca   : > { %v1074_v34 = vrot.slane %v1069_v19, 4  ;;  %2053 = vmatpush1.bf16.msra.mxu1 %v5180_v25  ;;  %v1075_v17 = vrot.slane %v1071_v36, 4 }
 0x2cb   : > { %3908 = vrot.lane.b32.xlu1 %v7401_v22, %s9089_s1  ;;  %2979 = vrot.lane.b32.xlu0 %v7140_v61, %s9091_s2 }
 0x2cc   : > { %v1077_v6 = vsel %vm657_vm8, %v1074_v34, %v1075_v17 }
 0x2cd   : > { %v1010_v3 = vpop.permute.xlu1 %1009  ;;  %v1073_v57 = vpop.permute.xlu0 %1072  ;;  %v1079_v52 = vsel %vm680_vm9, %v1069_v19, %v1077_v6 }
 0x2ce   : > { %v1013_v27 = vrot.slane %v1010_v3, 4  ;;  %v1076_v50 = vrot.slane %v1073_v57, 4  ;;  %v5182_v11 = vcombine.low %v1016_v12, %v1079_v52  ;;  %v5183_v49 = vcombine.high %v1016_v12, %v1079_v52  ;;  %v9093_v52 = vld [vmem:[#allocation43_spill] sm:$0xff] }
 0x2cf   : > { %3912 = vrot.lane.b32.xlu1 %v7410_v10, %s9089_s1  ;;  %3036 = vrot.lane.b32.xlu0 %v7156_v26, %s9032_s30 }
 0x2d0   : > { %v1017_v51 = vsel %vm657_vm8, %v1012_v18, %v1013_v27  ;;  %v1080_v9 = vsel %vm657_vm8, %v1075_v17, %v1076_v50  ;;  %2013 = vmatprep.subr.bf16.mxu0 %v5183_v49  ;;  %v1149_v17 = vld [vmem:[%s9087_s4] sm:$0xf]  ;;  %v2170_v27 = vrot.slane %v9093_v52, 4 }
 0x2d1   : > { %v1132_v38 = vpop.permute.xlu1 %1131  ;;  %2014 = vmatpush1.bf16.msra.mxu0 %v5182_v11  ;;  %v1134_v15 = vpop.permute.xlu0 %1133  ;;  %v1018_v32 = vsel %vm743_vm10, %v1008_v39, %v1017_v51  ;;  %v1081_v62 = vsel %vm680_vm9, %v1071_v36, %v1080_v9 }
 0x2d2   : > { %v1137_v47 = vrot.slane %v1132_v38, 4  ;;  %v1138_v7 = vrot.slane %v1134_v15, 4  ;;  %v5184_v20 = vcombine.low %v1018_v32, %v1081_v62  ;;  %v5185_v41 = vcombine.high %v1018_v32, %v1081_v62 }
 0x2d3   : > { %2912 = vrot.lane.b32.xlu1 %v7117_v2, %s9037_s21  ;;  %3040 = vrot.lane.b32.xlu0 %v7169_v21, %s9032_s30  ;;  %v2125_v21 = vrot.slane %v7027_v54, 4 }
 0x2d4   : > { %v1140_v61 = vsel %vm657_vm8, %v1137_v47, %v1138_v7  ;;  %2054 = vmatprep.subr.bf16.mxu1 %v5185_v41 }
 0x2d5   : > { %v1136_v18 = vpop.permute.xlu1 %1135  ;;  %2055 = vmatpush1.bf16.msra.mxu1 %v5184_v20  ;;  %v2118_v53 = vpop.permute.xlu0 %2117  ;;  %v1142_v39 = vsel %vm9092_vm6, %v1132_v38, %v1140_v61 }
 0x2d6   : > { %v1139_v25 = vrot.slane %v1136_v18, 4  ;;  %v5187_v24 = vcombine.high %v1142_v39, %v1142_v39  ;;  %v5186_v19 = vcombine.low %v1142_v39, %v1142_v39  ;;  %v2123_v57 = vrot.slane %v2118_v53, 4 }
 0x2d7   : > { %2916 = vrot.lane.b32.xlu1 %v7150_v42, %s9037_s21  ;;  %3097 = vrot.lane.b32.xlu0 %v7188_v14, %s9030_s26  ;;  %v2215_v39 = vrot.slane %v7034_v4, 4 }
 0x2d8   : > { %v1143_v2 = vsel %vm657_vm8, %v1138_v7, %v1139_v25  ;;  %5190 = vmatprep.subr.msk.bf16.mxu0 %vm657_vm8, %v5187_v24  ;;  %v1996_v26 = vsel %vm657_vm8, %v5186_v19, 0  ;;  %v2299_v25 = vrot.slane %v7097_v45, 4  ;;  %v9094_v19 = vld [vmem:[#allocation44_spill] sm:$0xff] }
 0x2d9   : > { %v2120_v36 = vpop.permute.xlu1 %2119  ;;  %2016 = vmatpush1.bf16.msra.mxu0 %v1996_v26  ;;  %v2163_v34 = vpop.permute.xlu0 %2162  ;;  %v1144_v55 = vsel %vm9092_vm6, %v1134_v15, %v1143_v2  ;;  %v2260_v2 = vrot.slane %v9094_v19, 4  ;;  %v2298_v26 = vrot.slane %v7086_v30, 4 }
 0x2da   : > { %v2124_v6 = vrot.slane %v2120_v36, 4  ;;  %v5189_v42 = vcombine.high %v1144_v55, %v1144_v55  ;;  %v5188_v3 = vcombine.low %v1144_v55, %v1144_v55  ;;  %v2168_v49 = vrot.slane %v2163_v34, 4 }
 0x2db   : > { %2973 = vrot.lane.b32.xlu1 %v7182_v40, %s9091_s2 }
 0x2dc   : > { %5191 = vmatmul.mubr.msk.bf16.vlgmr.msra.gmra.mrb[4].mxu0 %vm722_vm14, %v1149_v17  ;;  %5192 = vmatprep.subr.msk.bf16.mxu1 %vm657_vm8, %v5189_v42  ;;  %v2002_v12 = vsel %vm657_vm8, %v5188_v3, 0  ;;  %v2128_v40 = vsel %vm657_vm8, %v2124_v6, %v2125_v21  ;;  %v2126_v54 = vsel %vm657_vm8, %v2123_v57, %v2124_v6  ;;  %v2301_v57 = vsel %vm657_vm8, %v2298_v26, %v2299_v25 }
 0x2dd   : > { %v2165_v50 = vpop.permute.xlu1 %2164  ;;  %2057 = vmatpush1.bf16.msra.mxu1 %v2002_v12  ;;  %v2208_v11 = vpop.permute.xlu0 %2207  ;;  %2646 = vmatprep.mubr.bf16.mxu0 %v9088_v23  ;;  %v2129_v38 = vsel %vm659_vm15, %v2120_v36, %v2128_v40  ;;  %v2127_v47 = vsel %vm659_vm15, %v2118_v53, %v2126_v54  ;;  %v2300_v53 = vrot.slane %v7044_v1, 4 }
 0x2de   : > { %v2169_v14 = vrot.slane %v2165_v50, 4  ;;  %v2213_v24 = vrot.slane %v2208_v11, 4 }
 0x2df   : > { %2977 = vrot.lane.b32.xlu1 %v7200_v63, %s9091_s2  ;;  %v2303_v1 = vsel %vm657_vm8, %v2299_v25, %v2300_v53 }
 0x2e0   : > { %v2173_v51 = vsel %vm657_vm8, %v2169_v14, %v2170_v27  ;;  %5193 = vmatmul.mubr.msk.bf16.vlgmr.msra.gmra.mrb[4].mxu1 %vm722_vm14, %v1149_v17  ;;  %v2171_v9 = vsel %vm657_vm8, %v2168_v49, %v2169_v14 }
 0x2e1   : > { %v2174_v15 = vsel %vm722_vm14, %v2165_v50, %v2173_v51  ;;  %v2210_v32 = vpop.permute.xlu1 %2209  ;;  %v2253_v62 = vpop.permute.xlu0 %2252  ;;  %v2172_v7 = vsel %vm722_vm14, %v2163_v34, %v2171_v9  ;;  %2687 = vmatprep.mubr.bf16.mxu1 %v9088_v23 }
 0x2e2   : > { %v5224_v20 = vcombine.low %v2129_v38, %v2174_v15  ;;  %v2214_v63 = vrot.slane %v2210_v32, 4  ;;  %v5222_v41 = vcombine.low %v2127_v47, %v2172_v7  ;;  %v5223_v61 = vcombine.high %v2127_v47, %v2172_v7 }
 0x2e3   : > { %v5225_v18 = vcombine.high %v2129_v38, %v2174_v15  ;;  %3034 = vrot.lane.b32.xlu1 %v7220_v60, %s9032_s30  ;;  %v2258_v55 = vrot.slane %v2253_v62, 4  ;;  %v9095_v60 = vld [vmem:[#allocation45_spill] sm:$0xff]  ;;  %v2304_v15 = vsel %vm8857_vm7, %v7097_v45, %v2303_v1 }
 0x2e4   : > { %2614 = vmatprep.subr.bf16.mxu0 %v5223_v61  ;;  %v2218_v17 = vsel %vm657_vm8, %v2214_v63, %v2215_v39  ;;  %v2216_v4 = vsel %vm657_vm8, %v2213_v24, %v2214_v63  ;;  %v2345_v42 = vrot.slane %v9095_v60, 4  ;;  %v2390_v61 = vrot.slane %v7062_v59, 4 }
 0x2e5   : > { %2655 = vmatprep.subr.bf16.mxu1 %v5225_v18  ;;  %v2255_v36 = vpop.permute.xlu1 %2254  ;;  %v2338_v34 = vpop.permute.xlu0 %2337  ;;  %2615 = vmatpush1.bf16.msra.mxu0 %v5222_v41  ;;  %v2219_v12 = vsel %vm785_vm13, %v2210_v32, %v2218_v17  ;;  %v2217_v40 = vsel %vm785_vm13, %v2208_v11, %v2216_v4 }
 0x2e6   : > { %v2259_v6 = vrot.slane %v2255_v36, 4  ;;  %2656 = vmatpush1.bf16.msra.mxu1 %v5224_v20  ;;  %v2302_v20 = vsel %vm8857_vm7, %v7086_v30, %v2301_v57  ;;  %vm9097_vm7 = vmmov %vm9092_vm6 }
 0x2e7   : > { %3038 = vrot.lane.b32.xlu1 %v7236_v33, %s9032_s30  ;;  %v2343_v33 = vrot.slane %v2338_v34, 4 }
 0x2e8   : > { %v2263_v3 = vsel %vm657_vm8, %v2259_v6, %v2260_v2  ;;  %v2261_v21 = vsel %vm657_vm8, %v2258_v55, %v2259_v6  ;;  %v9096_v2 = vld [vmem:[#allocation46_spill] sm:$0xff] }
 0x2e9   : > { %v2264_v52 = vsel %vm848_vm12, %v2255_v36, %v2263_v3  ;;  %v2340_v27 = vpop.permute.xlu1 %2339  ;;  %v2383_v50 = vpop.permute.xlu0 %2382  ;;  %v2262_v49 = vsel %vm848_vm12, %v2253_v62, %v2261_v21  ;;  %v2435_v53 = vrot.slane %v9096_v2, 4 }
 0x2ea   : > { %v5228_v14 = vcombine.low %v2219_v12, %v2264_v52  ;;  %v2344_v54 = vrot.slane %v2340_v27, 4  ;;  %v5226_v51 = vcombine.low %v2217_v40, %v2262_v49  ;;  %v5227_v9 = vcombine.high %v2217_v40, %v2262_v49 }
 0x2eb   : > { %v5229_v38 = vcombine.high %v2219_v12, %v2264_v52  ;;  %3095 = vrot.lane.b32.xlu1 %v7249_v43, %s9030_s26  ;;  %v2388_v25 = vrot.slane %v2383_v50, 4 }
 0x2ec   : > { %v2348_v32 = vsel %vm657_vm8, %v2344_v54, %v2345_v42  ;;  %v2346_v47 = vsel %vm657_vm8, %v2343_v33, %v2344_v54  ;;  %2616 = vmatprep.subr.bf16.mxu0 %v5227_v9 }
 0x2ed   : > { %v2349_v11 = vsel %vm806_vm11, %v2340_v27, %v2348_v32  ;;  %2657 = vmatprep.subr.bf16.mxu1 %v5229_v38  ;;  %v2385_v62 = vpop.permute.xlu1 %2384  ;;  %v2428_v7 = vpop.permute.xlu0 %2427  ;;  %v2347_v63 = vsel %vm806_vm11, %v2338_v34, %v2346_v47  ;;  %2617 = vmatpush1.bf16.msra.mxu0 %v5226_v51  ;;  %v5221_v32 = vld [vmem:[%s9087_s4 + $0x8] sm:$0xf] }
 0x2ee   : > { %v5232_v41 = vcombine.low %v2304_v15, %v2349_v11  ;;  %v2389_v43 = vrot.slane %v2385_v62, 4  ;;  %2658 = vmatpush1.bf16.msra.mxu1 %v5228_v14  ;;  %v5230_v45 = vcombine.low %v2302_v20, %v2347_v63  ;;  %v5231_v18 = vcombine.high %v2302_v20, %v2347_v63 }
 0x2ef   : > { %v5233_v39 = vcombine.high %v2304_v15, %v2349_v11  ;;  %3099 = vrot.lane.b32.xlu1 %v7273_v44, %s9030_s26  ;;  %v2433_v26 = vrot.slane %v2428_v7, 4 }
 0x2f0   : > { %v2393_v24 = vsel %vm657_vm8, %v2389_v43, %v2390_v61  ;;  %2618 = vmatprep.subr.bf16.mxu0 %v5231_v18  ;;  %v2391_v59 = vsel %vm657_vm8, %v2388_v25, %v2389_v43 }
 0x2f1   : > { %2659 = vmatprep.subr.bf16.mxu1 %v5233_v39  ;;  %v2430_v30 = vpop.permute.xlu1 %2429  ;;  %v2473_v19 = vpop.permute.xlu0 %2472  ;;  %2619 = vmatpush1.bf16.msra.mxu0 %v5230_v45  ;;  %v2394_v34 = vsel %vm743_vm10, %v2385_v62, %v2393_v24  ;;  %v2392_v42 = vsel %vm743_vm10, %v2383_v50, %v2391_v59 }
 0x2f2   : > { %v2434_v36 = vrot.slane %v2430_v30, 4  ;;  %2660 = vmatpush1.bf16.msra.mxu1 %v5232_v41  ;;  %v2478_v6 = vrot.slane %v2473_v19, 4 }
 0x2f4   : > { %v2438_v17 = vsel %vm657_vm8, %v2434_v36, %v2435_v53  ;;  %v2436_v44 = vsel %vm657_vm8, %v2433_v26, %v2434_v36 }
 0x2f5   : > { %v2439_v55 = vsel %vm680_vm9, %v2430_v30, %v2438_v17  ;;  %v2475_v4 = vpop.permute.xlu1 %2474  ;;  %v2477_v60 = vpop.permute.xlu0 %2476  ;;  %v2437_v1 = vsel %vm680_vm9, %v2428_v7, %v2436_v44 }
 0x2f6   : > { %v5236_v3 = vcombine.low %v2394_v34, %v2439_v55  ;;  %v2479_v21 = vrot.slane %v2475_v4, 4  ;;  %v2480_v57 = vrot.slane %v2477_v60, 4  ;;  %v5234_v12 = vcombine.low %v2392_v42, %v2437_v1 }
 0x2f7   : > { %v5235_v52 = vcombine.high %v2392_v42, %v2437_v1  ;;  %v5237_v27 = vcombine.high %v2394_v34, %v2439_v55 }
 0x2f8   : > { %v2481_v40 = vsel %vm657_vm8, %v2478_v6, %v2479_v21  ;;  %v2483_v49 = vsel %vm657_vm8, %v2479_v21, %v2480_v57 }
 0x2f9   : > { %2620 = vmatprep.subr.bf16.mxu0 %v5235_v52  ;;  %2661 = vmatprep.subr.bf16.mxu1 %v5237_v27  ;;  %v2482_v14 = vsel %vm9092_vm6, %v2473_v19, %v2481_v40  ;;  %v2484_v33 = vsel %vm9097_vm7, %v2475_v4, %v2483_v49  ;;  %v7521_v45 = vpop.permute.xlu0 %3522  ;;  %vm9144_vm7 = vcmask 64512  }
 0x2fa   : > { %2621 = vmatpush1.bf16.msra.mxu0 %v5234_v12  ;;  %2662 = vmatpush1.bf16.msra.mxu1 %v5236_v3  ;;  %v5239_v50 = vcombine.high %v2482_v14, %v2482_v14  ;;  %v5241_v54 = vcombine.high %v2484_v33, %v2484_v33  ;;  %v5238_v51 = vcombine.low %v2482_v14, %v2482_v14  ;;  %vm9145_vm6 = vmmov %vm9144_vm7 }
 0x2fb   : > { %v5240_v9 = vcombine.low %v2484_v33, %v2484_v33 }
 0x2fc   : > { %5242 = vmatprep.subr.msk.bf16.mxu0 %vm657_vm8, %v5239_v50  ;;  %5244 = vmatprep.subr.msk.bf16.mxu1 %vm657_vm8, %v5241_v54  ;;  %v2603_v38 = vsel %vm657_vm8, %v5238_v51, 0 }
 0x2fd   : > { %v2609_v15 = vsel %vm657_vm8, %v5240_v9, 0  ;;  %v7523_v18 = vpop.permute.xlu0 %3526 }
 0x2fe   : > { %2623 = vmatpush1.bf16.msra.mxu0 %v2603_v38  ;;  %2664 = vmatpush1.bf16.msra.mxu1 %v2609_v15 }
 0x301   : > { %5243 = vmatmul.mubr.msk.bf16.vlgmr.msra.gmra.mrb[8].mxu0 %vm722_vm14, %v5221_v32  ;;  %5245 = vmatmul.mubr.msk.bf16.vlgmr.msra.gmra.mrb[8].mxu1 %vm722_vm14, %v5221_v32  ;;  %v7525_v34 = vpop.permute.xlu0 %3583 }
 0x302   : > { %4121 = vmatprep.mubr.bf16.mxu0 %v9088_v23  ;;  %4162 = vmatprep.mubr.bf16.mxu1 %v9088_v23 }
 0x305   : > { %v7527_v44 = vpop.permute.xlu0 %3587 }
 0x306   : > { %v2703_v60 = vpop.permute.xlu1 %2702 }
 0x309   : > { %v7529_v55 = vpop.permute.xlu0 %3644 }
 0x30a   : > { %v7535_v42 = vpop.permute.xlu1 %3459 }
 0x30d   : > { %v7531_v6 = vpop.permute.xlu0 %3648 }
 0x311   : > { %v7533_v4 = vpop.permute.xlu0 %3727 }
 0x315   : > { %v7537_v1 = vpop.permute.xlu0 %3731 }
 0x319   : > { %v7547_v32 = vpop.permute.xlu0 %3788 }
 0x383   : > { %v1854_v47 = vpop.f32.mrb[0].mxu0 }
 0x384   : > { %v1895_v11 = vpop.f32.mrb[0].mxu1  ;;  %v1856_v62 = vpop.f32.mrb[1].mxu0 }
 0x385   : > { %v1897_v7 = vpop.f32.mrb[1].mxu1  ;;  %v1858_v20 = vpop.f32.mrb[2].mxu0 }
 0x386   : > { %v1899_v63 = vpop.f32.mrb[2].mxu1  ;;  %v1859_v41 = vpop.f32.mrb[3].mxu0 }
 0x387   : > { %v1900_v43 = vpop.f32.mrb[3].mxu1 }
 0x3af   : > { %v2041_v61 = vpop.f32.mrb[4].mxu0 }
 0x3b0   : > { %v2042_v39 = vadd.f32 %v2041_v61, %v1854_v47  ;;  %v2043_v25 = vpop.f32.mrb[5].mxu0 }
 0x3b1   : > { %v2044_v24 = vadd.f32 %v2043_v25, %v1856_v62  ;;  %v2045_v30 = vpop.f32.mrb[6].mxu0  ;;  %v7563_v25 = vpop.permute.xlu0 %3792 }
 0x3b2   : > { %v2046_v19 = vpop.f32.mrb[7].mxu0 }
 0x3b3   : > { %v2082_v2 = vpop.f32.mrb[4].mxu1 }
 0x3b4   : > { %v2083_v53 = vadd.f32 %v2082_v2, %v1895_v11  ;;  %v2084_v26 = vpop.f32.mrb[5].mxu1 }
 0x3b5   : > { %v2085_v36 = vadd.f32 %v2084_v26, %v1897_v7  ;;  %v2086_v59 = vpop.f32.mrb[6].mxu1  ;;  %v7555_v7 = vpop.permute.xlu1 %3461 }
 0x3b6   : > { %v2087_v17 = vpop.f32.mrb[7].mxu1  ;;  %v7567_v19 = vpop.permute.xlu0 %3849 }
 0x3b9   : > { %v7565_v30 = vpop.permute.xlu1 %3463 }
 0x3bd   : > { %v7569_v2 = vpop.permute.xlu1 %3465 }
 0x3c1   : > { %v7573_v26 = vpop.permute.xlu1 %3520 }
 0x3c5   : > { %v7577_v59 = vpop.permute.xlu1 %3524 }
 0x3d4   : > { %v2648_v3 = vpop.f32.mrb[8].mxu0  ;;  %v2689_v21 = vpop.f32.mrb[8].mxu1 }
 0x3d5   : > { %v2696_v57 = vadd.f32 %v2648_v3, %v2042_v39  ;;  %v2698_v12 = vadd.f32 %v2689_v21, %v2083_v53  ;;  %v2650_v52 = vpop.f32.mrb[9].mxu0  ;;  %v2691_v27 = vpop.f32.mrb[9].mxu1 }
 0x3d6   : > { %v2697_v40 = vadd.f32 %v2650_v52, %v2044_v24  ;;  %v2699_v49 = vadd.f32 %v2691_v27, %v2085_v36  ;;  %v2652_v14 = vpop.f32.mrb[10].mxu0  ;;  %v2693_v33 = vpop.f32.mrb[10].mxu1 }
 0x3d7   : > { %v7539_v50 = vadd.f32 %v2703_v60, %v2696_v57  ;;  %v2653_v54 = vpop.f32.mrb[11].mxu0  ;;  %v2694_v51 = vpop.f32.mrb[11].mxu1  ;;  %v7541_v9 = vadd.f32 %v2703_v60, %v2698_v12 }
 0x3d8   : > { %v7543_v38 = vadd.f32 %v2703_v60, %v2697_v40  ;;  %v7553_v62 = vadd.f32 %v2703_v60, %v2699_v49  ;;  %v7571_v53 = vpop.permute.xlu0 %3853  ;;  %v7587_v60 = vpop.permute.xlu1 %3581 }
 0x3d9   : > { %v2716_v15 = vmul.f32 %v7539_v50, %v7539_v50  ;;  %v2718_v20 = vmul.f32 %v7541_v9, %v7541_v9 }
 0x3da   : > { %v2711_v47 = vadd.f32 %v7543_v38, %v7539_v50  ;;  %v2717_v11 = vmul.f32 %v7543_v38, %v7543_v38  ;;  %v2719_v61 = vmul.f32 %v7553_v62, %v7553_v62 }
 0x3dc   : > { %v2712_v63 = vadd.f32 %v2711_v47, %v7541_v9  ;;  %v2720_v41 = vadd.f32 %v2717_v11, %v2716_v15  ;;  %v7575_v36 = vpop.permute.xlu0 %3910  ;;  %v9106_v47 = vmov 0.0|0.0  }
 0x3dd   : > { %9098 = vst [vmem:[#allocation36_spill] sm:$0xff] %v7575_v36 }
 0x3de   : > { %v2713_v43 = vadd.f32 %v2712_v63, %v7553_v62  ;;  %v2721_v39 = vadd.f32 %v2720_v41, %v2718_v20 }
 0x3e0   : > { %2714 = vadd.xlane.f32.xlu0 %v2713_v43  ;;  %v2722_v24 = vadd.f32 %v2721_v39, %v2719_v61  ;;  %v7585_v17 = vpop.permute.xlu0 %3914 }
 0x3e1   : > { %9099 = vst [vmem:[#allocation32_spill] sm:$0xff] %v7585_v17 }
 0x3e2   : > { %2723 = vadd.xlane.f32.xlu1 %v2722_v24 }
 0x3e4   : > { %v7593_v3 = vpop.permute.xlu0 %2914 }
 0x3f3   : > { %3196 = vrot.lane.b32.xlu1 %v7298_v56, %s9027_s23  ;;  %v7597_v56 = vpop.permute.xlu1 %3585 }
 0x3f6   : > { %3101 = vrot.lane.b32.xlu0 %v7206_v0, %s9030_s26  ;;  %v7605_v0 = vpop.permute.xlu0 %2918 }
 0x3f7   : > { %3200 = vrot.lane.b32.xlu1 %v7320_v58, %s9027_s23  ;;  %9100 = vst [vmem:[#allocation21_spill] sm:$0xff] %v7605_v0  ;;  %v4367_v52 = vmul.f32 0.0, %v7605_v0 }
 0x3f9   : > { %v5541_v14 = vpack.c.bf16 %v4367_v52, %v4367_v52 }
 0x3fa   : > { %3198 = vrot.lane.b32.xlu0 %v7226_v13, %s9027_s23  ;;  %v7607_v13 = vpop.permute.xlu1 %3642 }
 0x3fb   : > { %3257 = vrot.lane.b32.xlu1 %v7338_v28, %s9025_s28 }
 0x3fe   : > { %3202 = vrot.lane.b32.xlu0 %v7242_v37, %s9027_s23  ;;  %v7613_v37 = vpop.permute.xlu0 %2975  ;;  %v7617_v58 = vpop.permute.xlu1 %3646 }
 0x3ff   : > { %3261 = vrot.lane.b32.xlu1 %v7352_v29, %s9025_s28 }
 0x402   : > { %3259 = vrot.lane.b32.xlu0 %v7265_v5, %s9025_s28  ;;  %v3745_v5 = vmul.f32 0.0, %v7537_v1  ;;  %v7628_v28 = vpop.permute.xlu1 %3725 }
 0x403   : > { %3318 = vrot.lane.b32.xlu1 %v7371_v35, %s9023_s22 }
 0x404   : > { %v5529_v29 = vpack.c.bf16 %v3745_v5, %v3745_v5 }
 0x406   : > { %3263 = vrot.lane.b32.xlu0 %v7281_v8, %s9025_s28  ;;  %v7626_v8 = vpop.permute.xlu0 %2979  ;;  %v7640_v21 = vpop.permute.xlu1 %3729 }
 0x407   : > { %3322 = vrot.lane.b32.xlu1 %v7385_v31, %s9023_s22  ;;  %9102 = vst [vmem:[#allocation22_spill] sm:$0xff] %v7626_v8  ;;  %v4412_v35 = vmul.f32 0.0, %v7626_v8  ;;  %v3806_v31 = vmul.f32 0.0, %v7563_v25 }
 0x409   : > { %v5544_v57 = vpack.c.bf16 %v4412_v35, %v4412_v35  ;;  %v5532_v12 = vpack.c.bf16 %v3806_v31, %v3806_v31 }
 0x40a   : > { %3320 = vrot.lane.b32.xlu0 %v7304_v16, %s9023_s22  ;;  %v3867_v16 = vmul.f32 0.0, %v7571_v53  ;;  %v7649_v49 = vpop.permute.xlu1 %3786 }
 0x40b   : > { %3379 = vrot.lane.b32.xlu1 %v7401_v22, %s9101_s3  ;;  %v7636_v22 = vpop.permute.xlu0 %3036 }
 0x40e   : > { %3324 = vrot.lane.b32.xlu0 %v7326_v46, %s9023_s22  ;;  %v5535_v46 = vpack.c.bf16 %v3867_v16, %v3867_v16  ;;  %v7654_v51 = vpop.permute.xlu1 %3790 }
 0x40f   : > { %3383 = vrot.lane.b32.xlu1 %v7410_v10, %s9101_s3  ;;  %v9103_v10 = vld [vmem:[#allocation39_spill] sm:$0xff]  ;;  %v7647_v27 = vpop.permute.xlu0 %3040 }
 0x410   : > { %9104 = vst [vmem:[#allocation24_spill] sm:$0xff] %v7647_v27  ;;  %v4457_v33 = vmul.f32 0.0, %v7647_v27 }
 0x412   : > { %3381 = vrot.lane.b32.xlu0 %v7344_v48, %s9101_s3  ;;  %v3928_v48 = vmul.f32 0.0, %v7585_v17  ;;  %v5547_v54 = vpack.c.bf16 %v4457_v33, %v4457_v33  ;;  %v7657_v15 = vpop.permute.xlu1 %3847 }
 0x413   : > { %3768 = vrot.lane.b32.xlu1 %v5529_v29, %s9083_s0  ;;  %v7681_v16 = vpop.permute.xlu0 %3097 }
 0x414   : > { %v5538_v40 = vpack.c.bf16 %v3928_v48, %v3928_v48 }
 0x416   : > { %3385 = vrot.lane.b32.xlu0 %v9103_v10, %s9101_s3  ;;  %v7661_v11 = vpop.permute.xlu1 %3851 }
 0x417   : > { %3890 = vrot.lane.b32.xlu1 %v5535_v46, %s9078_s18 }
 0x41a   : > { %3829 = vrot.lane.b32.xlu0 %v5532_v12, %s9081_s20  ;;  %v7663_v20 = vpop.permute.xlu1 %3908 }
 0x41b   : > { %4435 = vrot.lane.b32.xlu1 %v5544_v57, %s9023_s22 }
 0x41e   : > { %3951 = vrot.lane.b32.xlu0 %v5538_v40, %s9077_s19  ;;  %v7665_v63 = vpop.permute.xlu1 %3912 }
 0x41f   : > { %9107 = vst [vmem:[#allocation23_spill] sm:$0xff] %v7665_v63 }
 0x422   : > { %4390 = vrot.lane.b32.xlu0 %v5541_v14, %s9101_s3  ;;  %v7667_v41 = vpop.permute.xlu1 %2912 }
 0x426   : > { %4480 = vrot.lane.b32.xlu0 %v5547_v54, %s9025_s28  ;;  %v7669_v43 = vpop.permute.xlu1 %2916 }
 0x42a   : > { %4565 = vrot.lane.b32.xlu0 %v9106_v47, %s9105_s5  ;;  %v7671_v61 = vpop.permute.xlu1 %2973 }
 0x42e   : > { %v7673_v39 = vpop.permute.xlu1 %2977 }
 0x432   : > { %v7675_v24 = vpop.permute.xlu1 %3034 }
 0x436   : > { %v7677_v5 = vpop.permute.xlu1 %3038 }
 0x43a   : > { %v7679_v29 = vpop.permute.xlu1 %3095 }
 0x43b   : > { %9108 = vst [vmem:[#allocation26_spill] sm:$0xff] %v7679_v29 }
 0x43e   : > { %v7683_v35 = vpop.permute.xlu1 %3099 }
 0x46d   : > { %v2715_v31 = vpop.xlane.xlu0 %2714 }
 0x46e   : > { %v2727_v46 = vmul.f32 0.001953125, %v2715_v31 }
 0x46f   : > { %v2724_v10 = vpop.xlane.xlu1 %2723 }
 0x470   : > { %v2729_v57 = vmul.f32 %v2727_v46, %v2727_v46  ;;  %v2728_v12 = vmul.f32 0.001953125, %v2724_v10 }
 0x471   : > { %v7685_v48 = vpop.permute.xlu0 %3101 }
 0x472   : > { %9109 = vst [vmem:[#allocation25_spill] sm:$0xff] %v7685_v48  ;;  %v4502_v52 = vmul.f32 0.0, %v7685_v48  ;;  %v2730_v40 = vsub.f32 %v2728_v12, %v2729_v57 }
 0x473   : > { %v7688_v14 = vpop.permute.xlu1 %3196 }
 0x474   : > { %9110 = vst [vmem:[#allocation27_spill] sm:$0xff] %v7688_v14  ;;  %v5550_v33 = vpack.c.bf16 %v4502_v52, %v4502_v52  ;;  %v2731_v47 = vadd.f32 1e-05, %v2730_v40 }
 0x475   : > { %v7690_v54 = vpop.permute.xlu0 %3198 }
 0x476   : > { %9111 = vst [vmem:[#allocation29_spill] sm:$0xff] %v7690_v54  ;;  %4525 = vrot.lane.b32.xlu1 %v5550_v33, %s9027_s23  ;;  %5650 = vrsqrt.f32 %v2731_v47 }
 0x477   : > { %v7693_v23 = vpop.permute.xlu1 %3200 }
 0x478   : > { %9112 = vst [vmem:[#allocation31_spill] sm:$0xff] %v7693_v23  ;;  %v7698_v31 = vsel %vm848_vm12, %v7690_v54, %v7693_v23 }
 0x479   : > { %9113 = vst [vmem:[#allocation30_spill] sm:$0xff] %v7698_v31  ;;  %v7700_v10 = vpop.permute.xlu0 %3202 }
 0x47a   : > { %9114 = vst [vmem:[#allocation40_spill] sm:$0xff] %v7700_v10  ;;  %v4587_v17 = vmul.f32 0.0, %v7700_v10 }
 0x47b   : > { %v7703_v57 = vpop.permute.xlu1 %3257 }
 0x47c   : > { %9115 = vst [vmem:[#allocation38_spill] sm:$0xff] %v7703_v57  ;;  %v5556_v12 = vpack.c.bf16 %v4587_v17, %v4587_v17 }
 0x47d   : > { %v7705_v52 = vpop.permute.xlu0 %3259 }
 0x47e   : > { %9116 = vst [vmem:[#allocation50_spill] sm:$0xff] %v7705_v52  ;;  %4610 = vrot.lane.b32.xlu1 %v5556_v12, %s9030_s26  ;;  %v2709_v12 = vld [vmem:[%s8743_s6] sm:$0xff] }
 0x47f   : > { %v7708_v40 = vpop.permute.xlu1 %3261 }
 0x480   : > { %9117 = vst [vmem:[#allocation49_spill] sm:$0xff] %v7708_v40  ;;  %v7713_v33 = vsel %vm785_vm13, %v7705_v52, %v7708_v40  ;;  %v5651_v57 = vpop.eup %5650 }
 0x481   : > { %9118 = vst [vmem:[#allocation52_spill] sm:$0xff] %v7713_v33  ;;  %v7715_v63 = vpop.permute.xlu0 %3263  ;;  %v2733_v40 = vmul.f32 %v5651_v57, %v2709_v12 }
 0x482   : > { %9119 = vst [vmem:[#allocation51_spill] sm:$0xff] %v7715_v63  ;;  %v4632_v31 = vmul.f32 0.0, %v7715_v63 }
 0x483   : > { %v7718_v23 = vpop.permute.xlu1 %3318  ;;  %v2734_v14 = vmul.f32 %v2733_v40, %v2727_v46 }
 0x484   : > { %9120 = vst [vmem:[#allocation54_spill] sm:$0xff] %v7718_v23  ;;  %v5559_v47 = vpack.c.bf16 %v4632_v31, %v4632_v31 }
 0x485   : > { %v7720_v17 = vpop.permute.xlu0 %3320 }
 0x486   : > { %9121 = vst [vmem:[#allocation53_spill] sm:$0xff] %v7720_v17  ;;  %4655 = vrot.lane.b32.xlu0 %v5559_v47, %s9032_s30  ;;  %v2710_v47 = vld [vmem:[%s8744_s7] sm:$0xff] }
 0x487   : > { %v7726_v10 = vpop.permute.xlu1 %3322  ;;  %v2735_v12 = vsub.f32 %v2710_v47, %v2734_v14 }
 0x488   : > { %9122 = vst [vmem:[#allocation55_spill] sm:$0xff] %v7726_v10  ;;  %v7731_v33 = vsel %vm722_vm14, %v7720_v17, %v7726_v10 }
 0x489   : > { %9123 = vst [vmem:[#allocation57_spill] sm:$0xff] %v7731_v33  ;;  %v7733_v63 = vpop.permute.xlu0 %3324 }
 0x48a   : > { %9124 = vst [vmem:[#allocation56_spill] sm:$0xff] %v7733_v63  ;;  %v4677_v31 = vmul.f32 0.0, %v7733_v63  ;;  %2738 = vperm.xlu0 %5647, %v2733_v40  }
 0x48b   : > { %v7736_v23 = vpop.permute.xlu1 %3379 }
 0x48c   : > { %9125 = vst [vmem:[#allocation33_spill] sm:$0xff] %v7736_v23  ;;  %v5562_v52 = vpack.c.bf16 %v4677_v31, %v4677_v31 }
 0x48d   : > { %v7742_v54 = vpop.permute.xlu0 %3381 }
 0x48e   : > { %4700 = vrot.lane.b32.xlu1 %v5562_v52, %s9091_s2  ;;  %9126 = vst [vmem:[#allocation58_spill] sm:$0xff] %v7742_v54 }
 0x48f   : > { %v7744_v10 = vpop.permute.xlu1 %3383 }
 0x490   : > { %9127 = vst [vmem:[#allocation60_spill] sm:$0xff] %v7744_v10  ;;  %v7749_v57 = vsel %vm659_vm15, %v7742_v54, %v7744_v10 }
 0x491   : > { %9128 = vst [vmem:[#allocation59_spill] sm:$0xff] %v7749_v57  ;;  %v7751_v33 = vpop.permute.xlu0 %3385 }
 0x492   : > { %2747 = vperm.xlu1 %5646, %v2735_v12   ;;  %9129 = vst [vmem:[#allocation34_spill] sm:$0xff] %v7751_v33 }
 0x493   : > { %v7757_v31 = vpop.permute.xlu1 %3768 }
 0x494   : > { %9132 = vst [vmem:[#allocation28_spill] sm:$0xff] %v7757_v31 }
 0x495   : > { %v7753_v46 = vpop.permute.xlu0 %3829 }
 0x496   : > { %9130 = vst [vmem:[#allocation35_spill] sm:$0xff] %v7753_v46 }
 0x497   : > { %v7761_v23 = vpop.permute.xlu1 %3890 }
 0x498   : > { %9134 = vst [vmem:[#allocation17_spill] sm:$0xff] %v7761_v23 }
 0x499   : > { %v7755_v40 = vpop.permute.xlu0 %3951 }
 0x49a   : > { %9131 = vst [vmem:[#allocation37_spill] sm:$0xff] %v7755_v40 }
 0x49b   : > { %v7765_v17 = vpop.permute.xlu1 %4435 }
 0x49c   : > { %9136 = vst [vmem:[#allocation18_spill] sm:$0xff] %v7765_v17 }
 0x49d   : > { %v7759_v52 = vpop.permute.xlu0 %4390 }
 0x49e   : > { %9133 = vst [vmem:[#allocation20_spill] sm:$0xff] %v7759_v52 }
 0x4a1   : > { %v7763_v63 = vpop.permute.xlu0 %4480 }
 0x4a2   : > { %9135 = vst [vmem:[#allocation19_spill] sm:$0xff] %v7763_v63 }
 0x4a5   : > { %v7767_v10 = vpop.permute.xlu0 %4565 }
 0x4a6   : > { %9137 = vst [vmem:[#allocation41_spill] sm:$0xff] %v7767_v10 }
 0x4e8   : > { %v7769_v14 = vpop.permute.xlu1 %4525 }
 0x4e9   : > { %9138 = vst [vmem:[#allocation48_spill] sm:$0xff] %v7769_v14 }
 0x4f0   : > { %v7771_v47 = vpop.permute.xlu1 %4610 }
 0x4f1   : > { %9139 = vst [vmem:[#allocation47_spill] sm:$0xff] %v7771_v47 }
 0x4f8   : > { %v7773_v12 = vpop.permute.xlu0 %4655 }
 0x4f9   : > { %9140 = vst [vmem:[#allocation42_spill] sm:$0xff] %v7773_v12 }
 0x500   : > { %v7775_v46 = vpop.permute.xlu1 %4700 }
 0x501   : > { %9141 = vst [vmem:[#allocation43_spill] sm:$0xff] %v7775_v46  ;;  %v7921_v46 = vsel %vm680_vm9, %v7671_v61, %v7613_v37 }
 0x509   : > { %v2739_v40 = vpop.permute.xlu0 %2738 }
 0x50a   : > { %v2741_v31 = vmul.f32 %v2739_v40, %v7539_v50  ;;  %v2742_v52 = vmul.f32 %v2739_v40, %v7543_v38  ;;  %v2743_v23 = vmul.f32 %v2739_v40, %v7541_v9  ;;  %v2744_v63 = vmul.f32 %v2739_v40, %v7553_v62 }
 0x50b   : > { %v3467_v50 = vsel %vm8884_vm0, %v7535_v42, %v7555_v7  ;;  %v3468_v9 = vsel %vm8884_vm0, %v7555_v7, %v7565_v30  ;;  %v9142_v62 = vmov 0.0   ;;  %v7808_v7 = vsel %vm1244_vm1, %v7521_v45, %v7577_v59 }
 0x50c   : > { %v3591_v40 = vsel %vm8885_vm2, %v7597_v56, %v7527_v44 }
 0x511   : > { %v2748_v17 = vpop.permute.xlu1 %2747 }
 0x512   : > { %v2750_v57 = vadd.f32 %v2748_v17, %v2741_v31  ;;  %v2751_v10 = vadd.f32 %v2748_v17, %v2742_v52  ;;  %v2752_v33 = vadd.f32 %v2748_v17, %v2743_v23  ;;  %v2753_v14 = vadd.f32 %v2748_v17, %v2744_v63 }
 0x513   : > { %v3530_v17 = vsel %vm1244_vm1, %v7577_v59, %v7523_v18  ;;  %v7832_v59 = vsel %vm1370_vm3, %v7529_v55, %v7617_v58 }
 0x514   : > { %v7781_v54 = vmax.f32 %v2750_v57, 0.0  ;;  %v7783_v47 = vmax.f32 %v2751_v10, 0.0  ;;  %v7785_v12 = vmax.f32 %v2752_v33, 0.0  ;;  %v7793_v38 = vmax.f32 %v2753_v14, 0.0 }
 0x515   : > { %v3469_v10 = vsel %vm8884_vm0, %v7565_v30, %v7569_v2  ;;  %v3528_v33 = vsel %vm1244_vm1, %v7573_v26, %v7521_v45  ;;  %v7816_v57 = vsel %vm8885_vm2, %v7587_v60, %v7525_v34  ;;  %v3590_v30 = vsel %vm8885_vm2, %v7525_v34, %v7597_v56  ;;  %vm9146_vm0 = vmmov %vm9145_vm6 }
 0x516   : > { %v5499_v23 = vpack.c.bf16 %v7785_v12, %v7783_v47  ;;  %v5498_v63 = vpack.c.bf16 %v7781_v54, %v9142_v62  ;;  %v3650_v45 = vsel %vm1370_vm3, %v7607_v13, %v7529_v55  ;;  %v7837_v34 = vsel %vm1370_vm3, %v7617_v58, %v7531_v6 }
 0x517   : > { %v7842_v56 = vsel %vm1412_vm4, %v7628_v28, %v7533_v4  ;;  %v7846_v31 = vpack.c.bf16 %v7783_v47, %v7781_v54  ;;  %v5500_v52 = vpack.c.bf16 %v7793_v38, %v7793_v38  ;;  %v3477_v55 = vmul.f32 %v3468_v9, %v7783_v47 }
 0x518   : > { %3176 = vrot.lane.b32.xlu0 %v5499_v23, %s9105_s5  ;;  %3174 = vrot.lane.b32.xlu1 %v5498_v63, %s9105_s5  ;;  %v3478_v14 = vmul.f32 %v3469_v10, %v7785_v12  ;;  %v3734_v58 = vsel %vm1412_vm4, %v7533_v4, %v7640_v21  ;;  %v3735_v23 = vsel %vm1412_vm4, %v7640_v21, %v7537_v1  ;;  %v3475_v9 = vmul.f32 0.0, %v7535_v42 }
 0x519   : > { %9143 = vst [vmem:[#allocation44_spill] sm:$0xff] %v7846_v31  ;;  %v7861_v62 = vsel %vm1349_vm5, %v7649_v49, %v7547_v32  ;;  %v7866_v63 = vsel %vm1349_vm5, %v7547_v32, %v7654_v51  ;;  %v7872_v4 = vsel %vm1349_vm5, %v7654_v51, %v7563_v25  ;;  %v7877_v1 = vsel %vm9144_vm7, %v7657_v15, %v7567_v19 }
 0x51a   : > { %v7882_v21 = vsel %vm9145_vm6, %v7567_v19, %v7661_v11  ;;  %v7890_v42 = vsel %vm9146_vm0, %v7661_v11, %v7571_v53  ;;  %vm9147_vm2 = vcmask 72704   ;;  %vm9148_vm7 = vcmask 449536  }
 0x51b   : > { %v7895_v32 = vsel %vm9147_vm2, %v7663_v20, %v7575_v36  ;;  %v7900_v25 = vsel %vm9148_vm7, %v7667_v41, %v7593_v3  ;;  %vm9149_vm6 = vmmov %vm9148_vm7  ;;  %v5514_v51 = vpack.c.bf16 %v3478_v14, %v3477_v55  ;;  %v7909_v53 = vpack.c.bf16 %v7793_v38, %v7785_v12  ;;  %v9154_v14 = vld [vmem:[#allocation27_spill] sm:$0xff] }
 0x51c   : > { %4561 = vrot.lane.b32.xlu0 %v7846_v31, %s9105_s5  ;;  %3178 = vrot.lane.b32.xlu1 %v5500_v52, %s9105_s5  ;;  %v7905_v19 = vsel %vm9149_vm6, %v7593_v3, %v7669_v43  ;;  %v3537_v11 = vmul.f32 %v3528_v33, %v7781_v54  ;;  %v3476_v10 = vmul.f32 %v3467_v50, %v7781_v54  ;;  %vm9151_vm0 = vmmov %vm9149_vm6  ;;  %v3536_v50 = vmul.f32 0.0, %v7573_v26 }
 0x51d   : > { %9150 = vst [vmem:[#allocation45_spill] sm:$0xff] %v7909_v53  ;;  %v7916_v52 = vsel %vm9151_vm0, %v7669_v43, %v7605_v0  ;;  %v7926_v3 = vsel %vm680_vm9, %v7613_v37, %v7673_v39  ;;  %v7931_v33 = vsel %vm680_vm9, %v7673_v39, %v7626_v8  ;;  %v7937_v43 = vsel %vm743_vm10, %v7675_v24, %v7636_v22  ;;  %v9156_v8 = vld [vmem:[#allocation31_spill] sm:$0xff]  ;;  %vm9201_vm7 = vmmov %vm9147_vm2 }
 0x51e   : > { %v7942_v55 = vsel %vm743_vm10, %v7636_v22, %v7677_v5  ;;  %v7947_v37 = vsel %vm743_vm10, %v7677_v5, %v7647_v27  ;;  %v7955_v26 = vsel %vm806_vm11, %v7679_v29, %v7681_v16  ;;  %v7960_v22 = vsel %vm806_vm11, %v7681_v16, %v7683_v35  ;;  %v9153_v5 = vld [vmem:[#allocation29_spill] sm:$0xff]  ;;  %v9155_v16 = vld [vmem:[#allocation40_spill] sm:$0xff] }
 0x51f   : > { %9152 = vst [vmem:[#allocation46_spill] sm:$0xff] %v7955_v26  ;;  %v7965_v39 = vsel %vm806_vm11, %v7683_v35, %v7685_v48  ;;  %v5516_v31 = vpack.c.bf16 %v3537_v11, %v3536_v50  ;;  %v3540_v27 = vmul.f32 %v7523_v18, %v7793_v38  ;;  %v3479_v0 = vmul.f32 %v7569_v2, %v7793_v38  ;;  %v9157_v35 = vld [vmem:[#allocation50_spill] sm:$0xff]  ;;  %v9161_v11 = vld [vmem:[#allocation53_spill] sm:$0xff]  ;;  %v9163_v50 = vld [vmem:[#allocation56_spill] sm:$0xff] }
 0x520   : > { %3500 = vrot.lane.b32.xlu0 %v5514_v51, %s9089_s1  ;;  %4563 = vrot.lane.b32.xlu1 %v7909_v53, %s9105_s5  ;;  %v7970_v51 = vsel %vm848_vm12, %v9154_v14, %v9153_v5  ;;  %v5513_v53 = vpack.c.bf16 %v3476_v10, %v3475_v9  ;;  %v7979_v36 = vsel %vm848_vm12, %v9156_v8, %v9155_v16  ;;  %v9158_v48 = vld [vmem:[#allocation38_spill] sm:$0xff]  ;;  %v9159_v5 = vld [vmem:[#allocation51_spill] sm:$0xff]  ;;  %v9160_v14 = vld [vmem:[#allocation49_spill] sm:$0xff]  ;;  %v3658_v2 = vmul.f32 0.0, %v7607_v13 }
 0x521   : > { %v7984_v26 = vsel %vm785_vm13, %v9158_v48, %v9157_v35  ;;  %v7989_v9 = vsel %vm785_vm13, %v9160_v14, %v9159_v5  ;;  %v9162_v18 = vld [vmem:[#allocation54_spill] sm:$0xff]  ;;  %v9164_v8 = vld [vmem:[#allocation55_spill] sm:$0xff]  ;;  %v3599_v35 = vmul.f32 %v3590_v30, %v7783_v47  ;;  %v3600_v14 = vmul.f32 %v3591_v40, %v7785_v12  ;;  %v9166_v48 = vld [vmem:[#allocation33_spill] sm:$0xff] }
 0x522   : > { %v7994_v10 = vsel %vm722_vm14, %v9162_v18, %v9161_v11  ;;  %v8000_v16 = vsel %vm722_vm14, %v9164_v8, %v9163_v50  ;;  %v9165_v5 = vld [vmem:[#allocation58_spill] sm:$0xff]  ;;  %v3538_v13 = vmul.f32 %v7808_v7, %v7783_v47  ;;  %v3539_v18 = vmul.f32 %v3530_v17, %v7785_v12  ;;  %v9168_v29 = vld [vmem:[#allocation60_spill] sm:$0xff] }
 0x523   : > { %v8009_v11 = vsel %vm659_vm15, %v9166_v48, %v9165_v5  ;;  %v3659_v8 = vmul.f32 %v3650_v45, %v7781_v54  ;;  %v5518_v50 = vpack.c.bf16 %v3540_v27, %v3540_v27  ;;  %v3662_v30 = vmul.f32 %v7531_v6, %v7793_v38  ;;  %v9167_v40 = vld [vmem:[#allocation34_spill] sm:$0xff] }
 0x524   : > { %3559 = vrot.lane.b32.xlu0 %v5516_v31, %s8979_s11  ;;  %3498 = vrot.lane.b32.xlu1 %v5513_v53, %s9089_s1  ;;  %v5515_v31 = vpack.c.bf16 %v3479_v0, %v3479_v0  ;;  %v3598_v53 = vmul.f32 %v7816_v57, %v7781_v54  ;;  %v8022_v5 = vsel %vm659_vm15, %v9168_v29, %v9167_v40  ;;  %v3597_v0 = vmul.f32 0.0, %v7587_v60 }
 0x525   : > { %v3601_v7 = vmul.f32 %v7527_v44, %v7793_v38  ;;  %v8027_v17 = vmul.f32 %v3734_v58, %v7785_v12  ;;  %v8030_v27 = vmul.f32 %v3735_v23, %v7793_v38  ;;  %v5520_v6 = vpack.c.bf16 %v3600_v14, %v3599_v35 }
 0x526   : > { %v8037_v29 = vmul.f32 %v7832_v59, %v7783_v47  ;;  %v8041_v44 = vmul.f32 %v7837_v34, %v7785_v12  ;;  %v5517_v57 = vpack.c.bf16 %v3539_v18, %v3538_v13  ;;  %v5522_v45 = vpack.c.bf16 %v3659_v8, %v3658_v2 }
 0x527   : > { %v8045_v58 = vmul.f32 %v7649_v49, %v7781_v54  ;;  %v8049_v60 = vmul.f32 %v7861_v62, %v7783_v47  ;;  %v5519_v23 = vpack.c.bf16 %v3598_v53, %v3597_v0  ;;  %v8053_v59 = vmul.f32 %v7970_v51, %v7781_v54 }
 0x528   : > { %3563 = vrot.lane.b32.xlu0 %v5518_v50, %s8979_s11  ;;  %3502 = vrot.lane.b32.xlu1 %v5515_v31, %s9089_s1  ;;  %v5524_v50 = vpack.c.bf16 %v3662_v30, %v3662_v30  ;;  %v8057_v34 = vmul.f32 %v7960_v22, %v7783_v47  ;;  %v5521_v18 = vpack.c.bf16 %v3601_v7, %v3601_v7  ;;  %v9169_v31 = vld [vmem:[#allocation30_spill] sm:$0xff]  ;;  %vm9242_vm6 = vcmask 523264  }
 0x529   : > { %v5528_v2 = vpack.c.bf16 %v8030_v27, %v8027_v17  ;;  %v8063_v49 = vmul.f32 %v7628_v28, %v7781_v54  ;;  %v8067_v62 = vmul.f32 %v7965_v39, %v7785_v12  ;;  %v5523_v35 = vpack.c.bf16 %v8041_v44, %v8037_v29  ;;  %vm9248_vm0 = vmmov %vm9242_vm6 }
 0x52a   : > { %v8075_v14 = vmul.f32 %v7842_v56, %v7783_v47  ;;  %v8079_v13 = vmul.f32 %v7882_v21, %v7785_v12  ;;  %v8087_v53 = vmul.f32 %v9169_v31, %v7783_v47  ;;  %v8091_v30 = vmul.f32 %v7979_v36, %v7785_v12  ;;  %v9170_v56 = vld [vmem:[#allocation52_spill] sm:$0xff] }
 0x52b   : > { %v8095_v7 = vmul.f32 %v9170_v56, %v7783_v47  ;;  %v8099_v21 = vmul.f32 %v7989_v9, %v7785_v12  ;;  %v8103_v17 = vmul.f32 %v7984_v26, %v7781_v54  ;;  %v8107_v27 = vmul.f32 %v7994_v10, %v7781_v54 }
 0x52c   : > { %3622 = vrot.lane.b32.xlu0 %v5520_v6, %s8990_s27  ;;  %3561 = vrot.lane.b32.xlu1 %v5517_v57, %s8979_s11  ;;  %v8111_v0 = vmul.f32 %v7890_v42, %v7793_v38  ;;  %v8115_v6 = vmul.f32 %v7866_v63, %v7785_v12  ;;  %v8119_v29 = vmul.f32 %v7872_v4, %v7793_v38 }
 0x52d   : > { %9171 = vst [vmem:[#allocation39_spill] sm:$0xff] %v8107_v27  ;;  %v5527_v57 = vpack.c.bf16 %v8075_v14, %v8063_v49  ;;  %v8129_v42 = vmul.f32 %v7663_v20, %v7781_v54  ;;  %v8135_v4 = vmul.f32 %v7895_v32, %v7783_v47  ;;  %v8139_v44 = vmul.f32 %v7657_v15, %v7781_v54  ;;  %v9174_v20 = vld [vmem:[#allocation59_spill] sm:$0xff] }
 0x52e   : > { %v8147_v49 = vmul.f32 %v8000_v16, %v7785_v12  ;;  %v8151_v14 = vmul.f32 %v9174_v20, %v7783_v47  ;;  %v8155_v32 = vmul.f32 %v8022_v5, %v7785_v12  ;;  %v8159_v15 = vmul.f32 %v8009_v11, %v7781_v54 }
 0x52f   : > { %v8163_v63 = vmul.f32 %v7667_v41, %v7781_v54  ;;  %v5534_v8 = vpack.c.bf16 %v8111_v0, %v8079_v13  ;;  %v8171_v40 = vmul.f32 %v7900_v25, %v7783_v47  ;;  %v8175_v27 = vmul.f32 %v7926_v3, %v7785_v12 }
 0x530   : > { %3681 = vrot.lane.b32.xlu0 %v5522_v45, %s8991_s13  ;;  %3620 = vrot.lane.b32.xlu1 %v5519_v23, %s8990_s27  ;;  %v9172_v45 = vld [vmem:[#allocation57_spill] sm:$0xff]  ;;  %9175 = vst [vmem:[#allocation31_spill] sm:$0xff] %v8159_v15  ;;  %v5531_v15 = vpack.c.bf16 %v8119_v29, %v8115_v6  ;;  %v8185_v0 = vmul.f32 %v7931_v33, %v7793_v38 }
 0x531   : > { %v8143_v23 = vmul.f32 %v9172_v45, %v7783_v47  ;;  %9176 = vst [vmem:[#allocation50_spill] sm:$0xff] %v8163_v63  ;;  %9177 = vst [vmem:[#allocation49_spill] sm:$0xff] %v8175_v27  ;;  %v3864_v28 = vmul.f32 %v7877_v1, %v7783_v47  ;;  %v8203_v29 = vmul.f32 %v7675_v24, %v7781_v54 }
 0x532   : > { %9178 = vst [vmem:[#allocation53_spill] sm:$0xff] %v8185_v0  ;;  %v8207_v1 = vmul.f32 %v7937_v43, %v7783_v47  ;;  %v8217_v63 = vmul.f32 %v7921_v46, %v7783_v47  ;;  %v8221_v6 = vmul.f32 %v7960_v22, %v7785_v12  ;;  %v8225_v27 = vmul.f32 %v7965_v39, %v7793_v38  ;;  %v9189_v22 = vld [vmem:[#allocation46_spill] sm:$0xff]  ;;  %v9191_v0 = vld [vmem:[#allocation27_spill] sm:$0xff] }
 0x533   : > { %9173 = vst [vmem:[#allocation29_spill] sm:$0xff] %v8143_v23  ;;  %9180 = vst [vmem:[#allocation58_spill] sm:$0xff] %v8203_v29  ;;  %v8211_v23 = vmul.f32 %v7671_v61, %v7781_v54  ;;  %v8233_v13 = vmul.f32 %v7942_v55, %v7785_v12  ;;  %v9188_v29 = vld [vmem:[#allocation26_spill] sm:$0xff] }
 0x534   : > { %3685 = vrot.lane.b32.xlu0 %v5524_v50, %s8991_s13  ;;  %3624 = vrot.lane.b32.xlu1 %v5521_v18, %s8990_s27  ;;  %v8193_v50 = vmul.f32 %v7905_v19, %v7785_v12  ;;  %v8197_v18 = vmul.f32 %v7916_v52, %v7793_v38  ;;  %9181 = vst [vmem:[#allocation33_spill] sm:$0xff] %v8207_v1  ;;  %9183 = vst [vmem:[#allocation30_spill] sm:$0xff] %v8221_v6  ;;  %v9190_v39 = vld [vmem:[#allocation38_spill] sm:$0xff]  ;;  %s5566_s27 = sshll.u32 %s5887_s17, 9  ;;  %s4987_s17 = scalar_lea.sflag [#allocation6], %s6002_s29 }
 0x535   : > { %9182 = vst [vmem:[#allocation60_spill] sm:$0xff] %v8211_v23  ;;  %9184 = vst [vmem:[#allocation52_spill] sm:$0xff] %v8225_v27  ;;  %v8255_v1 = vmul.f32 %v9188_v29, %v7781_v54  ;;  %v8259_v23 = vmul.f32 %v9189_v22, %v7783_v47  ;;  %v8263_v6 = vmul.f32 %v9190_v39, %v7781_v54 }
 0x536   : > { %9179 = vst [vmem:[#allocation55_spill] sm:$0xff] %v8193_v50  ;;  %9185 = vst [vmem:[#allocation57_spill] sm:$0xff] %v8233_v13  ;;  %v8237_v50 = vmul.f32 %v7947_v37, %v7793_v38  ;;  %v8273_v13 = vmul.f32 %v9191_v0, %v7781_v54  ;;  %v9193_v27 = vpack.c.bf16 %v8049_v60, %v8045_v58  ;;  %v9197_v58 = vld [vmem:[#allocation54_spill] sm:$0xff] }
 0x537   : > { %v8300_v60 = vmul.f32 %v9170_v56, %v7785_v12 }
 0x538   : > { %3766 = vrot.lane.b32.xlu0 %v5528_v2, %s9083_s0  ;;  %3683 = vrot.lane.b32.xlu1 %v5523_v35, %s8991_s13  ;;  %9186 = vst [vmem:[#allocation59_spill] sm:$0xff] %v8237_v50  ;;  %v8245_v2 = vmul.f32 %v9169_v31, %v7785_v12  ;;  %v8249_v35 = vmul.f32 %v7979_v36, %v7793_v38  ;;  %9192 = vst [vmem:[#allocation26_spill] sm:$0xff] %v8273_v13  ;;  %v9200_v13 = vld [vmem:[#allocation32_spill] sm:$0xff]  ;;  %s9278_s13 = sshll.u32 %s6002_s29, 5 }
 0x539   : > { %v8269_v36 = vmul.f32 %v7984_v26, %v7783_v47  ;;  %v8277_v50 = vmul.f32 %v7970_v51, %v7783_v47  ;;  %v8288_v26 = vmul.f32 %v9172_v45, %v7785_v12  ;;  %9196 = vst [vmem:[#allocation27_spill] sm:$0xff] %v8300_v60  ;;  %v8314_v45 = vmul.f32 %v8009_v11, %v7783_v47  ;;  %v9198_v11 = vld [vmem:[#allocation23_spill] sm:$0xff] }
 0x53a   : > { %9187 = vst [vmem:[#allocation61_spill] sm:$0xff] %v8245_v2  ;;  %v8292_v2 = vmul.f32 %v8000_v16, %v7793_v38  ;;  %v8310_v16 = vmul.f32 %v9166_v48, %v7781_v54  ;;  %v8318_v51 = vmul.f32 %v9197_v58, %v7781_v54  ;;  %v8332_v31 = vmul.f32 %v8022_v5, %v7793_v38 }
 0x53b   : > { %9194 = vst [vmem:[#allocation46_spill] sm:$0xff] %v8288_v26  ;;  %v9199_v26 = vld [vmem:[#allocation36_spill] sm:$0xff]  ;;  %v3918_v56 = vsel %vm9201_vm7, %v9198_v11, %v9200_v13  ;;  %v2930_v5 = vmul.f32 %v7905_v19, %v7783_v47  ;;  %v5533_v13 = vpack.c.bf16 %v3864_v28, %v8139_v44  ;;  %v2929_v60 = vmul.f32 %v7900_v25, %v7781_v54 }
 0x53c   : > { %3825 = vrot.lane.b32.xlu0 %v9193_v27, %s9081_s20  ;;  %3764 = vrot.lane.b32.xlu1 %v5527_v57, %s9083_s0  ;;  %9195 = vst [vmem:[#allocation38_spill] sm:$0xff] %v8292_v2  ;;  %v8304_v27 = vmul.f32 %v7989_v9, %v7793_v38  ;;  %v8324_v9 = vmul.f32 %v7994_v10, %v7783_v47  ;;  %v2928_v28 = vmul.f32 0.0, %v7667_v41 }
 0x53d   : > { %v8328_v57 = vmul.f32 %v9174_v20, %v7785_v12  ;;  %v3917_v2 = vsel %vm9147_vm2, %v9199_v26, %v9198_v11  ;;  %v5563_v10 = vpack.c.bf16 %v8314_v45, %v8310_v16  ;;  %v5536_v20 = vpack.c.bf16 %v8135_v4, %v8129_v42  ;;  %vm9249_vm2 = vmmov %vm9248_vm0 }
 0x53e   : > { %v5560_v26 = vpack.c.bf16 %v8324_v9, %v8318_v51  ;;  %v3927_v11 = vmul.f32 %v3918_v56, %v7793_v38  ;;  %v2990_v4 = vmul.f32 %v7921_v46, %v7781_v54  ;;  %v9202_v56 = vld [vmem:[#allocation22_spill] sm:$0xff]  ;;  %v3052_v41 = vmul.f32 %v7942_v55, %v7783_v47  ;;  %v2758_v51 = vld [vmem:[%s8746_s9] sm:$0xff] }
 0x53f   : > { %v3112_v55 = vmul.f32 %v9189_v22, %v7781_v54  ;;  %v9206_v22 = vld [vmem:[#allocation40_spill] sm:$0xff]  ;;  %v9250_v16 = vpack.c.bf16 %v8332_v31, %v8328_v57 }
 0x540   : > { %3888 = vrot.lane.b32.xlu0 %v5534_v8, %s9078_s18  ;;  %3827 = vrot.lane.b32.xlu1 %v5531_v15, %s9081_s20  ;;  %v2931_v8 = vmul.f32 %v7916_v52, %v7785_v12  ;;  %v3926_v15 = vmul.f32 %v3917_v2, %v7785_v12  ;;  %v2989_v52 = vmul.f32 0.0, %v7671_v61  ;;  %v5486_v2 = vpack.c.bf16 %v2929_v60, %v2928_v28 }
 0x541   : > { %v3053_v61 = vmul.f32 %v7947_v37, %v7785_v12  ;;  %v2991_v60 = vmul.f32 %v7926_v3, %v7783_v47  ;;  %v3051_v37 = vmul.f32 %v7937_v43, %v7781_v54  ;;  %v9204_v3 = vld [vmem:[#allocation25_spill] sm:$0xff]  ;;  %v3212_v43 = vmul.f32 0.0, %v9191_v0 }
 0x542   : > { %v5487_v19 = vpack.c.bf16 %v2931_v8, %v2930_v5  ;;  %v5537_v42 = vpack.c.bf16 %v3927_v11, %v3926_v15  ;;  %v5489_v44 = vpack.c.bf16 %v2990_v4, %v2989_v52  ;;  %v9203_v5 = vld [vmem:[#allocation21_spill] sm:$0xff]  ;;  %v2992_v8 = vmul.f32 %v7931_v33, %v7785_v12  ;;  %v9205_v4 = vld [vmem:[#allocation24_spill] sm:$0xff] }
 0x543   : > { %v5493_v15 = vpack.c.bf16 %v3053_v61, %v3052_v41  ;;  %v3115_v33 = vmul.f32 %v9204_v3, %v7793_v38  ;;  %v3054_v28 = vmul.f32 %v9205_v4, %v7793_v38  ;;  %v3216_v52 = vmul.f32 %v9206_v22, %v7793_v38  ;;  %v9215_v61 = vld [vmem:[#allocation31_spill] sm:$0xff]  ;;  %v9231_v3 = vld [vmem:[#allocation30_spill] sm:$0xff] }
 0x544   : > { %3947 = vrot.lane.b32.xlu0 %v5536_v20, %s9077_s19  ;;  %3886 = vrot.lane.b32.xlu1 %v5533_v13, %s9078_s18  ;;  %v2993_v20 = vmul.f32 %v9202_v56, %v7793_v38  ;;  %v2932_v13 = vmul.f32 %v9203_v5, %v7793_v38  ;;  %v5490_v11 = vpack.c.bf16 %v2992_v8, %v2991_v60  ;;  %v3273_v56 = vmul.f32 0.0, %v9190_v39  ;;  %v9233_v4 = vld [vmem:[#allocation59_spill] sm:$0xff] }
 0x545   : > { %v5497_v54 = vpack.c.bf16 %v3115_v33, %v3115_v33  ;;  %v9208_v0 = vpack.c.bf16 %v8091_v30, %v8087_v53  ;;  %v9212_v53 = vld [vmem:[#allocation56_spill] sm:$0xff]  ;;  %v9217_v8 = vpack.c.bf16 %v8155_v32, %v8151_v14  ;;  %v9225_v32 = vld [vmem:[#allocation33_spill] sm:$0xff] }
 0x546   : > { %v5491_v46 = vpack.c.bf16 %v2993_v20, %v2993_v20  ;;  %v5488_v25 = vpack.c.bf16 %v2932_v13, %v2932_v13  ;;  %v9209_v20 = vld [vmem:[#allocation51_spill] sm:$0xff]  ;;  %v3334_v13 = vmul.f32 0.0, %v9197_v58  ;;  %v3338_v30 = vmul.f32 %v9212_v53, %v7793_v38 }
 0x547   : > { %v3277_v5 = vmul.f32 %v9209_v20, %v7793_v38  ;;  %v3395_v58 = vmul.f32 0.0, %v9166_v48  ;;  %v9243_v20 = vld [vmem:[#allocation38_spill] sm:$0xff] }
 0x548   : > { %2953 = vrot.lane.b32.xlu0 %v5487_v19, %s9101_s3  ;;  %3949 = vrot.lane.b32.xlu1 %v5537_v42, %s9077_s19  ;;  %v3050_v19 = vmul.f32 0.0, %v7675_v24  ;;  %v3111_v42 = vmul.f32 0.0, %v9188_v29  ;;  %v5494_v24 = vpack.c.bf16 %v3054_v28, %v3054_v28  ;;  %v5501_v29 = vpack.c.bf16 %v8053_v59, %v3212_v43  ;;  %v9234_v28 = vld [vmem:[#allocation57_spill] sm:$0xff] }
 0x549   : > { %v5504_v59 = vpack.c.bf16 %v8103_v17, %v3273_v56  ;;  %v5506_v41 = vpack.c.bf16 %v3277_v5, %v3277_v5  ;;  %v5509_v17 = vpack.c.bf16 %v3338_v30, %v3338_v30  ;;  %v9244_v5 = vld [vmem:[#allocation46_spill] sm:$0xff] }
 0x54a   : > { %v5495_v47 = vpack.c.bf16 %v3112_v55, %v3111_v42  ;;  %v5492_v12 = vpack.c.bf16 %v3051_v37, %v3050_v19  ;;  %v9221_v55 = vld [vmem:[#allocation49_spill] sm:$0xff]  ;;  %v9226_v19 = vld [vmem:[#allocation58_spill] sm:$0xff] }
 0x54b   : > { %v9227_v42 = vpack.c.bf16 %v9225_v32, %v9226_v19 }
 0x54c   : > { %3012 = vrot.lane.b32.xlu0 %v5489_v44, %s9023_s22  ;;  %2951 = vrot.lane.b32.xlu1 %v5486_v2, %s9101_s3  ;;  %v9207_v44 = vpack.c.bf16 %v8067_v62, %v8057_v34  ;;  %v5503_v2 = vpack.c.bf16 %v3216_v52, %v3216_v52  ;;  %v9210_v34 = vpack.c.bf16 %v8099_v21, %v8095_v7  ;;  %v9211_v62 = vld [vmem:[#allocation39_spill] sm:$0xff]  ;;  %v9213_v7 = vld [vmem:[#allocation29_spill] sm:$0xff] }
 0x54d   : > { %v5507_v39 = vpack.c.bf16 %v9211_v62, %v3334_v13  ;;  %v9214_v21 = vpack.c.bf16 %v8147_v49, %v9213_v7  ;;  %v9220_v49 = vld [vmem:[#allocation53_spill] sm:$0xff]  ;;  %v9245_v13 = vpack.c.bf16 %v9243_v20, %v9244_v5 }
 0x54e   : > { %v9222_v37 = vpack.c.bf16 %v9220_v49, %v9221_v55 }
 0x550   : > { %3016 = vrot.lane.b32.xlu0 %v5491_v46, %s9023_s22  ;;  %2955 = vrot.lane.b32.xlu1 %v5488_v25, %s9101_s3  ;;  %v5510_v46 = vpack.c.bf16 %v9215_v61, %v3395_v58  ;;  %v9216_v25 = vld [vmem:[#allocation34_spill] sm:$0xff] }
 0x551   : > { %v3399_v60 = vmul.f32 %v9216_v25, %v7793_v38  ;;  %v9223_v38 = vld [vmem:[#allocation55_spill] sm:$0xff] }
 0x552   : > { %v9224_v14 = vpack.c.bf16 %v8197_v18, %v9223_v38  ;;  %v9235_v18 = vpack.c.bf16 %v9233_v4, %v9234_v28 }
 0x553   : > { %v5512_v48 = vpack.c.bf16 %v3399_v60, %v3399_v60 }
 0x554   : > { %3075 = vrot.lane.b32.xlu0 %v5493_v15, %s9025_s28  ;;  %3014 = vrot.lane.b32.xlu1 %v5490_v11, %s9023_s22  ;;  %v9218_v15 = vld [vmem:[#allocation50_spill] sm:$0xff] }
 0x555   : > { %v9219_v11 = vpack.c.bf16 %v8171_v40, %v9218_v15  ;;  %v9228_v40 = vld [vmem:[#allocation60_spill] sm:$0xff] }
 0x558   : > { %3134 = vrot.lane.b32.xlu0 %v5495_v47, %s9027_s23  ;;  %3073 = vrot.lane.b32.xlu1 %v5492_v12, %s9025_s28  ;;  %v9229_v47 = vpack.c.bf16 %v8217_v63, %v9228_v40  ;;  %v9230_v12 = vld [vmem:[#allocation52_spill] sm:$0xff]  ;;  %v9238_v63 = vpack.c.bf16 %v8259_v23, %v8255_v1 }
 0x559   : > { %v9232_v33 = vpack.c.bf16 %v9230_v12, %v9231_v3 }
 0x55c   : > { %3138 = vrot.lane.b32.xlu0 %v5497_v54, %s9027_s23  ;;  %3077 = vrot.lane.b32.xlu1 %v5494_v24, %s9025_s28  ;;  %v9236_v54 = vld [vmem:[#allocation61_spill] sm:$0xff] }
 0x55d   : > { %v9237_v24 = vpack.c.bf16 %v8249_v35, %v9236_v54 }
 0x560   : > { %3235 = vrot.lane.b32.xlu0 %v5501_v29, %s9030_s26  ;;  %3136 = vrot.lane.b32.xlu1 %v9207_v44, %s9027_s23  ;;  %v9239_v44 = vpack.c.bf16 %v8269_v36, %v8263_v6  ;;  %v9246_v6 = vld [vmem:[#allocation27_spill] sm:$0xff] }
 0x561   : > { %v9247_v36 = vpack.c.bf16 %v8304_v27, %v9246_v6 }
 0x564   : > { %3239 = vrot.lane.b32.xlu0 %v5503_v2, %s9030_s26  ;;  %3237 = vrot.lane.b32.xlu1 %v9208_v0, %s9030_s26  ;;  %v9240_v2 = vld [vmem:[#allocation26_spill] sm:$0xff] }
 0x565   : > { %v9241_v56 = vpack.c.bf16 %v8277_v50, %v9240_v2 }
 0x568   : > { %3298 = vrot.lane.b32.xlu0 %v9210_v34, %s9032_s30  ;;  %3296 = vrot.lane.b32.xlu1 %v5504_v59, %s9032_s30  ;;  %v4722_v34 = vmul.f32 0.0, %v9216_v25 }
 0x56c   : > { %3357 = vrot.lane.b32.xlu0 %v5507_v39, %s9091_s2  ;;  %3300 = vrot.lane.b32.xlu1 %v5506_v41, %s9032_s30 }
 0x570   : > { %3361 = vrot.lane.b32.xlu0 %v5509_v17, %s9091_s2  ;;  %3359 = vrot.lane.b32.xlu1 %v9214_v21, %s9091_s2  ;;  %v5565_v17 = vpack.c.bf16 %v4722_v34, %v4722_v34 }
 0x574   : > { %3420 = vrot.lane.b32.xlu0 %v9217_v8, %s9037_s21  ;;  %3418 = vrot.lane.b32.xlu1 %v5510_v46, %s9037_s21 }
 0x578   : > { %4386 = vrot.lane.b32.xlu0 %v9219_v11, %s9101_s3  ;;  %3422 = vrot.lane.b32.xlu1 %v5512_v48, %s9037_s21 }
 0x57c   : > { %4433 = vrot.lane.b32.xlu0 %v9222_v37, %s9023_s22  ;;  %4388 = vrot.lane.b32.xlu1 %v9224_v14, %s9101_s3 }
 0x580   : > { %4476 = vrot.lane.b32.xlu0 %v9227_v42, %s9025_s28  ;;  %4431 = vrot.lane.b32.xlu1 %v9229_v47, %s9023_s22  ;;  %s390_s22 = scalar_lea.vmem [#allocation9], %s9278_s13 }
 0x581   : > { %s5001_s19 = sshll.u32 %s390_s22, 4  ;;  %s8695_s19 = int_to_ptr.vmem [resolvable:$true] %s5001_s19 }
 0x582   : > { %s5714_s3 = scalar_lea.vmem %s8695_s19, 512 }
 0x583   : > { %p5715_p4 = scmp.ne.s32.totalorder %s8695_s19, %s5714_s3 }
 0x584   : > { %4523 = vrot.lane.b32.xlu0 %v9232_v33, %s9027_s23  ;;  %4478 = vrot.lane.b32.xlu1 %v9235_v18, %s9025_s28  ;;  %v9254_v18 = vld [vmem:[#allocation28_spill] sm:$0xff] }
 0x585   : > { %v3772_v54 = vrot.slane %v9254_v18, 4  ;;  %p5716_p6 = pnand %p5715_p4, %p5957_p12 }
 0x587   : > { %p5717_p8 = pneg %p5716_p6 }
 0x588   : > { %4608 = vrot.lane.b32.xlu0 %v9237_v24, %s9030_s26  ;;  %4521 = vrot.lane.b32.xlu1 %v9238_v63, %s9027_s23 }
 0x58a   : > { %v3177_v43 = vpop.permute.xlu0 %3176  ;;  %v3175_v29 = vpop.permute.xlu1 %3174 }
 0x58b   : > { %v3181_v22 = vrot.slane %v3177_v43, 4  ;;  %v3180_v52 = vrot.slane %v3175_v29, 4 }
 0x58c   : > { %4651 = vrot.lane.b32.xlu0 %v9239_v44, %s9032_s30  ;;  %4606 = vrot.lane.b32.xlu1 %v9241_v56, %s9030_s26 }
 0x58d   : > { %v3183_v35 = vsel %vm657_vm8, %v3180_v52, %v3181_v22 }
 0x58e   : > { %v8489_v0 = vsel %vm9242_vm6, %v3175_v29, %v3183_v35  ;;  %v4562_v23 = vpop.permute.xlu0 %4561  ;;  %v3179_v1 = vpop.permute.xlu1 %3178  ;;  %vm9251_vm6 = vcmask 64512  }
 0x58f   : > { %v3182_v59 = vrot.slane %v3179_v1, 4  ;;  %v4567_v53 = vrot.slane %v4562_v23, 4 }
 0x590   : > { %4698 = vrot.lane.b32.xlu0 %v9245_v13, %s9091_s2  ;;  %4653 = vrot.lane.b32.xlu1 %v9247_v36, %s9032_s30 }
 0x591   : > { %v3185_v50 = vsel %vm657_vm8, %v3181_v22, %v3182_v59 }
 0x592   : > { %v3501_v62 = vpop.permute.xlu0 %3500  ;;  %v8501_v39 = vpop.permute.xlu1 %4563  ;;  %v8504_v41 = vsel %vm9248_vm0, %v3177_v43, %v3185_v50  ;;  %vm9252_vm0 = vmmov %vm9251_vm6 }
 0x593   : > { %v4568_v30 = vrot.slane %v8501_v39, 4  ;;  %v3505_v61 = vrot.slane %v3501_v62, 4 }
 0x594   : > { %4741 = vrot.lane.b32.xlu0 %v5563_v10, %s9037_s21  ;;  %4696 = vrot.lane.b32.xlu1 %v5560_v26, %s9091_s2  ;;  %s8693_s2 = scalar_lea.hbm %s8747_s10, %s5566_s27 }
 0x595   : > { %v4570_v27 = vsel %vm657_vm8, %v4567_v53, %v4568_v30 }
 0x596   : > { %v3560_v58 = vpop.permute.xlu0 %3559  ;;  %v3499_v7 = vpop.permute.xlu1 %3498  ;;  %v8519_v21 = vsel %vm9249_vm2, %v4562_v23, %v4570_v27  ;;  %vm9253_vm2 = vmmov %vm9201_vm7 }
 0x597   : > { %v3504_v26 = vrot.slane %v3499_v7, 4  ;;  %v3565_v60 = vrot.slane %v3560_v58, 4 }
 0x598   : > { %4745 = vrot.lane.b32.xlu0 %v5565_v17, %s9037_s21  ;;  %4743 = vrot.lane.b32.xlu1 %v9250_v16, %s9037_s21  ;;  %v9255_v17 = vld [vmem:[#allocation45_spill] sm:$0xff] }
 0x599   : > { %v3507_v31 = vsel %vm657_vm8, %v3504_v26, %v3505_v61 }
 0x59a   : > { %v3564_v45 = vpop.permute.xlu0 %3563  ;;  %v3503_v9 = vpop.permute.xlu1 %3502  ;;  %v3508_v32 = vsel %vm9253_vm2, %v3499_v7, %v3507_v31  ;;  %v9256_v7 = vld [vmem:[#allocation35_spill] sm:$0xff] }
 0x59b   : > { %v3506_v10 = vrot.slane %v3503_v9, 4  ;;  %v3567_v8 = vrot.slane %v3564_v45, 4  ;;  %v3833_v16 = vrot.slane %v9256_v7, 4 }
 0x59c   : > { %4971 = vperm.xlu1 %5646, %v2758_v51  }
 0x59d   : > { %v3509_v48 = vsel %vm657_vm8, %v3505_v61, %v3506_v10  ;;  %v9257_v10 = vld [vmem:[#allocation17_spill] sm:$0xff] }
 0x59e   : > { %v3623_v46 = vpop.permute.xlu0 %3622  ;;  %v3562_v25 = vpop.permute.xlu1 %3561  ;;  %v3510_v49 = vsel %vm9201_vm7, %v3501_v62, %v3509_v48  ;;  %v3894_v26 = vrot.slane %v9257_v10, 4 }
 0x59f   : > { %v3566_v15 = vrot.slane %v3562_v25, 4  ;;  %v3627_v28 = vrot.slane %v3623_v46, 4 }
 0x5a1   : > { %v3568_v57 = vsel %vm657_vm8, %v3565_v60, %v3566_v15  ;;  %v3570_v11 = vsel %vm657_vm8, %v3566_v15, %v3567_v8  ;;  %v9258_v8 = vld [vmem:[#allocation44_spill] sm:$0xff] }
 0x5a2   : > { %v3571_v55 = vsel %vm9251_vm6, %v3562_v25, %v3570_v11  ;;  %v3682_v37 = vpop.permute.xlu0 %3681  ;;  %v3621_v38 = vpop.permute.xlu1 %3620  ;;  %v3569_v14 = vsel %vm9252_vm0, %v3560_v58, %v3568_v57 }
 0x5a3   : > { %v5302_v19 = vcombine.low %v3510_v49, %v3571_v55  ;;  %v5303_v42 = vcombine.high %v3510_v49, %v3571_v55  ;;  %v5300_v40 = vcombine.low %v3508_v32, %v3569_v14  ;;  %v5301_v47 = vcombine.high %v3508_v32, %v3569_v14 }
 0x5a4   : > { %v3626_v4 = vrot.slane %v3621_v38, 4  ;;  %v3687_v24 = vrot.slane %v3682_v37, 4 }
 0x5a5   : > { %4130 = vmatprep.subr.bf16.mxu1 %v5303_v42  ;;  %4089 = vmatprep.subr.bf16.mxu0 %v5301_v47  ;;  %v9260_v47 = vld [vmem:[#allocation37_spill] sm:$0xff] }
 0x5a6   : > { %v3686_v12 = vpop.permute.xlu0 %3685  ;;  %4131 = vmatpush1.bf16.msra.mxu1 %v5302_v19  ;;  %v3625_v3 = vpop.permute.xlu1 %3624  ;;  %4090 = vmatpush1.bf16.msra.mxu0 %v5300_v40  ;;  %v3629_v2 = vsel %vm657_vm8, %v3626_v4, %v3627_v28 }
 0x5a7   : > { %v3628_v33 = vrot.slane %v3625_v3, 4  ;;  %v3689_v29 = vrot.slane %v3686_v12, 4  ;;  %v3630_v36 = vsel %vm1349_vm5, %v3621_v38, %v3629_v2  ;;  %v3955_v12 = vrot.slane %v9260_v47, 4 }
 0x5a9   : > { %v3631_v22 = vsel %vm657_vm8, %v3627_v28, %v3628_v33 }
 0x5aa   : > { %v3767_v63 = vpop.permute.xlu0 %3766  ;;  %v3684_v43 = vpop.permute.xlu1 %3683  ;;  %v3632_v59 = vsel %vm1349_vm5, %v3623_v46, %v3631_v22  ;;  %vm9262_vm5 = vcmask 973824  }
 0x5ab   : > { %v3771_v52 = vrot.slane %v3767_v63, 4  ;;  %v3688_v44 = vrot.slane %v3684_v43, 4  ;;  %vm9263_vm7 = vmmov %vm9262_vm5 }
 0x5ad   : > { %v3775_v56 = vsel %vm657_vm8, %v3771_v52, %v3772_v54  ;;  %v3690_v35 = vsel %vm657_vm8, %v3687_v24, %v3688_v44  ;;  %v3692_v23 = vsel %vm657_vm8, %v3688_v44, %v3689_v29 }
 0x5ae   : > { %v3776_v1 = vsel %vm1370_vm3, %v3767_v63, %v3775_v56  ;;  %v3693_v20 = vsel %vm1412_vm4, %v3684_v43, %v3692_v23  ;;  %v3826_v5 = vpop.permute.xlu0 %3825  ;;  %v3765_v13 = vpop.permute.xlu1 %3764  ;;  %v3691_v6 = vsel %vm1412_vm4, %v3682_v37, %v3690_v35  ;;  %vm9259_vm4 = vcmask 990208  }
 0x5af   : > { %v5306_v50 = vcombine.low %v3632_v59, %v3693_v20  ;;  %v5307_v34 = vcombine.high %v3632_v59, %v3693_v20  ;;  %v3770_v62 = vrot.slane %v3765_v13, 4  ;;  %v5304_v53 = vcombine.low %v3630_v36, %v3691_v6 }
 0x5b0   : > { %v5305_v27 = vcombine.high %v3630_v36, %v3691_v6  ;;  %v5311_v58 = vcombine.high %v9255_v17, %v3776_v1  ;;  %v5310_v60 = vcombine.low %v9255_v17, %v3776_v1  ;;  %v3831_v31 = vrot.slane %v3826_v5, 4  ;;  %v5299_v6 = vld [vmem:[%s8745_s8 + $0x4] sm:$0xf] }
 0x5b1   : > { %4132 = vmatprep.subr.bf16.mxu1 %v5307_v34  ;;  %v3773_v51 = vsel %vm657_vm8, %v3770_v62, %v3771_v52 }
 0x5b2   : > { %4091 = vmatprep.subr.bf16.mxu0 %v5305_v27  ;;  %v3889_v45 = vpop.permute.xlu0 %3888  ;;  %4133 = vmatpush1.bf16.msra.mxu1 %v5306_v50  ;;  %v3828_v9 = vpop.permute.xlu1 %3827  ;;  %v3774_v61 = vsel %vm1370_vm3, %v3765_v13, %v3773_v51  ;;  %vm9261_vm3 = vmmov %vm9259_vm4  ;;  %v9264_v27 = vmov 0  }
 0x5b3   : > { %v3893_v46 = vrot.slane %v3889_v45, 4  ;;  %4092 = vmatpush1.bf16.msra.mxu0 %v5304_v53  ;;  %v3832_v25 = vrot.slane %v3828_v9, 4  ;;  %4134 = vmatprep.subr.bf16.mxu1 %v5311_v58  ;;  %v5308_v48 = vcombine.low %v9258_v8, %v3774_v61  ;;  %v5309_v15 = vcombine.high %v9258_v8, %v3774_v61 }
 0x5b5   : > { %v3897_v57 = vsel %vm657_vm8, %v3893_v46, %v3894_v26  ;;  %v3836_v11 = vsel %vm657_vm8, %v3832_v25, %v3833_v16  ;;  %4093 = vmatprep.subr.bf16.mxu0 %v5309_v15  ;;  %v3834_v19 = vsel %vm657_vm8, %v3831_v31, %v3832_v25 }
 0x5b6   : > { %v3898_v49 = vsel %vm1244_vm1, %v3889_v45, %v3897_v57  ;;  %v3837_v55 = vsel %vm9259_vm4, %v3828_v9, %v3836_v11  ;;  %v3948_v37 = vpop.permute.xlu0 %3947  ;;  %4135 = vmatpush1.bf16.msra.mxu1 %v5310_v60  ;;  %v3887_v38 = vpop.permute.xlu1 %3886  ;;  %v3835_v3 = vsel %vm9261_vm3, %v3826_v5, %v3834_v19 }
 0x5b7   : > { %v5314_v14 = vcombine.low %v3837_v55, %v3898_v49  ;;  %v5315_v32 = vcombine.high %v3837_v55, %v3898_v49  ;;  %4094 = vmatpush1.bf16.msra.mxu0 %v5308_v48  ;;  %v3892_v42 = vrot.slane %v3887_v38, 4  ;;  %v3953_v18 = vrot.slane %v3948_v37, 4 }
 0x5b9   : > { %v3895_v40 = vsel %vm657_vm8, %v3892_v42, %v3893_v46  ;;  %4136 = vmatprep.subr.bf16.mxu1 %v5315_v32 }
 0x5ba   : > { %v3896_v33 = vsel %vm1244_vm1, %v3887_v38, %v3895_v40  ;;  %v2954_v4 = vpop.permute.xlu0 %2953  ;;  %4137 = vmatpush1.bf16.msra.mxu1 %v5314_v14  ;;  %v3950_v28 = vpop.permute.xlu1 %3949  ;;  %vm9265_vm1 = vcmask 449536  }
 0x5bb   : > { %v5312_v54 = vcombine.low %v3835_v3, %v3896_v33  ;;  %v5313_v24 = vcombine.high %v3835_v3, %v3896_v33  ;;  %v3954_v63 = vrot.slane %v3950_v28, 4  ;;  %v2958_v34 = vrot.slane %v2954_v4, 4  ;;  %vm9268_vm6 = vmmov %vm9265_vm1 }
 0x5bd   : > { %v3956_v43 = vsel %vm657_vm8, %v3953_v18, %v3954_v63  ;;  %v3958_v29 = vsel %vm657_vm8, %v3954_v63, %v3955_v12  ;;  %4095 = vmatprep.subr.bf16.mxu0 %v5313_v24 }
 0x5be   : > { %v3959_v22 = vsel %vm9262_vm5, %v3950_v28, %v3958_v29  ;;  %4096 = vmatpush1.bf16.msra.mxu0 %v5312_v54  ;;  %v3013_v52 = vpop.permute.xlu0 %3012  ;;  %v2952_v44 = vpop.permute.xlu1 %2951  ;;  %v3957_v2 = vsel %vm9263_vm7, %v3948_v37, %v3956_v43 }
 0x5bf   : > { %v5318_v56 = vcombine.low %v3959_v22, %v3959_v22  ;;  %v5319_v35 = vcombine.high %v3959_v22, %v3959_v22  ;;  %v5317_v23 = vcombine.high %v3957_v2, %v3957_v2  ;;  %v5316_v1 = vcombine.low %v3957_v2, %v3957_v2 }
 0x5c0   : > { %v2957_v50 = vrot.slane %v2952_v44, 4  ;;  %v3018_v17 = vrot.slane %v3013_v52, 4 }
 0x5c1   : > { %5322 = vmatprep.subr.msk.bf16.mxu1 %vm657_vm8, %v5319_v35  ;;  %v4084_v59 = vsel %vm657_vm8, %v5318_v56, 0  ;;  %5320 = vmatprep.subr.msk.bf16.mxu0 %vm657_vm8, %v5317_v23  ;;  %v4078_v20 = vsel %vm657_vm8, %v5316_v1, 0 }
 0x5c2   : > { %4139 = vmatpush1.bf16.msra.mxu1 %v4084_v59  ;;  %v3017_v5 = vpop.permute.xlu0 %3016  ;;  %v2956_v13 = vpop.permute.xlu1 %2955  ;;  %4098 = vmatpush1.bf16.msra.mxu0 %v4078_v20  ;;  %v2960_v51 = vsel %vm657_vm8, %v2957_v50, %v2958_v34 }
 0x5c3   : > { %v2959_v36 = vrot.slane %v2956_v13, 4  ;;  %v3020_v58 = vrot.slane %v3017_v5, 4  ;;  %v2961_v60 = vsel %vm659_vm15, %v2952_v44, %v2960_v51 }
 0x5c5   : > { %5323 = vmatmul.mubr.msk.bf16.vlgmr.msra.gmra.mrb[12].mxu1 %vm722_vm14, %v5299_v6  ;;  %5321 = vmatmul.mubr.msk.bf16.vlgmr.msra.gmra.mrb[12].mxu0 %vm722_vm14, %v5299_v6  ;;  %v2962_v7 = vsel %vm657_vm8, %v2958_v34, %v2959_v36 }
 0x5c6   : > { %v3076_v62 = vpop.permute.xlu0 %3075  ;;  %v3015_v53 = vpop.permute.xlu1 %3014  ;;  %4349 = vmatprep.mubr.bf16.mxu1 %v9264_v27  ;;  %4308 = vmatprep.mubr.bf16.mxu0 %v9264_v27  ;;  %v2963_v10 = vsel %vm659_vm15, %v2954_v4, %v2962_v7 }
 0x5c7   : > { %v3019_v16 = vrot.slane %v3015_v53, 4  ;;  %v3080_v37 = vrot.slane %v3076_v62, 4 }
 0x5c9   : > { %v3021_v45 = vsel %vm657_vm8, %v3018_v17, %v3019_v16  ;;  %v3023_v9 = vsel %vm657_vm8, %v3019_v16, %v3020_v58 }
 0x5ca   : > { %v3024_v26 = vsel %vm722_vm14, %v3015_v53, %v3023_v9  ;;  %v3135_v61 = vpop.permute.xlu0 %3134  ;;  %v3074_v46 = vpop.permute.xlu1 %3073  ;;  %v3022_v25 = vsel %vm722_vm14, %v3013_v52, %v3021_v45 }
 0x5cb   : > { %v5326_v8 = vcombine.low %v2963_v10, %v3024_v26  ;;  %v5327_v48 = vcombine.high %v2963_v10, %v3024_v26  ;;  %v5324_v15 = vcombine.low %v2961_v60, %v3022_v25  ;;  %v5325_v31 = vcombine.high %v2961_v60, %v3022_v25 }
 0x5cc   : > { %v3079_v57 = vrot.slane %v3074_v46, 4  ;;  %v3140_v19 = vrot.slane %v3135_v61, 4 }
 0x5cd   : > { %4317 = vmatprep.subr.bf16.mxu1 %v5327_v48  ;;  %4276 = vmatprep.subr.bf16.mxu0 %v5325_v31 }
 0x5ce   : > { %v3139_v11 = vpop.permute.xlu0 %3138  ;;  %4318 = vmatpush1.bf16.msra.mxu1 %v5326_v8  ;;  %v3078_v49 = vpop.permute.xlu1 %3077  ;;  %4277 = vmatpush1.bf16.msra.mxu0 %v5324_v15  ;;  %v3082_v38 = vsel %vm657_vm8, %v3079_v57, %v3080_v37 }
 0x5cf   : > { %v3081_v55 = vrot.slane %v3078_v49, 4  ;;  %v3142_v42 = vrot.slane %v3139_v11, 4  ;;  %v3083_v12 = vsel %vm785_vm13, %v3074_v46, %v3082_v38 }
 0x5d1   : > { %v3084_v40 = vsel %vm657_vm8, %v3080_v37, %v3081_v55 }
 0x5d2   : > { %v3236_v14 = vpop.permute.xlu0 %3235  ;;  %v3137_v32 = vpop.permute.xlu1 %3136  ;;  %v3085_v28 = vsel %vm785_vm13, %v3076_v62, %v3084_v40 }
 0x5d3   : > { %v3141_v47 = vrot.slane %v3137_v32, 4  ;;  %v3241_v4 = vrot.slane %v3236_v14, 4 }
 0x5d5   : > { %v3143_v3 = vsel %vm657_vm8, %v3140_v19, %v3141_v47  ;;  %v3145_v33 = vsel %vm657_vm8, %v3141_v47, %v3142_v42 }
 0x5d6   : > { %v3146_v18 = vsel %vm848_vm12, %v3137_v32, %v3145_v33  ;;  %v3240_v54 = vpop.permute.xlu0 %3239  ;;  %v3238_v24 = vpop.permute.xlu1 %3237  ;;  %v3144_v63 = vsel %vm848_vm12, %v3135_v61, %v3143_v3  ;;  %v9267_v33 = vld [vmem:[#allocation18_spill] sm:$0xff] }
 0x5d7   : > { %v5330_v43 = vcombine.low %v3085_v28, %v3146_v18  ;;  %v5331_v29 = vcombine.high %v3085_v28, %v3146_v18  ;;  %v3243_v22 = vrot.slane %v3240_v54, 4  ;;  %v3242_v52 = vrot.slane %v3238_v24, 4 }
 0x5d8   : > { %v5328_v44 = vcombine.low %v3083_v12, %v3144_v63  ;;  %v5329_v2 = vcombine.high %v3083_v12, %v3144_v63  ;;  %v9266_v12 = vld [vmem:[#allocation20_spill] sm:$0xff] }
 0x5d9   : > { %v3244_v56 = vsel %vm657_vm8, %v3241_v4, %v3242_v52  ;;  %v3246_v35 = vsel %vm657_vm8, %v3242_v52, %v3243_v22  ;;  %4319 = vmatprep.subr.bf16.mxu1 %v5331_v29  ;;  %v4394_v3 = vrot.slane %v9266_v12, 4  ;;  %v4439_v4 = vrot.slane %v9267_v33, 4 }
 0x5da   : > { %v3247_v23 = vsel %vm806_vm11, %v3238_v24, %v3246_v35  ;;  %4278 = vmatprep.subr.bf16.mxu0 %v5329_v2  ;;  %v3299_v1 = vpop.permute.xlu0 %3298  ;;  %4320 = vmatpush1.bf16.msra.mxu1 %v5330_v43  ;;  %v3297_v59 = vpop.permute.xlu1 %3296  ;;  %v3245_v20 = vsel %vm806_vm11, %v3236_v14, %v3244_v56  ;;  %v3435_v43 = vld [vmem:[%s8745_s8] sm:$0xf] }
 0x5db   : > { %v5334_v5 = vcombine.low %v8504_v41, %v3247_v23  ;;  %v5335_v13 = vcombine.high %v8504_v41, %v3247_v23  ;;  %4279 = vmatpush1.bf16.msra.mxu0 %v5328_v44  ;;  %v5332_v6 = vcombine.low %v8489_v0, %v3245_v20  ;;  %v5333_v36 = vcombine.high %v8489_v0, %v3245_v20 }
 0x5dc   : > { %v3303_v50 = vrot.slane %v3299_v1, 4  ;;  %v3302_v34 = vrot.slane %v3297_v59, 4 }
 0x5dd   : > { %4321 = vmatprep.subr.bf16.mxu1 %v5335_v13  ;;  %4280 = vmatprep.subr.bf16.mxu0 %v5333_v36 }
 0x5de   : > { %v3358_v62 = vpop.permute.xlu0 %3357  ;;  %4322 = vmatpush1.bf16.msra.mxu1 %v5334_v5  ;;  %v3301_v53 = vpop.permute.xlu1 %3300  ;;  %v3305_v58 = vsel %vm657_vm8, %v3302_v34, %v3303_v50 }
 0x5df   : > { %4281 = vmatpush1.bf16.msra.mxu0 %v5332_v6  ;;  %v3304_v17 = vrot.slane %v3301_v53, 4  ;;  %v3363_v51 = vrot.slane %v3358_v62, 4  ;;  %v3306_v26 = vsel %vm743_vm10, %v3297_v59, %v3305_v58 }
 0x5e1   : > { %v3307_v41 = vsel %vm657_vm8, %v3303_v50, %v3304_v17  ;;  %v9269_v50 = vld [vmem:[#allocation19_spill] sm:$0xff] }
 0x5e2   : > { %v3362_v7 = vpop.permute.xlu0 %3361  ;;  %v3360_v16 = vpop.permute.xlu1 %3359  ;;  %v3308_v61 = vsel %vm743_vm10, %v3299_v1, %v3307_v41  ;;  %v4484_v34 = vrot.slane %v9269_v50, 4 }
 0x5e3   : > { %v3365_v45 = vrot.slane %v3362_v7, 4  ;;  %v3364_v9 = vrot.slane %v3360_v16, 4 }
 0x5e5   : > { %v3366_v0 = vsel %vm657_vm8, %v3363_v51, %v3364_v9  ;;  %v3368_v10 = vsel %vm657_vm8, %v3364_v9, %v3365_v45 }
 0x5e6   : > { %v3369_v46 = vsel %vm680_vm9, %v3360_v16, %v3368_v10  ;;  %v3421_v25 = vpop.permute.xlu0 %3420  ;;  %v3419_v60 = vpop.permute.xlu1 %3418  ;;  %v3367_v8 = vsel %vm680_vm9, %v3358_v62, %v3366_v0  ;;  %v9270_v62 = vld [vmem:[#allocation48_spill] sm:$0xff]  ;;  %v9271_v0 = vld [vmem:[#allocation41_spill] sm:$0xff] }
 0x5e7   : > { %v5338_v48 = vcombine.low %v3308_v61, %v3369_v46  ;;  %v5339_v15 = vcombine.high %v3308_v61, %v3369_v46  ;;  %v3425_v31 = vrot.slane %v3421_v25, 4  ;;  %v3424_v57 = vrot.slane %v3419_v60, 4  ;;  %v9272_v61 = vld [vmem:[#allocation47_spill] sm:$0xff] }
 0x5e8   : > { %v5336_v11 = vcombine.low %v3306_v26, %v3367_v8  ;;  %v5337_v49 = vcombine.high %v3306_v26, %v3367_v8  ;;  %v4529_v53 = vrot.slane %v9270_v62, 4  ;;  %v4569_v10 = vrot.slane %v9271_v0, 4 }
 0x5e9   : > { %v3427_v55 = vsel %vm657_vm8, %v3424_v57, %v3425_v31  ;;  %4323 = vmatprep.subr.bf16.mxu1 %v5339_v15  ;;  %v4614_v46 = vrot.slane %v9272_v61, 4 }
 0x5ea   : > { %v3428_v37 = vsel %vm9265_vm1, %v3419_v60, %v3427_v55  ;;  %4282 = vmatprep.subr.bf16.mxu0 %v5337_v49  ;;  %v4387_v38 = vpop.permute.xlu0 %4386  ;;  %4324 = vmatpush1.bf16.msra.mxu1 %v5338_v48  ;;  %v3423_v14 = vpop.permute.xlu1 %3422  ;;  %v4572_v8 = vsel %vm657_vm8, %v4568_v30, %v4569_v10 }
 0x5eb   : > { %v5340_v32 = vcombine.low %v3428_v37, %v3428_v37  ;;  %v5341_v19 = vcombine.high %v3428_v37, %v3428_v37  ;;  %4283 = vmatpush1.bf16.msra.mxu0 %v5336_v11  ;;  %v3426_v42 = vrot.slane %v3423_v14, 4  ;;  %v4392_v52 = vrot.slane %v4387_v38, 4 }
 0x5ed   : > { %v3429_v40 = vsel %vm657_vm8, %v3425_v31, %v3426_v42  ;;  %5344 = vmatprep.subr.msk.bf16.mxu0 %vm657_vm8, %v5341_v19  ;;  %v4265_v47 = vsel %vm657_vm8, %v5340_v32, 0 }
 0x5ee   : > { %v3430_v28 = vsel %vm9268_vm6, %v3421_v25, %v3429_v40  ;;  %v4434_v18 = vpop.permute.xlu0 %4433  ;;  %v4389_v54 = vpop.permute.xlu1 %4388 }
 0x5ef   : > { %v4438_v24 = vrot.slane %v4434_v18, 4  ;;  %4285 = vmatpush1.bf16.msra.mxu0 %v4265_v47  ;;  %v4393_v63 = vrot.slane %v4389_v54, 4  ;;  %v5343_v29 = vcombine.high %v3430_v28, %v3430_v28  ;;  %v5342_v22 = vcombine.low %v3430_v28, %v3430_v28 }
 0x5f1   : > { %v4442_v44 = vsel %vm657_vm8, %v4438_v24, %v4439_v4  ;;  %v4397_v2 = vsel %vm657_vm8, %v4393_v63, %v4394_v3  ;;  %5346 = vmatprep.subr.msk.bf16.mxu1 %vm657_vm8, %v5343_v29  ;;  %v4271_v56 = vsel %vm657_vm8, %v5342_v22, 0  ;;  %v4395_v13 = vsel %vm657_vm8, %v4392_v52, %v4393_v63 }
 0x5f2   : > { %v4443_v35 = vsel %vm722_vm14, %v4434_v18, %v4442_v44  ;;  %v4398_v23 = vsel %vm659_vm15, %v4389_v54, %v4397_v2  ;;  %5345 = vmatmul.mubr.msk.bf16.vlgmr.msra.gmra.mrb[16].mxu0 %vm722_vm14, %v3435_v43  ;;  %v4477_v1 = vpop.permute.xlu0 %4476  ;;  %4326 = vmatpush1.bf16.msra.mxu1 %v4271_v56  ;;  %v4432_v59 = vpop.permute.xlu1 %4431  ;;  %v4396_v17 = vsel %vm659_vm15, %v4387_v38, %v4395_v13  ;;  %vm9273_vm15 = vcmask 523264   ;;  %v9274_v18 = vld [vmem:[#allocation42_spill] sm:$0xff] }
 0x5f3   : > { %v5378_v20 = vcombine.low %v4398_v23, %v4443_v35  ;;  %v5379_v5 = vcombine.high %v4398_v23, %v4443_v35  ;;  %v4437_v6 = vrot.slane %v4432_v59, 4  ;;  %4915 = vmatprep.mubr.bf16.mxu0 %v9264_v27  ;;  %v4482_v26 = vrot.slane %v4477_v1, 4 }
 0x5f4   : > { %v4573_v30 = vsel %vm9273_vm15, %v8501_v39, %v4572_v8  ;;  %v4659_v54 = vrot.slane %v9274_v18, 4 }
 0x5f5   : > { %v4440_v36 = vsel %vm657_vm8, %v4437_v6, %v4438_v24  ;;  %5347 = vmatmul.mubr.msk.bf16.vlgmr.msra.gmra.mrb[16].mxu1 %vm722_vm14, %v3435_v43  ;;  %4924 = vmatprep.subr.bf16.mxu1 %v5379_v5  ;;  %v9275_v43 = vld [vmem:[#allocation43_spill] sm:$0xff] }
 0x5f6   : > { %v4441_v58 = vsel %vm722_vm14, %v4432_v59, %v4440_v36  ;;  %v4524_v7 = vpop.permute.xlu0 %4523  ;;  %4925 = vmatpush1.bf16.msra.mxu1 %v5378_v20  ;;  %v4479_v16 = vpop.permute.xlu1 %4478  ;;  %4956 = vmatprep.mubr.bf16.mxu1 %v9264_v27  ;;  %v4704_v29 = vrot.slane %v9275_v43, 4 }
 0x5f7   : > { %v5376_v51 = vcombine.low %v4396_v17, %v4441_v58  ;;  %v5377_v41 = vcombine.high %v4396_v17, %v4441_v58  ;;  %v4528_v45 = vrot.slane %v4524_v7, 4  ;;  %v4483_v9 = vrot.slane %v4479_v16, 4 }
 0x5f9   : > { %v4532_v25 = vsel %vm657_vm8, %v4528_v45, %v4529_v53  ;;  %v4487_v60 = vsel %vm657_vm8, %v4483_v9, %v4484_v34  ;;  %4883 = vmatprep.subr.bf16.mxu0 %v5377_v41  ;;  %v4485_v31 = vsel %vm657_vm8, %v4482_v26, %v4483_v9 }
 0x5fa   : > { %v4533_v27 = vsel %vm848_vm12, %v4524_v7, %v4532_v25  ;;  %v4488_v48 = vsel %vm785_vm13, %v4479_v16, %v4487_v60  ;;  %v4609_v15 = vpop.permute.xlu0 %4608  ;;  %4884 = vmatpush1.bf16.msra.mxu0 %v5376_v51  ;;  %v4522_v57 = vpop.permute.xlu1 %4521  ;;  %v4486_v19 = vsel %vm785_vm13, %v4477_v1, %v4485_v31 }
 0x5fb   : > { %v5382_v11 = vcombine.low %v4488_v48, %v4533_v27  ;;  %v5383_v49 = vcombine.high %v4488_v48, %v4533_v27  ;;  %v4613_v55 = vrot.slane %v4609_v15, 4  ;;  %v4527_v37 = vrot.slane %v4522_v57, 4  ;;  %v5375_v48 = vld [vmem:[%s8745_s8 + $0x8] sm:$0xf] }
 0x5fd   : > { %v4617_v38 = vsel %vm657_vm8, %v4613_v55, %v4614_v46  ;;  %v4530_v14 = vsel %vm657_vm8, %v4527_v37, %v4528_v45  ;;  %4926 = vmatprep.subr.bf16.mxu1 %v5383_v49 }
 0x5fe   : > { %v4618_v32 = vsel %vm806_vm11, %v4609_v15, %v4617_v38  ;;  %v4531_v42 = vsel %vm848_vm12, %v4522_v57, %v4530_v14  ;;  %v4652_v40 = vpop.permute.xlu0 %4651  ;;  %4927 = vmatpush1.bf16.msra.mxu1 %v5382_v11  ;;  %v4607_v47 = vpop.permute.xlu1 %4606  ;;  %vm9277_vm12 = vmmov %vm9265_vm1 }
 0x5ff   : > { %v5386_v12 = vcombine.low %v4573_v30, %v4618_v32  ;;  %v5387_v3 = vcombine.high %v4573_v30, %v4618_v32  ;;  %v5380_v33 = vcombine.low %v4486_v19, %v4531_v42  ;;  %v5381_v4 = vcombine.high %v4486_v19, %v4531_v42 }
 0x600   : > { %v4612_v28 = vrot.slane %v4607_v47, 4  ;;  %v4657_v35 = vrot.slane %v4652_v40, 4 }
 0x601   : > { %4885 = vmatprep.subr.bf16.mxu0 %v5381_v4  ;;  %4928 = vmatprep.subr.bf16.mxu1 %v5387_v3 }
 0x602   : > { %v4615_v39 = vsel %vm657_vm8, %v4612_v28, %v4613_v55  ;;  %v4699_v24 = vpop.permute.xlu0 %4698  ;;  %4886 = vmatpush1.bf16.msra.mxu0 %v5380_v33  ;;  %4929 = vmatpush1.bf16.msra.mxu1 %v5386_v12  ;;  %v4654_v63 = vpop.permute.xlu1 %4653 }
 0x603   : > { %v4616_v22 = vsel %vm806_vm11, %v4607_v47, %v4615_v39  ;;  %v4703_v52 = vrot.slane %v4699_v24, 4  ;;  %v4658_v44 = vrot.slane %v4654_v63, 4  ;;  %vm9276_vm11 = vmmov %vm9265_vm1 }
 0x604   : > { %v5384_v2 = vcombine.low %v8519_v21, %v4616_v22  ;;  %v5385_v56 = vcombine.high %v8519_v21, %v4616_v22 }
 0x605   : > { %v4707_v23 = vsel %vm657_vm8, %v4703_v52, %v4704_v29  ;;  %v4662_v1 = vsel %vm657_vm8, %v4658_v44, %v4659_v54  ;;  %v4660_v50 = vsel %vm657_vm8, %v4657_v35, %v4658_v44 }
 0x606   : > { %v4708_v59 = vsel %vm680_vm9, %v4699_v24, %v4707_v23  ;;  %v4663_v20 = vsel %vm743_vm10, %v4654_v63, %v4662_v1  ;;  %4887 = vmatprep.subr.bf16.mxu0 %v5385_v56  ;;  %v4742_v5 = vpop.permute.xlu0 %4741  ;;  %v4697_v13 = vpop.permute.xlu1 %4696  ;;  %v4661_v53 = vsel %vm743_vm10, %v4652_v40, %v4660_v50  ;;  %v5654_v50 = vld [vmem:[%s6008_s24 + $0x8] sm:$0xff] }
 0x607   : > { %v5390_v6 = vcombine.low %v4663_v20, %v4708_v59  ;;  %v5391_v36 = vcombine.high %v4663_v20, %v4708_v59  ;;  %4888 = vmatpush1.bf16.msra.mxu0 %v5384_v2  ;;  %v4702_v34 = vrot.slane %v4697_v13, 4  ;;  %v4747_v62 = vrot.slane %v4742_v5, 4 }
 0x609   : > { %v4705_v21 = vsel %vm657_vm8, %v4702_v34, %v4703_v52  ;;  %4930 = vmatprep.subr.bf16.mxu1 %v5391_v36 }
 0x60a   : > { %v4706_v17 = vsel %vm680_vm9, %v4697_v13, %v4705_v21  ;;  %v4746_v58 = vpop.permute.xlu0 %4745  ;;  %4931 = vmatpush1.bf16.msra.mxu1 %v5390_v6  ;;  %v4744_v7 = vpop.permute.xlu1 %4743  ;;  %v5653_v6 = vld [vmem:[%s6008_s24 + $0x10] sm:$0xff]  ;;  %v5655_v21 = vld [vmem:[%s6008_s24 + $0x18] sm:$0xff] }
 0x60b   : > { %v5388_v16 = vcombine.low %v4661_v53, %v4706_v17  ;;  %v5389_v51 = vcombine.high %v4661_v53, %v4706_v17  ;;  %v4749_v41 = vrot.slane %v4746_v58, 4  ;;  %v4748_v45 = vrot.slane %v4744_v7, 4 }
 0x60d   : > { %v4750_v9 = vsel %vm657_vm8, %v4747_v62, %v4748_v45  ;;  %v4752_v0 = vsel %vm657_vm8, %v4748_v45, %v4749_v41  ;;  %4889 = vmatprep.subr.bf16.mxu0 %v5389_v51 }
 0x60e   : > { %v4753_v10 = vsel %vm9276_vm11, %v4744_v7, %v4752_v0  ;;  %4890 = vmatpush1.bf16.msra.mxu0 %v5388_v16  ;;  %v4751_v26 = vsel %vm9277_vm12, %v4742_v5, %v4750_v9  ;;  %v5652_v5 = vld [vmem:[%s6008_s24] sm:$0xff]  ;;  %s5810_s24 = smov [#allocation9]  }
 0x60f   : > { %v5394_v61 = vcombine.low %v4753_v10, %v4753_v10  ;;  %v5395_v46 = vcombine.high %v4753_v10, %v4753_v10  ;;  %v5393_v25 = vcombine.high %v4751_v26, %v4751_v26  ;;  %v5392_v60 = vcombine.low %v4751_v26, %v4751_v26  ;;  %s5718_s5 = sshll.u32 %s5810_s24, 4  ;;  %s5719_s5 = int_to_ptr.vmem [resolvable:$false] %s5718_s5 }
 0x610   : > { %s5720_s4 = scalar_lea.vmem %s5719_s5, 1024  ;;  %p5721_p10 = scmp.lt.s32.totalorder %s8695_s19, %s5719_s5 }
 0x611   : > { %5396 = vmatprep.subr.msk.bf16.mxu0 %vm657_vm8, %v5393_v25  ;;  %5398 = vmatprep.subr.msk.bf16.mxu1 %vm657_vm8, %v5395_v46  ;;  %v4872_v8 = vsel %vm657_vm8, %v5392_v60, 0  ;;  %v4878_v27 = vsel %vm657_vm8, %v5394_v61, 0  ;;  %p5722_p13 = scmp.lt.s32.totalorder %s5720_s4, %s5714_s3 }
 0x612   : > { %4892 = vmatpush1.bf16.msra.mxu0 %v4872_v8  ;;  %4933 = vmatpush1.bf16.msra.mxu1 %v4878_v27 }
 0x613   : > { %p5723_p3 = por %p5722_p13, %p5721_p10 }
 0x615   : > { %5397 = vmatmul.mubr.msk.bf16.vlgmr.msra.gmra.mrb[20].mxu0 %vm722_vm14, %v5375_v48  ;;  %5399 = vmatmul.mubr.msk.bf16.vlgmr.msra.gmra.mrb[20].mxu1 %vm722_vm14, %v5375_v48  ;;  %p5724_p7 = pnand %p5723_p3, %p5717_p8 }
 0x61b   : > { %v4972_v18 = vpop.permute.xlu1 %4971 }
 0x698   : > { %v4164_v15 = vpop.f32.mrb[12].mxu1  ;;  %v4123_v31 = vpop.f32.mrb[12].mxu0 }
 0x699   : > { %v4166_v57 = vpop.f32.mrb[13].mxu1  ;;  %v4125_v11 = vpop.f32.mrb[13].mxu0 }
 0x69a   : > { %v4168_v49 = vpop.f32.mrb[14].mxu1  ;;  %v4127_v55 = vpop.f32.mrb[14].mxu0 }
 0x69b   : > { %v4169_v37 = vpop.f32.mrb[15].mxu1  ;;  %v4128_v38 = vpop.f32.mrb[15].mxu0 }
 0x6c5   : > { %v4310_v14 = vpop.f32.mrb[16].mxu0 }
 0x6c6   : > { %v4311_v30 = vadd.f32 %v4310_v14, %v4123_v31  ;;  %v4312_v32 = vpop.f32.mrb[17].mxu0 }
 0x6c7   : > { %v4313_v19 = vadd.f32 %v4312_v32, %v4125_v11  ;;  %v4314_v42 = vpop.f32.mrb[18].mxu0 }
 0x6c8   : > { %v4351_v40 = vpop.f32.mrb[16].mxu1  ;;  %v4315_v47 = vpop.f32.mrb[19].mxu0 }
 0x6c9   : > { %v4352_v12 = vadd.f32 %v4351_v40, %v4164_v15  ;;  %v4353_v3 = vpop.f32.mrb[17].mxu1 }
 0x6ca   : > { %v4354_v33 = vadd.f32 %v4353_v3, %v4166_v57  ;;  %v4355_v4 = vpop.f32.mrb[18].mxu1 }
 0x6cb   : > { %v4356_v28 = vpop.f32.mrb[19].mxu1 }
 0x6e8   : > { %v4917_v54 = vpop.f32.mrb[20].mxu0  ;;  %v4958_v39 = vpop.f32.mrb[20].mxu1 }
 0x6e9   : > { %v4965_v24 = vadd.f32 %v4917_v54, %v4311_v30  ;;  %v4967_v63 = vadd.f32 %v4958_v39, %v4352_v12  ;;  %v4919_v43 = vpop.f32.mrb[21].mxu0  ;;  %v4960_v29 = vpop.f32.mrb[21].mxu1 }
 0x6ea   : > { %v4966_v22 = vadd.f32 %v4919_v43, %v4313_v19  ;;  %v4968_v52 = vadd.f32 %v4960_v29, %v4354_v33  ;;  %v4921_v44 = vpop.f32.mrb[22].mxu0  ;;  %v4962_v2 = vpop.f32.mrb[22].mxu1 }
 0x6eb   : > { %v4974_v56 = vadd.f32 %v4972_v18, %v4965_v24  ;;  %v4976_v35 = vadd.f32 %v4972_v18, %v4967_v63  ;;  %v4922_v23 = vpop.f32.mrb[23].mxu0  ;;  %v4963_v1 = vpop.f32.mrb[23].mxu1 }
 0x6ec   : > { %v4975_v59 = vadd.f32 %v4972_v18, %v4966_v22  ;;  %v4977_v20 = vadd.f32 %v4972_v18, %v4968_v52 }
 0x6ed   : > { %v4978_v13 = vadd.f32 %v5652_v5, %v4974_v56  ;;  %v4980_v36 = vadd.f32 %v5653_v6, %v4976_v35 }
 0x6ee   : > { %v4979_v34 = vadd.f32 %v5654_v50, %v4975_v59  ;;  %v4981_v62 = vadd.f32 %v5655_v21, %v4977_v20 }
 0x6ef   : > { %4982 = vst [vmem:[%s390_s22] sm:$0xff] %v4978_v13  ;;  %4984 = vst [vmem:[%s390_s22 + $0x10] sm:$0xff] %v4980_v36 }
 0x6f0   : > { %4983 = vst [vmem:[%s390_s22 + $0x8] sm:$0xff] %v4979_v34  ;;  %4985 = vst [vmem:[%s390_s22 + $0x18] sm:$0xff] %v4981_v62 }
 0x6f1   : > { %5727 = shalt.err (!%p5724_p7)
}
 0x6f2   : > { %s5728_s29 = scalar_lea.hbm %s8693_s2, 512  ;;  %s5732_s30 = scalar_lea.hbm %s8747_s10, 1024 }
 0x6f3   : > { %p5729_p9 = scmp.ne.s32.totalorder %s8693_s2, %s5728_s29  ;;  %p5733_p0 = scmp.lt.u32.totalorder %s8693_s2, %s8747_s10 }
 0x6f4   : > { %p5734_p11 = scmp.lt.u32.totalorder %s5732_s30, %s5728_s29  ;;  %p5736_p4 = scmp.lt.u32.totalorder %s5728_s29, %s8693_s2 }
 0x6f5   : > { %p5730_p2 = pnand %p5729_p9, %p5957_p12 }
 0x6f6   : > { %p5735_p1 = por %p5734_p11, %p5733_p0 }
 0x6f7   : > { %p5731_p5 = pneg %p5730_p2 }
 0x6f8   : > { %p5737_p6 = por %p5736_p4, %p5735_p1 }
 0x6fa   : > { %p5738_p8 = pnand %p5737_p6, %p5731_p5 }
 0x6fc   : > { %5741 = shalt.err (!%p5738_p8)
}
 0x6fd   : > { %5573 = dma.vmem_to_hbm [thread:$0]  (%p5957_p12), %s8695_s19, 512, %s8693_s2, %s4987_s17  }
 0x6fe PF: > { %s9279_s28 = sld [smem:[#allocation13_spill]]  ;;  %s9280_s23 = sld [smem:[#allocation14_spill]] }
 0x6ff   : > { %p9282_p13 = scmp.ge.s32.totalorder %s5784_s16, 2 }
 0x704   : > { %s5013_s20 = sand.u32 1, %s9279_s28   ;;  %p9281_p10 = scmp.ne.s32.totalorder %s9280_s23, 0 }
 0x705   : > { %s5014_s11 = scalar_lea.sflag [#allocation6], %s5013_s20 }
 0x706   : > { %p5584_p3 = pnand %p9282_p13, %p9281_p10 }
 0x708   : > { %5767 = dma.done.wait (!%p5584_p3), %s5014_s11, 512  }
 0x709   : > { %5769 = vsyncadd (!%p5584_p3), %s5014_s11, 4294966784  ;;  %s9283_s16 = sld [smem:[#allocation15_spill]]  ;;  %s9284_s27 = sld [smem:[#allocation16_spill]] }
 0x70a   : > { %s9285_s13 = smov %s5776_s14  ;;  %s9286_s14 = smov %s5780_s15 }
 0x70f   : > { %p24_p7 = scmp.ge.s32.totalorder %s9283_s16, 4   ;;  %s9287_s15 = smov %s9284_s27 }
 0x711   :  { %26 = sbr.rel (!%p24_p7) target bundleno = 13 (0xd), region = 120 }
 0x718   :  { %5019 = vsyncpa [#allocation5], 1 }
 0x719   :  { %5021 = vsyncpa [#allocation5 + $0x1], 1 }
 0x71a   :  { %5022 = vsyncpa [#allocation8], 1 }
 0x71b   :  { %5023 = vsyncpa [#allocation6], 1 }
 0x71c   :  { %5025 = vsyncpa [#allocation6 + $0x1], 1 }

</bundles_post_ra>
